<compile_context>
chip_gen: v7x
topology: tpu7x:2x2x1
jax: 0.10.0
libtpu: 0.0.40
codegen_flags: <defaults>
</compile_context>

<pallas_src>
import functools

import jax
import jax.numpy as jnp
import numpy as np
from jax.experimental import pallas as pl
from jax.experimental.pallas import tpu as pltpu

# ---- module hyper-parameters (from the PyTorch script) ----------------------
EMBEDDING_DIM = 50
HIDDEN_DIM = 200
NUM_LAYERS = 1
VOCAB_SIZE = 386

# PyTorch LSTM stacks gates as (i, f, g, o); we repack to (i, f, o, g) so the
# sigmoid gates are contiguous and tanh gets the trailing Hp-wide slice.
GATE_PERM = (0, 1, 3, 2)


def _round_up(x, m):
    return ((x + m - 1) // m) * m


# ---- Pallas kernel -----------------------------------------------------------
def _char_lm_kernel(xproj_ref, h0_ref, c0_ref, wh_ref,
                    w1_ref, b1_ref, w2_ref, b2_ref,
                    out_ref, hn_ref, cn_ref,
                    h_sc, c_sc, hbuf_ref,
                    *, t_true, t_padded, unroll):
    """One T-chunk of the LSTM recurrence + the batched MLP head for that chunk.

    Grid: (n_chunks,) sequential ("arbitrary"); h/c carried in VMEM scratch.

    xproj_ref : (Tc, Bp, 4*Hp) compute_dtype  precomputed x@Wx + (b_ih+b_hh)
    h0/c0     : (Bp, Hp) f32                  initial states (zero-padded)
    wh_ref    : (Hp, 4*Hp) compute_dtype      fused hidden->gate weights (i,f,o,g)
    w1_ref    : (Hp, Hp), b1_ref : (1, Hp)    fc1 (transposed, padded)
    w2_ref    : (Hp, Vp), b2_ref : (1, Vp)    fc2 (transposed, padded)
    out_ref   : (Tc*Bp, Vp) f32               lane-dense logits slab (row = t*Bp + b)
    hn/cn     : (Bp, Hp) f32                  final states (constant block, resident)
    h_sc/c_sc : (Bp, Hp) f32 scratch          cross-chunk recurrent carry
    hbuf_ref  : (Tc*Bp, Hp) f32 scratch       this chunk's h_t, consumed by the head
    """
    Tc, Bp, G = xproj_ref.shape
    Hp = G // 4
    cd = wh_ref.dtype            # matmul-operand dtype (bf16 or f32)
    chunk = pl.program_id(0)

    @pl.when(chunk == 0)
    def _():
        h_sc[...] = h0_ref[...]
        c_sc[...] = c0_ref[...]

    wh = wh_ref[...]             # loop-invariant; see TODO(synk) re MXU staging

    def step(t, carry):
        h, c = carry
        # one fused 4-gate matmul per step; input projection was precomputed
        gates = xproj_ref[t].astype(jnp.float32) + jnp.dot(
            h.astype(cd), wh, preferred_element_type=jnp.float32)
        # (i, f, o) share one wide sigmoid; g gets one wide tanh
        sig = jax.nn.sigmoid(gates[:, :3 * Hp])
        g_g = jnp.tanh(gates[:, 3 * Hp:])
        i_g = sig[:, 0 * Hp:1 * Hp]
        f_g = sig[:, 1 * Hp:2 * Hp]
        o_g = sig[:, 2 * Hp:3 * Hp]
        c_new = f_g * c + i_g * g_g
        h_new = o_g * jnp.tanh(c_new)
        if t_padded != t_true:               # static: only if T was padded
            valid = (chunk * Tc + t) < t_true
            c_new = jnp.where(valid, c_new, c)
            h_new = jnp.where(valid, h_new, h)
        row = pl.multiple_of(t * Bp, Bp)
        hbuf_ref[pl.ds(row, Bp), :] = h_new
        return h_new, c_new

    h_fin, c_fin = jax.lax.fori_loop(
        0, Tc, step, (h_sc[...], c_sc[...]), unroll=unroll)
    h_sc[...] = h_fin
    c_sc[...] = c_fin
    hn_ref[...] = h_fin
    cn_ref[...] = c_fin

    # MLP head hoisted off the recurrence: one batched matmul per chunk
    hall = hbuf_ref[...].astype(cd)
    z = jnp.dot(hall, w1_ref[...], preferred_element_type=jnp.float32) + b1_ref[...]
    z = jnp.maximum(z, 0.0)
    out_ref[...] = jnp.dot(z.astype(cd), w2_ref[...],
                           preferred_element_type=jnp.float32) + b2_ref[...]


# ---- wrapper -----------------------------------------------------------------
def char_lm_forward(inputs, hidden, context, params, *,
                    compute_dtype=jnp.bfloat16, t_chunk=32):
    """Forward pass matching CharacterLevelLanguageModel.forward.

    inputs  : (B, T) int32 token ids
    hidden  : (1, B, H) float32
    context : (1, B, H) float32
    compute_dtype : dtype of matmul operands inside the kernel (bf16 default on
                    all TPU generations; accumulation always f32)
    t_chunk : timesteps per grid step (caps VMEM residency; pipelines xproj DMA)
    returns : logits (B, T, V), (h_n (1,B,H), c_n (1,B,H))
    """
    B, T = inputs.shape
    E, H, V = EMBEDDING_DIM, HIDDEN_DIM, VOCAB_SIZE
    Hp = _round_up(H, 128)          # 200 -> 256
    Vp = _round_up(V, 128)          # 386 -> 512
    Bp = _round_up(B, 8)            # 2   -> 8  (one sublane tile)
    cd = compute_dtype

    Tc = min(T, t_chunk)
    n_chunks = -(-T // Tc)
    Tp = n_chunks * Tc
    unroll = min(8, Tc)
    perm = jnp.array(GATE_PERM)

    # ---- repack & pad weights: gate-fused (i,f,o,g), lane-aligned ----------
    w_ih = params["weight_ih"].astype(jnp.float32)                       # (4H, E)
    w_hh = params["weight_hh"].astype(jnp.float32)                       # (4H, H)
    bias = (params["bias_ih"] + params["bias_hh"]).astype(jnp.float32)   # (4H,)

    wx4 = jnp.transpose(w_ih.reshape(4, H, E)[perm], (2, 0, 1))          # (E, 4, H)
    wxp = jnp.pad(wx4, ((0, 0), (0, 0), (0, Hp - H))).reshape(E, 4 * Hp)
    wh4 = jnp.transpose(w_hh.reshape(4, H, H)[perm], (2, 0, 1))          # (H, 4, H)
    whp = jnp.pad(wh4, ((0, Hp - H), (0, 0), (0, Hp - H))).reshape(Hp, 4 * Hp)
    bp = jnp.pad(bias.reshape(4, H)[perm], ((0, 0), (0, Hp - H))).reshape(1, 4 * Hp)

    w1p = jnp.pad(params["fc1_w"].T, ((0, Hp - H), (0, Hp - H)))         # (Hp, Hp)
    b1p = jnp.pad(params["fc1_b"], (0, Hp - H)).reshape(1, Hp)
    w2p = jnp.pad(params["fc2_w"].T, ((0, Hp - H), (0, Vp - V)))         # (Hp, Vp)
    b2p = jnp.pad(params["fc2_b"], (0, Vp - V)).reshape(1, Vp)

    h0p = jnp.pad(hidden[0].astype(jnp.float32), ((0, Bp - B), (0, Hp - H)))
    c0p = jnp.pad(context[0].astype(jnp.float32), ((0, Bp - B), (0, Hp - H)))

    # ---- embedding gather + input projection for ALL timesteps (XLA glue) --
    # Parallel work, kept off the kernel's serial critical path.
    emb_t = jnp.take(params["embedding"], inputs.T, axis=0)              # (T, B, E)
    emb_t = jnp.pad(emb_t, ((0, 0), (0, Bp - B), (0, 0)))                # (T, Bp, E)
    xproj = jnp.dot(emb_t.reshape(T * Bp, E).astype(cd), wxp.astype(cd),
                    preferred_element_type=jnp.float32) + bp             # (T*Bp, 4Hp)
    xproj = xproj.reshape(T, Bp, 4 * Hp)
    xproj = jnp.pad(xproj, ((0, Tp - T), (0, 0), (0, 0))).astype(cd)     # (Tp, Bp, 4Hp)

    kernel = functools.partial(_char_lm_kernel,
                               t_true=T, t_padded=Tp, unroll=unroll)

    out_flat, h_n, c_n = pl.pallas_call(
        kernel,
        out_shape=(
            jax.ShapeDtypeStruct((Tp * Bp, Vp), jnp.float32),   # logits slab
            jax.ShapeDtypeStruct((Bp, Hp), jnp.float32),        # h_n
            jax.ShapeDtypeStruct((Bp, Hp), jnp.float32),        # c_n
        ),
        grid_spec=pltpu.PrefetchScalarGridSpec(
            num_scalar_prefetch=0,
            grid=(n_chunks,),
            in_specs=[
                pl.BlockSpec((Tc, Bp, 4 * Hp), lambda i: (i, 0, 0)),   # xproj
                pl.BlockSpec((Bp, Hp), lambda i: (0, 0)),              # h0
                pl.BlockSpec((Bp, Hp), lambda i: (0, 0)),              # c0
                pl.BlockSpec((Hp, 4 * Hp), lambda i: (0, 0)),          # wh
                pl.BlockSpec((Hp, Hp), lambda i: (0, 0)),              # fc1 w
                pl.BlockSpec((1, Hp), lambda i: (0, 0)),               # fc1 b
                pl.BlockSpec((Hp, Vp), lambda i: (0, 0)),              # fc2 w
                pl.BlockSpec((1, Vp), lambda i: (0, 0)),               # fc2 b
            ],
            out_specs=(
                pl.BlockSpec((Tc * Bp, Vp), lambda i: (i, 0)),
                pl.BlockSpec((Bp, Hp), lambda i: (0, 0)),
                pl.BlockSpec((Bp, Hp), lambda i: (0, 0)),
            ),
            scratch_shapes=[
                pltpu.VMEM((Bp, Hp), jnp.float32),        # h carry
                pltpu.VMEM((Bp, Hp), jnp.float32),        # c carry
                pltpu.VMEM((Tc * Bp, Hp), jnp.float32),   # per-chunk h_t buffer
            ]),
        compiler_params=pltpu.CompilerParams(
            dimension_semantics=("arbitrary",)),
    )(xproj, h0p, c0p,
      whp.astype(cd), w1p.astype(cd), b1p, w2p.astype(cd), b2p)

    # row layout of out_flat is t-major: row = t*Bp + b
    logits = out_flat.reshape(Tp, Bp, Vp)[:T, :B, :V].transpose(1, 0, 2)  # (B,T,V)
    return logits, (h_n[:B, :H][None], c_n[:B, :H][None])


# ---- pure-JAX reference for a correctness check ------------------------------
def char_lm_reference(inputs, hidden, context, params):
    E, H, V = EMBEDDING_DIM, HIDDEN_DIM, VOCAB_SIZE
    emb = jnp.take(params["embedding"], inputs, axis=0)  # (B, T, E)
    B, T = inputs.shape
    h = hidden[0]
    c = context[0]
    w_ih, w_hh = params["weight_ih"], params["weight_hh"]
    b = params["bias_ih"] + params["bias_hh"]
    outs = []
    for t in range(T):
        x = emb[:, t, :]
        gates = x @ w_ih.T + h @ w_hh.T + b          # (B, 4H) in (i,f,g,o) order
        i_g = jax.nn.sigmoid(gates[:, 0 * H:1 * H])
        f_g = jax.nn.sigmoid(gates[:, 1 * H:2 * H])
        g_g = jnp.tanh(gates[:, 2 * H:3 * H])
        o_g = jax.nn.sigmoid(gates[:, 3 * H:4 * H])
        c = f_g * c + i_g * g_g
        h = o_g * jnp.tanh(c)
        outs.append(h)
    out = jnp.stack(outs, axis=1)                    # (B, T, H)
    z = jnp.maximum(out @ params["fc1_w"].T + params["fc1_b"], 0.0)
    logits = z @ params["fc2_w"].T + params["fc2_b"]
    return logits, (h[None], c[None])


# ---- deterministic parameter init --------------------------------------------
def make_params(key):
    E, H, V = EMBEDDING_DIM, HIDDEN_DIM, VOCAB_SIZE
    ks = jax.random.split(key, 9)
    s = 0.05
    return {
        "embedding": s * jax.random.normal(ks[0], (V, E), jnp.float32),
        "weight_ih": s * jax.random.normal(ks[1], (4 * H, E), jnp.float32),
        "weight_hh": s * jax.random.normal(ks[2], (4 * H, H), jnp.float32),
        "bias_ih":   s * jax.random.normal(ks[3], (4 * H,), jnp.float32),
        "bias_hh":   s * jax.random.normal(ks[4], (4 * H,), jnp.float32),
        "fc1_w":     s * jax.random.normal(ks[5], (H, H), jnp.float32),
        "fc1_b":     s * jax.random.normal(ks[6], (H,), jnp.float32),
        "fc2_w":     s * jax.random.normal(ks[7], (V, H), jnp.float32),
        "fc2_b":     s * jax.random.normal(ks[8], (V,), jnp.float32),
    }


if __name__ == "__main__":
    key = jax.random.PRNGKey(0)
    k_p, k_in, k_h, k_c = jax.random.split(key, 4)

    B, T = 2, 8
    params = make_params(k_p)
    inputs = jax.random.randint(k_in, (B, T), 0, VOCAB_SIZE, dtype=jnp.int32)
    hidden = jax.random.normal(k_h, (NUM_LAYERS, B, HIDDEN_DIM), jnp.float32)
    context = jax.random.normal(k_c, (NUM_LAYERS, B, HIDDEN_DIM), jnp.float32)

    ref_logits, (ref_h, ref_c) = char_lm_reference(inputs, hidden, context, params)

    # f32-operand path: exact-ish baseline on every TPU generation
    logits, (h_n, c_n) = char_lm_forward(inputs, hidden, context, params,
                                         compute_dtype=jnp.float32)
    jax.block_until_ready((logits, h_n, c_n))
    np.testing.assert_allclose(np.asarray(logits), np.asarray(ref_logits),
                               rtol=1e-4, atol=1e-4)
    np.testing.assert_allclose(np.asarray(h_n), np.asarray(ref_h), rtol=1e-4, atol=1e-4)
    np.testing.assert_allclose(np.asarray(c_n), np.asarray(ref_c), rtol=1e-4, atol=1e-4)

    # multi-chunk grid path (t_chunk=3 -> 3 chunks, padded tail masked)
    logits_ck, (h_ck, c_ck) = char_lm_forward(inputs, hidden, context, params,
                                              compute_dtype=jnp.float32, t_chunk=3)
    jax.block_until_ready((logits_ck, h_ck, c_ck))
    np.testing.assert_allclose(np.asarray(logits_ck), np.asarray(ref_logits),
                               rtol=1e-4, atol=1e-4)
    np.testing.assert_allclose(np.asarray(h_ck), np.asarray(ref_h), rtol=1e-4, atol=1e-4)
    np.testing.assert_allclose(np.asarray(c_ck), np.asarray(ref_c), rtol=1e-4, atol=1e-4)

    # default bf16 MXU-operand path (recommended on all generations);
    # elementwise gate math stays f32
    logits_bf, (h_bf, c_bf) = char_lm_forward(inputs, hidden, context, params)
    jax.block_until_ready((logits_bf, h_bf, c_bf))
    np.testing.assert_allclose(np.asarray(logits_bf), np.asarray(ref_logits),
                               rtol=5e-2, atol=5e-2)
    np.testing.assert_allclose(np.asarray(h_bf), np.asarray(ref_h), rtol=5e-2, atol=5e-2)
    np.testing.assert_allclose(np.asarray(c_bf), np.asarray(ref_c), rtol=5e-2, atol=5e-2)

    print("KERNEL_OK")
</pallas_src>

<mosaic_0001>
module attributes {stable_mosaic.version = 11 : i64} {
  func.func @_char_lm_kernel(%arg0: i32, %arg1: memref<8x8x1024xf32, #tpu.memory_space<vmem>>, %arg2: memref<8x256xf32, #tpu.memory_space<vmem>>, %arg3: memref<8x256xf32, #tpu.memory_space<vmem>>, %arg4: memref<256x1024xf32, #tpu.memory_space<vmem>>, %arg5: memref<256x256xf32, #tpu.memory_space<vmem>>, %arg6: memref<1x256xf32, #tpu.memory_space<vmem>>, %arg7: memref<256x512xf32, #tpu.memory_space<vmem>>, %arg8: memref<1x512xf32, #tpu.memory_space<vmem>>, %arg9: memref<64x512xf32, #tpu.memory_space<vmem>>, %arg10: memref<8x256xf32, #tpu.memory_space<vmem>>, %arg11: memref<8x256xf32, #tpu.memory_space<vmem>>, %arg12: memref<8x256xf32, #tpu.memory_space<vmem>>, %arg13: memref<8x256xf32, #tpu.memory_space<vmem>>, %arg14: memref<64x256xf32, #tpu.memory_space<vmem>>) attributes {dimension_semantics = [#tpu.dimension_semantics<arbitrary>], iteration_bounds = array<i64: 1>, scalar_prefetch = 0 : i64, scratch_operands = 3 : i64, tpu.core_type = #tpu.core_type<tc>, window_params = [{transform_indices = @transform_0, window_bounds = array<i64: 8, 8, 1024>}, {pipeline_mode = #tpu.pipeline_mode<synchronous>, transform_indices = @transform_1, window_bounds = array<i64: 8, 256>}, {pipeline_mode = #tpu.pipeline_mode<synchronous>, transform_indices = @transform_2, window_bounds = array<i64: 8, 256>}, {pipeline_mode = #tpu.pipeline_mode<synchronous>, transform_indices = @transform_3, window_bounds = array<i64: 256, 1024>}, {pipeline_mode = #tpu.pipeline_mode<synchronous>, transform_indices = @transform_4, window_bounds = array<i64: 256, 256>}, {pipeline_mode = #tpu.pipeline_mode<synchronous>, transform_indices = @transform_5, window_bounds = array<i64: 1, 256>}, {pipeline_mode = #tpu.pipeline_mode<synchronous>, transform_indices = @transform_6, window_bounds = array<i64: 256, 512>}, {pipeline_mode = #tpu.pipeline_mode<synchronous>, transform_indices = @transform_7, window_bounds = array<i64: 1, 512>}, {transform_indices = @transform_8, window_bounds = array<i64: 64, 512>}, {pipeline_mode = #tpu.pipeline_mode<synchronous>, transform_indices = @transform_9, window_bounds = array<i64: 8, 256>}, {pipeline_mode = #tpu.pipeline_mode<synchronous>, transform_indices = @transform_10, window_bounds = array<i64: 8, 256>}]} {
    %c0_i32 = arith.constant 0 : i32
    %0 = arith.cmpi eq, %arg0, %c0_i32 : i32
    %1 = arith.extui %0 : i1 to i32
    %c0_i32_0 = arith.constant 0 : i32
    %2 = arith.cmpi ne, %1, %c0_i32_0 : i32
    scf.if %2 {
      %c0_77 = arith.constant 0 : index
      %c0_78 = arith.constant 0 : index
      %224 = vector.load %arg2[%c0_77, %c0_78] : memref<8x256xf32, #tpu.memory_space<vmem>>, vector<8x256xf32>
      %c0_79 = arith.constant 0 : index
      %c0_80 = arith.constant 0 : index
      %225 = vector.load %arg12[%c0_79, %c0_80] : memref<8x256xf32, #tpu.memory_space<vmem>>, vector<8x256xf32>
      tpu.vector_store %arg12[%c0_79, %c0_80], %224 {strides = array<i32>} : memref<8x256xf32, #tpu.memory_space<vmem>>, vector<8x256xf32>,
      %c0_81 = arith.constant 0 : index
      %c0_82 = arith.constant 0 : index
      %226 = vector.load %arg3[%c0_81, %c0_82] : memref<8x256xf32, #tpu.memory_space<vmem>>, vector<8x256xf32>
      %c0_83 = arith.constant 0 : index
      %c0_84 = arith.constant 0 : index
      %227 = vector.load %arg13[%c0_83, %c0_84] : memref<8x256xf32, #tpu.memory_space<vmem>>, vector<8x256xf32>
      tpu.vector_store %arg13[%c0_83, %c0_84], %226 {strides = array<i32>} : memref<8x256xf32, #tpu.memory_space<vmem>>, vector<8x256xf32>,
    } else {
    }
    %c0 = arith.constant 0 : index
    %c0_1 = arith.constant 0 : index
    %3 = vector.load %arg4[%c0, %c0_1] : memref<256x1024xf32, #tpu.memory_space<vmem>>, vector<256x1024xf32>
    %c0_2 = arith.constant 0 : index
    %c0_3 = arith.constant 0 : index
    %4 = vector.load %arg12[%c0_2, %c0_3] : memref<8x256xf32, #tpu.memory_space<vmem>>, vector<8x256xf32>
    %c0_4 = arith.constant 0 : index
    %c0_5 = arith.constant 0 : index
    %5 = vector.load %arg13[%c0_4, %c0_5] : memref<8x256xf32, #tpu.memory_space<vmem>>, vector<8x256xf32>
    %c0_i32_6 = arith.constant 0 : i32
    %6 = arith.index_cast %c0_i32_6 : i32 to index
    %c0_7 = arith.constant 0 : index
    %c0_8 = arith.constant 0 : index
    %7 = vector.load %arg1[%6, %c0_7, %c0_8] : memref<8x8x1024xf32, #tpu.memory_space<vmem>>, vector<1x8x1024xf32>
    %8 = vector.shape_cast %7 : vector<1x8x1024xf32> to vector<8x1024xf32>
    %cst = arith.constant dense<0.000000e+00> : vector<8x1024xf32>
    %9 = tpu.matmul %4, %3, %cst {dimension_numbers = #tpu.dot_dimension_numbers<[1], [0], [0], [1], [0, 0, 1, 1], [], []>} : vector<8x256xf32>, vector<256x1024xf32>, vector<8x1024xf32> -> vector<8x1024xf32>
    %10 = arith.addf %8, %9 : vector<8x1024xf32>
    %11 = vector.extract_strided_slice %10 {offsets = [0, 0], sizes = [8, 768], strides = [1, 1]} : vector<8x1024xf32> to vector<8x768xf32>
    %12 = arith.negf %11 : vector<8x768xf32>
    %13 = math.exp %12 : vector<8x768xf32>
    %cst_9 = arith.constant 1.000000e+00 : f32
    %14 = vector.broadcast %cst_9 : f32 to vector<8x768xf32>
    %15 = arith.addf %14, %13 : vector<8x768xf32>
    %16 = arith.divf %14, %15 : vector<8x768xf32>
    %17 = vector.extract_strided_slice %10 {offsets = [0, 768], sizes = [8, 256], strides = [1, 1]} : vector<8x1024xf32> to vector<8x256xf32>
    %18 = math.tanh %17 : vector<8x256xf32>
    %19 = vector.extract_strided_slice %16 {offsets = [0, 0], sizes = [8, 256], strides = [1, 1]} : vector<8x768xf32> to vector<8x256xf32>
    %20 = vector.extract_strided_slice %16 {offsets = [0, 256], sizes = [8, 256], strides = [1, 1]} : vector<8x768xf32> to vector<8x256xf32>
    %21 = vector.extract_strided_slice %16 {offsets = [0, 512], sizes = [8, 256], strides = [1, 1]} : vector<8x768xf32> to vector<8x256xf32>
    %22 = arith.mulf %20, %5 : vector<8x256xf32>
    %23 = arith.mulf %19, %18 : vector<8x256xf32>
    %24 = arith.addf %22, %23 : vector<8x256xf32>
    %25 = math.tanh %24 : vector<8x256xf32>
    %26 = arith.mulf %21, %25 : vector<8x256xf32>
    %c8_i32 = arith.constant 8 : i32
    %27 = arith.muli %c0_i32_6, %c8_i32 : i32
    %28 = tpu.assume_multiple %27, 8 : i32
    %29 = arith.index_cast %28 : i32 to index
    %c0_10 = arith.constant 0 : index
    %30 = vector.load %arg14[%29, %c0_10] : memref<64x256xf32, #tpu.memory_space<vmem>>, vector<8x256xf32>
    tpu.vector_store %arg14[%29, %c0_10], %26 {strides = array<i32>} : memref<64x256xf32, #tpu.memory_space<vmem>>, vector<8x256xf32>,
    %c1_i32 = arith.constant 1 : i32
    %31 = arith.index_cast %c1_i32 : i32 to index
    %c0_11 = arith.constant 0 : index
    %c0_12 = arith.constant 0 : index
    %32 = vector.load %arg1[%31, %c0_11, %c0_12] : memref<8x8x1024xf32, #tpu.memory_space<vmem>>, vector<1x8x1024xf32>
    %33 = vector.shape_cast %32 : vector<1x8x1024xf32> to vector<8x1024xf32>
    %cst_13 = arith.constant dense<0.000000e+00> : vector<8x1024xf32>
    %34 = tpu.matmul %26, %3, %cst_13 {dimension_numbers = #tpu.dot_dimension_numbers<[1], [0], [0], [1], [0, 0, 1, 1], [], []>} : vector<8x256xf32>, vector<256x1024xf32>, vector<8x1024xf32> -> vector<8x1024xf32>
    %35 = arith.addf %33, %34 : vector<8x1024xf32>
    %36 = vector.extract_strided_slice %35 {offsets = [0, 0], sizes = [8, 768], strides = [1, 1]} : vector<8x1024xf32> to vector<8x768xf32>
    %37 = arith.negf %36 : vector<8x768xf32>
    %38 = math.exp %37 : vector<8x768xf32>
    %cst_14 = arith.constant 1.000000e+00 : f32
    %39 = vector.broadcast %cst_14 : f32 to vector<8x768xf32>
    %40 = arith.addf %39, %38 : vector<8x768xf32>
    %41 = arith.divf %39, %40 : vector<8x768xf32>
    %42 = vector.extract_strided_slice %35 {offsets = [0, 768], sizes = [8, 256], strides = [1, 1]} : vector<8x1024xf32> to vector<8x256xf32>
    %43 = math.tanh %42 : vector<8x256xf32>
    %44 = vector.extract_strided_slice %41 {offsets = [0, 0], sizes = [8, 256], strides = [1, 1]} : vector<8x768xf32> to vector<8x256xf32>
    %45 = vector.extract_strided_slice %41 {offsets = [0, 256], sizes = [8, 256], strides = [1, 1]} : vector<8x768xf32> to vector<8x256xf32>
    %46 = vector.extract_strided_slice %41 {offsets = [0, 512], sizes = [8, 256], strides = [1, 1]} : vector<8x768xf32> to vector<8x256xf32>
    %47 = arith.mulf %45, %24 : vector<8x256xf32>
    %48 = arith.mulf %44, %43 : vector<8x256xf32>
    %49 = arith.addf %47, %48 : vector<8x256xf32>
    %50 = math.tanh %49 : vector<8x256xf32>
    %51 = arith.mulf %46, %50 : vector<8x256xf32>
    %c8_i32_15 = arith.constant 8 : i32
    %52 = arith.muli %c1_i32, %c8_i32_15 : i32
    %53 = tpu.assume_multiple %52, 8 : i32
    %54 = arith.index_cast %53 : i32 to index
    %c0_16 = arith.constant 0 : index
    %55 = vector.load %arg14[%54, %c0_16] : memref<64x256xf32, #tpu.memory_space<vmem>>, vector<8x256xf32>
    tpu.vector_store %arg14[%54, %c0_16], %51 {strides = array<i32>} : memref<64x256xf32, #tpu.memory_space<vmem>>, vector<8x256xf32>,
    %c2_i32 = arith.constant 2 : i32
    %56 = arith.index_cast %c2_i32 : i32 to index
    %c0_17 = arith.constant 0 : index
    %c0_18 = arith.constant 0 : index
    %57 = vector.load %arg1[%56, %c0_17, %c0_18] : memref<8x8x1024xf32, #tpu.memory_space<vmem>>, vector<1x8x1024xf32>
    %58 = vector.shape_cast %57 : vector<1x8x1024xf32> to vector<8x1024xf32>
    %cst_19 = arith.constant dense<0.000000e+00> : vector<8x1024xf32>
    %59 = tpu.matmul %51, %3, %cst_19 {dimension_numbers = #tpu.dot_dimension_numbers<[1], [0], [0], [1], [0, 0, 1, 1], [], []>} : vector<8x256xf32>, vector<256x1024xf32>, vector<8x1024xf32> -> vector<8x1024xf32>
    %60 = arith.addf %58, %59 : vector<8x1024xf32>
    %61 = vector.extract_strided_slice %60 {offsets = [0, 0], sizes = [8, 768], strides = [1, 1]} : vector<8x1024xf32> to vector<8x768xf32>
    %62 = arith.negf %61 : vector<8x768xf32>
    %63 = math.exp %62 : vector<8x768xf32>
    %cst_20 = arith.constant 1.000000e+00 : f32
    %64 = vector.broadcast %cst_20 : f32 to vector<8x768xf32>
    %65 = arith.addf %64, %63 : vector<8x768xf32>
    %66 = arith.divf %64, %65 : vector<8x768xf32>
    %67 = vector.extract_strided_slice %60 {offsets = [0, 768], sizes = [8, 256], strides = [1, 1]} : vector<8x1024xf32> to vector<8x256xf32>
    %68 = math.tanh %67 : vector<8x256xf32>
    %69 = vector.extract_strided_slice %66 {offsets = [0, 0], sizes = [8, 256], strides = [1, 1]} : vector<8x768xf32> to vector<8x256xf32>
    %70 = vector.extract_strided_slice %66 {offsets = [0, 256], sizes = [8, 256], strides = [1, 1]} : vector<8x768xf32> to vector<8x256xf32>
    %71 = vector.extract_strided_slice %66 {offsets = [0, 512], sizes = [8, 256], strides = [1, 1]} : vector<8x768xf32> to vector<8x256xf32>
    %72 = arith.mulf %70, %49 : vector<8x256xf32>
    %73 = arith.mulf %69, %68 : vector<8x256xf32>
    %74 = arith.addf %72, %73 : vector<8x256xf32>
    %75 = math.tanh %74 : vector<8x256xf32>
    %76 = arith.mulf %71, %75 : vector<8x256xf32>
    %c8_i32_21 = arith.constant 8 : i32
    %77 = arith.muli %c2_i32, %c8_i32_21 : i32
    %78 = tpu.assume_multiple %77, 8 : i32
    %79 = arith.index_cast %78 : i32 to index
    %c0_22 = arith.constant 0 : index
    %80 = vector.load %arg14[%79, %c0_22] : memref<64x256xf32, #tpu.memory_space<vmem>>, vector<8x256xf32>
    tpu.vector_store %arg14[%79, %c0_22], %76 {strides = array<i32>} : memref<64x256xf32, #tpu.memory_space<vmem>>, vector<8x256xf32>,
    %c3_i32 = arith.constant 3 : i32
    %81 = arith.index_cast %c3_i32 : i32 to index
    %c0_23 = arith.constant 0 : index
    %c0_24 = arith.constant 0 : index
    %82 = vector.load %arg1[%81, %c0_23, %c0_24] : memref<8x8x1024xf32, #tpu.memory_space<vmem>>, vector<1x8x1024xf32>
    %83 = vector.shape_cast %82 : vector<1x8x1024xf32> to vector<8x1024xf32>
    %cst_25 = arith.constant dense<0.000000e+00> : vector<8x1024xf32>
    %84 = tpu.matmul %76, %3, %cst_25 {dimension_numbers = #tpu.dot_dimension_numbers<[1], [0], [0], [1], [0, 0, 1, 1], [], []>} : vector<8x256xf32>, vector<256x1024xf32>, vector<8x1024xf32> -> vector<8x1024xf32>
    %85 = arith.addf %83, %84 : vector<8x1024xf32>
    %86 = vector.extract_strided_slice %85 {offsets = [0, 0], sizes = [8, 768], strides = [1, 1]} : vector<8x1024xf32> to vector<8x768xf32>
    %87 = arith.negf %86 : vector<8x768xf32>
    %88 = math.exp %87 : vector<8x768xf32>
    %cst_26 = arith.constant 1.000000e+00 : f32
    %89 = vector.broadcast %cst_26 : f32 to vector<8x768xf32>
    %90 = arith.addf %89, %88 : vector<8x768xf32>
    %91 = arith.divf %89, %90 : vector<8x768xf32>
    %92 = vector.extract_strided_slice %85 {offsets = [0, 768], sizes = [8, 256], strides = [1, 1]} : vector<8x1024xf32> to vector<8x256xf32>
    %93 = math.tanh %92 : vector<8x256xf32>
    %94 = vector.extract_strided_slice %91 {offsets = [0, 0], sizes = [8, 256], strides = [1, 1]} : vector<8x768xf32> to vector<8x256xf32>
    %95 = vector.extract_strided_slice %91 {offsets = [0, 256], sizes = [8, 256], strides = [1, 1]} : vector<8x768xf32> to vector<8x256xf32>
    %96 = vector.extract_strided_slice %91 {offsets = [0, 512], sizes = [8, 256], strides = [1, 1]} : vector<8x768xf32> to vector<8x256xf32>
    %97 = arith.mulf %95, %74 : vector<8x256xf32>
    %98 = arith.mulf %94, %93 : vector<8x256xf32>
    %99 = arith.addf %97, %98 : vector<8x256xf32>
    %100 = math.tanh %99 : vector<8x256xf32>
    %101 = arith.mulf %96, %100 : vector<8x256xf32>
    %c8_i32_27 = arith.constant 8 : i32
    %102 = arith.muli %c3_i32, %c8_i32_27 : i32
    %103 = tpu.assume_multiple %102, 8 : i32
    %104 = arith.index_cast %103 : i32 to index
    %c0_28 = arith.constant 0 : index
    %105 = vector.load %arg14[%104, %c0_28] : memref<64x256xf32, #tpu.memory_space<vmem>>, vector<8x256xf32>
    tpu.vector_store %arg14[%104, %c0_28], %101 {strides = array<i32>} : memref<64x256xf32, #tpu.memory_space<vmem>>, vector<8x256xf32>,
    %c4_i32 = arith.constant 4 : i32
    %106 = arith.index_cast %c4_i32 : i32 to index
    %c0_29 = arith.constant 0 : index
    %c0_30 = arith.constant 0 : index
    %107 = vector.load %arg1[%106, %c0_29, %c0_30] : memref<8x8x1024xf32, #tpu.memory_space<vmem>>, vector<1x8x1024xf32>
    %108 = vector.shape_cast %107 : vector<1x8x1024xf32> to vector<8x1024xf32>
    %cst_31 = arith.constant dense<0.000000e+00> : vector<8x1024xf32>
    %109 = tpu.matmul %101, %3, %cst_31 {dimension_numbers = #tpu.dot_dimension_numbers<[1], [0], [0], [1], [0, 0, 1, 1], [], []>} : vector<8x256xf32>, vector<256x1024xf32>, vector<8x1024xf32> -> vector<8x1024xf32>
    %110 = arith.addf %108, %109 : vector<8x1024xf32>
    %111 = vector.extract_strided_slice %110 {offsets = [0, 0], sizes = [8, 768], strides = [1, 1]} : vector<8x1024xf32> to vector<8x768xf32>
    %112 = arith.negf %111 : vector<8x768xf32>
    %113 = math.exp %112 : vector<8x768xf32>
    %cst_32 = arith.constant 1.000000e+00 : f32
    %114 = vector.broadcast %cst_32 : f32 to vector<8x768xf32>
    %115 = arith.addf %114, %113 : vector<8x768xf32>
    %116 = arith.divf %114, %115 : vector<8x768xf32>
    %117 = vector.extract_strided_slice %110 {offsets = [0, 768], sizes = [8, 256], strides = [1, 1]} : vector<8x1024xf32> to vector<8x256xf32>
    %118 = math.tanh %117 : vector<8x256xf32>
    %119 = vector.extract_strided_slice %116 {offsets = [0, 0], sizes = [8, 256], strides = [1, 1]} : vector<8x768xf32> to vector<8x256xf32>
    %120 = vector.extract_strided_slice %116 {offsets = [0, 256], sizes = [8, 256], strides = [1, 1]} : vector<8x768xf32> to vector<8x256xf32>
    %121 = vector.extract_strided_slice %116 {offsets = [0, 512], sizes = [8, 256], strides = [1, 1]} : vector<8x768xf32> to vector<8x256xf32>
    %122 = arith.mulf %120, %99 : vector<8x256xf32>
    %123 = arith.mulf %119, %118 : vector<8x256xf32>
    %124 = arith.addf %122, %123 : vector<8x256xf32>
    %125 = math.tanh %124 : vector<8x256xf32>
    %126 = arith.mulf %121, %125 : vector<8x256xf32>
    %c8_i32_33 = arith.constant 8 : i32
    %127 = arith.muli %c4_i32, %c8_i32_33 : i32
    %128 = tpu.assume_multiple %127, 8 : i32
    %129 = arith.index_cast %128 : i32 to index
    %c0_34 = arith.constant 0 : index
    %130 = vector.load %arg14[%129, %c0_34] : memref<64x256xf32, #tpu.memory_space<vmem>>, vector<8x256xf32>
    tpu.vector_store %arg14[%129, %c0_34], %126 {strides = array<i32>} : memref<64x256xf32, #tpu.memory_space<vmem>>, vector<8x256xf32>,
    %c5_i32 = arith.constant 5 : i32
    %131 = arith.index_cast %c5_i32 : i32 to index
    %c0_35 = arith.constant 0 : index
    %c0_36 = arith.constant 0 : index
    %132 = vector.load %arg1[%131, %c0_35, %c0_36] : memref<8x8x1024xf32, #tpu.memory_space<vmem>>, vector<1x8x1024xf32>
    %133 = vector.shape_cast %132 : vector<1x8x1024xf32> to vector<8x1024xf32>
    %cst_37 = arith.constant dense<0.000000e+00> : vector<8x1024xf32>
    %134 = tpu.matmul %126, %3, %cst_37 {dimension_numbers = #tpu.dot_dimension_numbers<[1], [0], [0], [1], [0, 0, 1, 1], [], []>} : vector<8x256xf32>, vector<256x1024xf32>, vector<8x1024xf32> -> vector<8x1024xf32>
    %135 = arith.addf %133, %134 : vector<8x1024xf32>
    %136 = vector.extract_strided_slice %135 {offsets = [0, 0], sizes = [8, 768], strides = [1, 1]} : vector<8x1024xf32> to vector<8x768xf32>
    %137 = arith.negf %136 : vector<8x768xf32>
    %138 = math.exp %137 : vector<8x768xf32>
    %cst_38 = arith.constant 1.000000e+00 : f32
    %139 = vector.broadcast %cst_38 : f32 to vector<8x768xf32>
    %140 = arith.addf %139, %138 : vector<8x768xf32>
    %141 = arith.divf %139, %140 : vector<8x768xf32>
    %142 = vector.extract_strided_slice %135 {offsets = [0, 768], sizes = [8, 256], strides = [1, 1]} : vector<8x1024xf32> to vector<8x256xf32>
    %143 = math.tanh %142 : vector<8x256xf32>
    %144 = vector.extract_strided_slice %141 {offsets = [0, 0], sizes = [8, 256], strides = [1, 1]} : vector<8x768xf32> to vector<8x256xf32>
    %145 = vector.extract_strided_slice %141 {offsets = [0, 256], sizes = [8, 256], strides = [1, 1]} : vector<8x768xf32> to vector<8x256xf32>
    %146 = vector.extract_strided_slice %141 {offsets = [0, 512], sizes = [8, 256], strides = [1, 1]} : vector<8x768xf32> to vector<8x256xf32>
    %147 = arith.mulf %145, %124 : vector<8x256xf32>
    %148 = arith.mulf %144, %143 : vector<8x256xf32>
    %149 = arith.addf %147, %148 : vector<8x256xf32>
    %150 = math.tanh %149 : vector<8x256xf32>
    %151 = arith.mulf %146, %150 : vector<8x256xf32>
    %c8_i32_39 = arith.constant 8 : i32
    %152 = arith.muli %c5_i32, %c8_i32_39 : i32
    %153 = tpu.assume_multiple %152, 8 : i32
    %154 = arith.index_cast %153 : i32 to index
    %c0_40 = arith.constant 0 : index
    %155 = vector.load %arg14[%154, %c0_40] : memref<64x256xf32, #tpu.memory_space<vmem>>, vector<8x256xf32>
    tpu.vector_store %arg14[%154, %c0_40], %151 {strides = array<i32>} : memref<64x256xf32, #tpu.memory_space<vmem>>, vector<8x256xf32>,
    %c6_i32 = arith.constant 6 : i32
    %156 = arith.index_cast %c6_i32 : i32 to index
    %c0_41 = arith.constant 0 : index
    %c0_42 = arith.constant 0 : index
    %157 = vector.load %arg1[%156, %c0_41, %c0_42] : memref<8x8x1024xf32, #tpu.memory_space<vmem>>, vector<1x8x1024xf32>
    %158 = vector.shape_cast %157 : vector<1x8x1024xf32> to vector<8x1024xf32>
    %cst_43 = arith.constant dense<0.000000e+00> : vector<8x1024xf32>
    %159 = tpu.matmul %151, %3, %cst_43 {dimension_numbers = #tpu.dot_dimension_numbers<[1], [0], [0], [1], [0, 0, 1, 1], [], []>} : vector<8x256xf32>, vector<256x1024xf32>, vector<8x1024xf32> -> vector<8x1024xf32>
    %160 = arith.addf %158, %159 : vector<8x1024xf32>
    %161 = vector.extract_strided_slice %160 {offsets = [0, 0], sizes = [8, 768], strides = [1, 1]} : vector<8x1024xf32> to vector<8x768xf32>
    %162 = arith.negf %161 : vector<8x768xf32>
    %163 = math.exp %162 : vector<8x768xf32>
    %cst_44 = arith.constant 1.000000e+00 : f32
    %164 = vector.broadcast %cst_44 : f32 to vector<8x768xf32>
    %165 = arith.addf %164, %163 : vector<8x768xf32>
    %166 = arith.divf %164, %165 : vector<8x768xf32>
    %167 = vector.extract_strided_slice %160 {offsets = [0, 768], sizes = [8, 256], strides = [1, 1]} : vector<8x1024xf32> to vector<8x256xf32>
    %168 = math.tanh %167 : vector<8x256xf32>
    %169 = vector.extract_strided_slice %166 {offsets = [0, 0], sizes = [8, 256], strides = [1, 1]} : vector<8x768xf32> to vector<8x256xf32>
    %170 = vector.extract_strided_slice %166 {offsets = [0, 256], sizes = [8, 256], strides = [1, 1]} : vector<8x768xf32> to vector<8x256xf32>
    %171 = vector.extract_strided_slice %166 {offsets = [0, 512], sizes = [8, 256], strides = [1, 1]} : vector<8x768xf32> to vector<8x256xf32>
    %172 = arith.mulf %170, %149 : vector<8x256xf32>
    %173 = arith.mulf %169, %168 : vector<8x256xf32>
    %174 = arith.addf %172, %173 : vector<8x256xf32>
    %175 = math.tanh %174 : vector<8x256xf32>
    %176 = arith.mulf %171, %175 : vector<8x256xf32>
    %c8_i32_45 = arith.constant 8 : i32
    %177 = arith.muli %c6_i32, %c8_i32_45 : i32
    %178 = tpu.assume_multiple %177, 8 : i32
    %179 = arith.index_cast %178 : i32 to index
    %c0_46 = arith.constant 0 : index
    %180 = vector.load %arg14[%179, %c0_46] : memref<64x256xf32, #tpu.memory_space<vmem>>, vector<8x256xf32>
    tpu.vector_store %arg14[%179, %c0_46], %176 {strides = array<i32>} : memref<64x256xf32, #tpu.memory_space<vmem>>, vector<8x256xf32>,
    %c7_i32 = arith.constant 7 : i32
    %181 = arith.index_cast %c7_i32 : i32 to index
    %c0_47 = arith.constant 0 : index
    %c0_48 = arith.constant 0 : index
    %182 = vector.load %arg1[%181, %c0_47, %c0_48] : memref<8x8x1024xf32, #tpu.memory_space<vmem>>, vector<1x8x1024xf32>
    %183 = vector.shape_cast %182 : vector<1x8x1024xf32> to vector<8x1024xf32>
    %cst_49 = arith.constant dense<0.000000e+00> : vector<8x1024xf32>
    %184 = tpu.matmul %176, %3, %cst_49 {dimension_numbers = #tpu.dot_dimension_numbers<[1], [0], [0], [1], [0, 0, 1, 1], [], []>} : vector<8x256xf32>, vector<256x1024xf32>, vector<8x1024xf32> -> vector<8x1024xf32>
    %185 = arith.addf %183, %184 : vector<8x1024xf32>
    %186 = vector.extract_strided_slice %185 {offsets = [0, 0], sizes = [8, 768], strides = [1, 1]} : vector<8x1024xf32> to vector<8x768xf32>
    %187 = arith.negf %186 : vector<8x768xf32>
    %188 = math.exp %187 : vector<8x768xf32>
    %cst_50 = arith.constant 1.000000e+00 : f32
    %189 = vector.broadcast %cst_50 : f32 to vector<8x768xf32>
    %190 = arith.addf %189, %188 : vector<8x768xf32>
    %191 = arith.divf %189, %190 : vector<8x768xf32>
    %192 = vector.extract_strided_slice %185 {offsets = [0, 768], sizes = [8, 256], strides = [1, 1]} : vector<8x1024xf32> to vector<8x256xf32>
    %193 = math.tanh %192 : vector<8x256xf32>
    %194 = vector.extract_strided_slice %191 {offsets = [0, 0], sizes = [8, 256], strides = [1, 1]} : vector<8x768xf32> to vector<8x256xf32>
    %195 = vector.extract_strided_slice %191 {offsets = [0, 256], sizes = [8, 256], strides = [1, 1]} : vector<8x768xf32> to vector<8x256xf32>
    %196 = vector.extract_strided_slice %191 {offsets = [0, 512], sizes = [8, 256], strides = [1, 1]} : vector<8x768xf32> to vector<8x256xf32>
    %197 = arith.mulf %195, %174 : vector<8x256xf32>
    %198 = arith.mulf %194, %193 : vector<8x256xf32>
    %199 = arith.addf %197, %198 : vector<8x256xf32>
    %200 = math.tanh %199 : vector<8x256xf32>
    %201 = arith.mulf %196, %200 : vector<8x256xf32>
    %c8_i32_51 = arith.constant 8 : i32
    %202 = arith.muli %c7_i32, %c8_i32_51 : i32
    %203 = tpu.assume_multiple %202, 8 : i32
    %204 = arith.index_cast %203 : i32 to index
    %c0_52 = arith.constant 0 : index
    %205 = vector.load %arg14[%204, %c0_52] : memref<64x256xf32, #tpu.memory_space<vmem>>, vector<8x256xf32>
    tpu.vector_store %arg14[%204, %c0_52], %201 {strides = array<i32>} : memref<64x256xf32, #tpu.memory_space<vmem>>, vector<8x256xf32>,
    %c8_i32_53 = arith.constant 8 : i32
    %c0_54 = arith.constant 0 : index
    %c0_55 = arith.constant 0 : index
    %206 = vector.load %arg12[%c0_54, %c0_55] : memref<8x256xf32, #tpu.memory_space<vmem>>, vector<8x256xf32>
    tpu.vector_store %arg12[%c0_54, %c0_55], %201 {strides = array<i32>} : memref<8x256xf32, #tpu.memory_space<vmem>>, vector<8x256xf32>,
    %c0_56 = arith.constant 0 : index
    %c0_57 = arith.constant 0 : index
    %207 = vector.load %arg13[%c0_56, %c0_57] : memref<8x256xf32, #tpu.memory_space<vmem>>, vector<8x256xf32>
    tpu.vector_store %arg13[%c0_56, %c0_57], %199 {strides = array<i32>} : memref<8x256xf32, #tpu.memory_space<vmem>>, vector<8x256xf32>,
    %c0_58 = arith.constant 0 : index
    %c0_59 = arith.constant 0 : index
    %208 = vector.load %arg10[%c0_58, %c0_59] : memref<8x256xf32, #tpu.memory_space<vmem>>, vector<8x256xf32>
    tpu.vector_store %arg10[%c0_58, %c0_59], %201 {strides = array<i32>} : memref<8x256xf32, #tpu.memory_space<vmem>>, vector<8x256xf32>,
    %c0_60 = arith.constant 0 : index
    %c0_61 = arith.constant 0 : index
    %209 = vector.load %arg11[%c0_60, %c0_61] : memref<8x256xf32, #tpu.memory_space<vmem>>, vector<8x256xf32>
    tpu.vector_store %arg11[%c0_60, %c0_61], %199 {strides = array<i32>} : memref<8x256xf32, #tpu.memory_space<vmem>>, vector<8x256xf32>,
    %c0_62 = arith.constant 0 : index
    %c0_63 = arith.constant 0 : index
    %210 = vector.load %arg14[%c0_62, %c0_63] : memref<64x256xf32, #tpu.memory_space<vmem>>, vector<64x256xf32>
    %c0_64 = arith.constant 0 : index
    %c0_65 = arith.constant 0 : index
    %211 = vector.load %arg5[%c0_64, %c0_65] : memref<256x256xf32, #tpu.memory_space<vmem>>, vector<256x256xf32>
    %cst_66 = arith.constant dense<0.000000e+00> : vector<64x256xf32>
    %212 = tpu.matmul %210, %211, %cst_66 {dimension_numbers = #tpu.dot_dimension_numbers<[1], [0], [0], [1], [0, 0, 1, 1], [], []>} : vector<64x256xf32>, vector<256x256xf32>, vector<64x256xf32> -> vector<64x256xf32>
    %c0_67 = arith.constant 0 : index
    %c0_68 = arith.constant 0 : index
    %213 = vector.load %arg6[%c0_67, %c0_68] : memref<1x256xf32, #tpu.memory_space<vmem>>, vector<1x256xf32>
    %214 = vector.broadcast %213 : vector<1x256xf32> to vector<64x256xf32>
    %215 = arith.addf %212, %214 : vector<64x256xf32>
    %cst_69 = arith.constant 0.000000e+00 : f32
    %216 = vector.broadcast %cst_69 : f32 to vector<64x256xf32>
    %217 = arith.maximumf %215, %216 : vector<64x256xf32>
    %c0_70 = arith.constant 0 : index
    %c0_71 = arith.constant 0 : index
    %218 = vector.load %arg7[%c0_70, %c0_71] : memref<256x512xf32, #tpu.memory_space<vmem>>, vector<256x512xf32>
    %cst_72 = arith.constant dense<0.000000e+00> : vector<64x512xf32>
    %219 = tpu.matmul %217, %218, %cst_72 {dimension_numbers = #tpu.dot_dimension_numbers<[1], [0], [0], [1], [0, 0, 1, 1], [], []>} : vector<64x256xf32>, vector<256x512xf32>, vector<64x512xf32> -> vector<64x512xf32>
    %c0_73 = arith.constant 0 : index
    %c0_74 = arith.constant 0 : index
    %220 = vector.load %arg8[%c0_73, %c0_74] : memref<1x512xf32, #tpu.memory_space<vmem>>, vector<1x512xf32>
    %221 = vector.broadcast %220 : vector<1x512xf32> to vector<64x512xf32>
    %222 = arith.addf %219, %221 : vector<64x512xf32>
    %c0_75 = arith.constant 0 : index
    %c0_76 = arith.constant 0 : index
    %223 = vector.load %arg9[%c0_75, %c0_76] : memref<64x512xf32, #tpu.memory_space<vmem>>, vector<64x512xf32>
    tpu.vector_store %arg9[%c0_75, %c0_76], %222 {strides = array<i32>} : memref<64x512xf32, #tpu.memory_space<vmem>>, vector<64x512xf32>,
    return
  }
  func.func @transform_0(%arg0: i32) -> (i32, i32, i32) {
    %c0_i32 = arith.constant 0 : i32
    %c0_i32_0 = arith.constant 0 : i32
    %c0_i32_1 = arith.constant 0 : i32
    return %arg0, %c0_i32, %c0_i32_0 : i32, i32, i32
  }
  func.func @transform_1(%arg0: i32) -> (i32, i32) {
    %c0_i32 = arith.constant 0 : i32
    %c0_i32_0 = arith.constant 0 : i32
    %c0_i32_1 = arith.constant 0 : i32
    return %c0_i32, %c0_i32_0 : i32, i32
  }
  func.func @transform_2(%arg0: i32) -> (i32, i32) {
    %c0_i32 = arith.constant 0 : i32
    %c0_i32_0 = arith.constant 0 : i32
    %c0_i32_1 = arith.constant 0 : i32
    return %c0_i32, %c0_i32_0 : i32, i32
  }
  func.func @transform_3(%arg0: i32) -> (i32, i32) {
    %c0_i32 = arith.constant 0 : i32
    %c0_i32_0 = arith.constant 0 : i32
    %c0_i32_1 = arith.constant 0 : i32
    return %c0_i32, %c0_i32_0 : i32, i32
  }
  func.func @transform_4(%arg0: i32) -> (i32, i32) {
    %c0_i32 = arith.constant 0 : i32
    %c0_i32_0 = arith.constant 0 : i32
    %c0_i32_1 = arith.constant 0 : i32
    return %c0_i32, %c0_i32_0 : i32, i32
  }
  func.func @transform_5(%arg0: i32) -> (i32, i32) {
    %c0_i32 = arith.constant 0 : i32
    %c0_i32_0 = arith.constant 0 : i32
    %c0_i32_1 = arith.constant 0 : i32
    return %c0_i32, %c0_i32_0 : i32, i32
  }
  func.func @transform_6(%arg0: i32) -> (i32, i32) {
    %c0_i32 = arith.constant 0 : i32
    %c0_i32_0 = arith.constant 0 : i32
    %c0_i32_1 = arith.constant 0 : i32
    return %c0_i32, %c0_i32_0 : i32, i32
  }
  func.func @transform_7(%arg0: i32) -> (i32, i32) {
    %c0_i32 = arith.constant 0 : i32
    %c0_i32_0 = arith.constant 0 : i32
    %c0_i32_1 = arith.constant 0 : i32
    return %c0_i32, %c0_i32_0 : i32, i32
  }
  func.func @transform_8(%arg0: i32) -> (i32, i32) {
    %c0_i32 = arith.constant 0 : i32
    %c0_i32_0 = arith.constant 0 : i32
    return %arg0, %c0_i32 : i32, i32
  }
  func.func @transform_9(%arg0: i32) -> (i32, i32) {
    %c0_i32 = arith.constant 0 : i32
    %c0_i32_0 = arith.constant 0 : i32
    %c0_i32_1 = arith.constant 0 : i32
    return %c0_i32, %c0_i32_0 : i32, i32
  }
  func.func @transform_10(%arg0: i32) -> (i32, i32) {
    %c0_i32 = arith.constant 0 : i32
    %c0_i32_0 = arith.constant 0 : i32
    %c0_i32_1 = arith.constant 0 : i32
    return %c0_i32, %c0_i32_0 : i32, i32
  }
}

</mosaic_0001>

<bundles_post_ra>
// kernel: tpu_custom_call.1
= control target key start
LH: loop header
LB: loop body
LE: loop exit
PB: predicated region body
PF: predicated region fallthrough
CT: control target
= control target key end

     0   :  { %16 = vsyncpa [#allocation6], 0  ;;  %s8545_s0 = inlined_call_operand.hbm [shape: f32[8,8,1024], index: 0, kind: input, shape index: {}]   ;;  %s8546_s1 = inlined_call_operand.hbm [shape: f32[8,256], index: 1, kind: input, shape index: {}]   ;;  %s8547_s2 = inlined_call_operand.hbm [shape: f32[8,256], index: 2, kind: input, shape index: {}]   ;;  %s8548_s3 = inlined_call_operand.hbm [shape: f32[256,1024], index: 3, kind: input, shape index: {}]   ;;  %s8549_s4 = inlined_call_operand.hbm [shape: f32[256,256], index: 4, kind: input, shape index: {}]   ;;  %s8550_s5 = inlined_call_operand.vmem [shape: f32[1,256], index: 5, kind: input, shape index: {}]   ;;  %s8551_s6 = inlined_call_operand.hbm [shape: f32[256,512], index: 6, kind: input, shape index: {}]   ;;  %s8552_s7 = inlined_call_operand.vmem [shape: f32[1,512], index: 7, kind: input, shape index: {}]   ;;  %s8553_s8 = inlined_call_operand.hbm [shape: f32[64,512], index: 8, kind: output, shape index: {0}]   ;;  %s8554_s9 = inlined_call_operand.hbm [shape: f32[8,256], index: 9, kind: output, shape index: {1}]   ;;  %s8555_s10 = inlined_call_operand.hbm [shape: f32[8,256], index: 10, kind: output, shape index: {2}]  }
   0x1   :  { %17 = vsyncpa [#allocation9], 0 }
   0x2   :  { %18 = vsyncpa [#allocation12], 0 }
   0x3   :  { %19 = vsyncpa [#allocation15], 0 }
   0x4   :  { %20 = vsyncpa [#allocation7], 0 }
   0x5   :  { %21 = vsyncpa [#allocation18], 0  ;;  %s6707_s13 = smov [#allocation8]   ;;  %s6497_s17 = scalar_lea.hbm %s8546_s1, 256 }
   0x6   :  { %s40_s14 = sshll.u32 %s6707_s13, 4  ;;  %p6498_p0 = scmp.ne.s32.totalorder %s8546_s1, %s6497_s17  ;;  %s41_s14 = int_to_ptr.vmem [resolvable:$true] %s40_s14 }
   0x7   :  { %p6501_p1 = scmp.lt.u32.totalorder %s6497_s17, %s8546_s1 }
   0x9   :  { %p6503_p2 = pnand %p6501_p1, %p6498_p0 }
   0xb   :  { %6506 = shalt.err (!%p6503_p2)
}
   0xc   :  { %s6507_s22 = scalar_lea.vmem %s41_s14, 256  ;;  %p6512_p4 = scmp.lt.s32.totalorder %s41_s14, %s41_s14 }
   0xd   :  { %p6508_p3 = scmp.ne.s32.totalorder %s41_s14, %s6507_s22  ;;  %p6513_p5 = scmp.lt.s32.totalorder %s6507_s22, %s6507_s22 }
   0xf   :  { %p6514_p6 = por %p6513_p5, %p6512_p4 }
  0x11   :  { %p6515_p7 = pnand %p6514_p6, %p6508_p3 }
  0x13   :  { %6518 = shalt.err (!%p6515_p7)
}
  0x14   :  { %43 = dma.hbm_to_vmem [thread:$0]  %s8546_s1, 256, %s41_s14, [#allocation9]  }
  0x15   :  { %s6708_s25 = smov [#allocation11]   ;;  %s6709_s27 = smov [#allocation5]  }
  0x16   :  { %s59_s26 = sshll.u32 %s6708_s25, 4  ;;  %s27_s28 = sshll.u32 %s6709_s27, 4  ;;  %s60_s26 = int_to_ptr.vmem [resolvable:$true] %s59_s26  ;;  %s28_s28 = int_to_ptr.vmem [resolvable:$true] %s27_s28 }
  0x17   :  { %s6519_s11 = scalar_lea.hbm %s8548_s3, 32768 }
  0x18   :  { %p6520_p8 = scmp.ne.s32.totalorder %s8548_s3, %s6519_s11  ;;  %p6523_p9 = scmp.lt.u32.totalorder %s6519_s11, %s8548_s3 }
  0x1a   :  { %p6525_p10 = pnand %p6523_p9, %p6520_p8 }
  0x1c   :  { %6528 = shalt.err (!%p6525_p10)
}
  0x1d   :  { %s6529_s1 = scalar_lea.vmem %s60_s26, 32768  ;;  %p6534_p12 = scmp.lt.s32.totalorder %s60_s26, %s60_s26 }
  0x1e   :  { %p6530_p11 = scmp.ne.s32.totalorder %s60_s26, %s6529_s1  ;;  %p6535_p13 = scmp.lt.s32.totalorder %s6529_s1, %s6529_s1 }
  0x20   :  { %p6536_p0 = por %p6535_p13, %p6534_p12 }
  0x22   :  { %p6537_p1 = pnand %p6536_p0, %p6530_p11 }
  0x24   :  { %6540 = shalt.err (!%p6537_p1)
}
  0x25   :  { %s6710_s14 = smov 1024   ;;  %s6711_s17 = smov 64  }
  0x26   :  { %65 = dma.hbm_to_vmem [thread:$0]  %s8548_s3, 32768, %s60_s26, [#allocation12], %s6710_s14, %s6710_s14, %s6711_s17  }
  0x27   :  { %s6541_s22 = scalar_lea.hbm %s8545_s0, 8192 }
  0x28   :  { %p6542_p2 = scmp.ne.s32.totalorder %s8545_s0, %s6541_s22  ;;  %p6545_p3 = scmp.lt.u32.totalorder %s6541_s22, %s8545_s0 }
  0x2a   :  { %p6547_p4 = pnand %p6545_p3, %p6542_p2 }
  0x2c   :  { %6550 = shalt.err (!%p6547_p4)
}
  0x2d   :  { %s6551_s29 = scalar_lea.vmem %s28_s28, 8192  ;;  %p6556_p6 = scmp.lt.s32.totalorder %s28_s28, %s28_s28 }
  0x2e   :  { %p6552_p5 = scmp.ne.s32.totalorder %s28_s28, %s6551_s29  ;;  %p6557_p7 = scmp.lt.s32.totalorder %s6551_s29, %s6551_s29 }
  0x30   :  { %p6558_p8 = por %p6557_p7, %p6556_p6 }
  0x32   :  { %p6559_p9 = pnand %p6558_p8, %p6552_p5 }
  0x34   :  { %6562 = shalt.err (!%p6559_p9)
}
  0x35   :  { %33 = dma.hbm_to_vmem [thread:$0]  %s8545_s0, 8192, %s28_s28, [#allocation6], %s6710_s14, %s6710_s14, %s6711_s17  }
  0x36   :  { %s6712_s30 = smov [#allocation10]   ;;  %s6713_s12 = smov [#allocation13]  }
  0x37   :  { %s50_s11 = sshll.u32 %s6712_s30, 4  ;;  %s71_s13 = sshll.u32 %s6713_s12, 4  ;;  %s51_s11 = int_to_ptr.vmem [resolvable:$true] %s50_s11  ;;  %s72_s13 = int_to_ptr.vmem [resolvable:$true] %s71_s13 }
  0x38   :  { %s6563_s1 = scalar_lea.hbm %s8547_s2, 256 }
  0x39   :  { %p6564_p10 = scmp.ne.s32.totalorder %s8547_s2, %s6563_s1  ;;  %p6567_p11 = scmp.lt.u32.totalorder %s6563_s1, %s8547_s2 }
  0x3b   :  { %p6569_p12 = pnand %p6567_p11, %p6564_p10 }
  0x3d   :  { %6572 = shalt.err (!%p6569_p12)
}
  0x3e   :  { %s6573_s0 = scalar_lea.vmem %s51_s11, 256  ;;  %p6578_p0 = scmp.lt.s32.totalorder %s51_s11, %s51_s11 }
  0x3f   :  { %p6574_p13 = scmp.ne.s32.totalorder %s51_s11, %s6573_s0  ;;  %p6579_p1 = scmp.lt.s32.totalorder %s6573_s0, %s6573_s0 }
  0x41   :  { %p6580_p2 = por %p6579_p1, %p6578_p0 }
  0x43   :  { %p6581_p3 = pnand %p6580_p2, %p6574_p13 }
  0x45   :  { %6584 = shalt.err (!%p6581_p3)
}
  0x46   :  { %53 = dma.hbm_to_vmem [thread:$0]  %s8547_s2, 256, %s51_s11, [#allocation9]  }
  0x47   :  { %s6585_s23 = scalar_lea.hbm %s8549_s4, 8192 }
  0x48   :  { %p6586_p4 = scmp.ne.s32.totalorder %s8549_s4, %s6585_s23  ;;  %p6589_p5 = scmp.lt.u32.totalorder %s6585_s23, %s8549_s4 }
  0x4a   :  { %p6591_p6 = pnand %p6589_p5, %p6586_p4 }
  0x4c   :  { %6594 = shalt.err (!%p6591_p6)
}
  0x4d   :  { %s6595_s3 = scalar_lea.vmem %s72_s13, 8192  ;;  %p6600_p8 = scmp.lt.s32.totalorder %s72_s13, %s72_s13 }
  0x4e   :  { %p6596_p7 = scmp.ne.s32.totalorder %s72_s13, %s6595_s3  ;;  %p6601_p9 = scmp.lt.s32.totalorder %s6595_s3, %s6595_s3 }
  0x50   :  { %p6602_p10 = por %p6601_p9, %p6600_p8 }
  0x52   :  { %p6603_p11 = pnand %p6602_p10, %p6596_p7 }
  0x54   :  { %6606 = shalt.err (!%p6603_p11)
}
  0x55   :  { %s6714_s2 = smov 256   ;;  %s6715_s26 = smov 16  }
  0x56   :  { %77 = dma.hbm_to_vmem [thread:$0]  %s8549_s4, 8192, %s72_s13, [#allocation12], %s6714_s2, %s6714_s2, %s6715_s26  }
  0x57   :  { %s6716_s12 = smov [#allocation14]   ;;  %s6607_s18 = scalar_lea.hbm %s8551_s6, 16384 }
  0x58   :  { %s85_s15 = sshll.u32 %s6716_s12, 4  ;;  %p6608_p12 = scmp.ne.s32.totalorder %s8551_s6, %s6607_s18  ;;  %s86_s15 = int_to_ptr.vmem [resolvable:$true] %s85_s15 }
  0x59   :  { %p6611_p13 = scmp.lt.u32.totalorder %s6607_s18, %s8551_s6 }
  0x5b   :  { %p6613_p0 = pnand %p6611_p13, %p6608_p12 }
  0x5d   :  { %6616 = shalt.err (!%p6613_p0)
}
  0x5e   :  { %s6617_s28 = scalar_lea.vmem %s86_s15, 16384  ;;  %p6622_p2 = scmp.lt.s32.totalorder %s86_s15, %s86_s15 }
  0x5f   :  { %p6618_p1 = scmp.ne.s32.totalorder %s86_s15, %s6617_s28  ;;  %p6623_p3 = scmp.lt.s32.totalorder %s6617_s28, %s6617_s28 }
  0x61   :  { %p6624_p4 = por %p6623_p3, %p6622_p2 }
  0x63   :  { %p6625_p5 = pnand %p6624_p4, %p6618_p1 }
  0x65   :  { %6628 = shalt.err (!%p6625_p5)
}
  0x66   :  { %s6717_s4 = smov 512   ;;  %s6718_s13 = smov 32  }
  0x67   :  { %91 = dma.hbm_to_vmem [thread:$0]  %s8551_s6, 16384, %s86_s15, [#allocation15], %s6717_s4, %s6717_s4, %s6718_s13  }
  0x68   :  { %6695 = dma.done.wait [#allocation6], 8192  }
  0x69   :  { %6696 = vsyncadd [#allocation6], 4294959104 }
  0x6a   :  { %6697 = dma.done.wait [#allocation9], 512  }
  0x6b   :  { %6698 = vsyncadd [#allocation9], 4294966784 }
  0x6c   :  { %6699 = dma.done.wait [#allocation12], 40960  }
  0x6d   :  { %6700 = vsyncadd [#allocation12], 4294926336 }
  0x6e   :  { %6701 = dma.done.wait [#allocation15], 16384  }
  0x6f   :  { %6702 = vsyncadd [#allocation15], 4294950912  ;;  %v125_v0 = vld [vmem:[#allocation11 + $0x8] sm:$0xff]  ;;  %v127_v2 = vld [vmem:[#allocation11 + $0x18] sm:$0xff] }
  0x70   :  { %v133_v1 = vld [vmem:[#allocation11 + $0x48] sm:$0xff]  ;;  %v135_v4 = vld [vmem:[#allocation11 + $0x58] sm:$0xff]  ;;  %v124_v5 = vld [vmem:[#allocation11] sm:$0xff] }
  0x71   :  { %v6852_v3 = vpack.c.bf16 %v133_v1, %v125_v0  ;;  %v132_v6 = vld [vmem:[#allocation11 + $0x40] sm:$0xff]  ;;  %v6854_v7 = vpack.c.bf16 %v135_v4, %v127_v2  ;;  %v126_v9 = vld [vmem:[#allocation11 + $0x10] sm:$0xff]  ;;  %v141_v11 = vld [vmem:[#allocation11 + $0x88] sm:$0xff] }
  0x72   :  { %v6856_v8 = vpack.c.bf16 %v132_v6, %v124_v5  ;;  %v134_v10 = vld [vmem:[#allocation11 + $0x50] sm:$0xff]  ;;  %v149_v13 = vld [vmem:[#allocation11 + $0xc8] sm:$0xff]  ;;  %v143_v14 = vld [vmem:[#allocation11 + $0x98] sm:$0xff] }
  0x73   :  { %8834 = vst [vmem:[#allocation26_spill] sm:$0xff] %v6852_v3  ;;  %8835 = vst [vmem:[#allocation27_spill] sm:$0xff] %v6854_v7  ;;  %3955 = vmatprep.subr.bf16.mxu0 %v6852_v3  ;;  %v6859_v12 = vpack.c.bf16 %v134_v10, %v126_v9  ;;  %v151_v15 = vld [vmem:[#allocation11 + $0xd8] sm:$0xff]  ;;  %4019 = vmatprep.subr.bf16.mxu1 %v6854_v7  ;;  %v6863_v16 = vpack.c.bf16 %v149_v13, %v141_v11  ;;  %v140_v18 = vld [vmem:[#allocation11 + $0x80] sm:$0xff] }
  0x74   :  { %8836 = vst [vmem:[#allocation28_spill] sm:$0xff] %v6856_v8  ;;  %3957 = vmatpush1.bf16.msra.mxu0 %v6856_v8  ;;  %v6865_v17 = vpack.c.bf16 %v151_v15, %v143_v14  ;;  %v148_v19 = vld [vmem:[#allocation11 + $0xc0] sm:$0xff]  ;;  %v142_v20 = vld [vmem:[#allocation11 + $0x90] sm:$0xff]  ;;  %v157_v23 = vld [vmem:[#allocation11 + $0x108] sm:$0xff] }
  0x75   :  { %8837 = vst [vmem:[#allocation29_spill] sm:$0xff] %v6859_v12  ;;  %8838 = vst [vmem:[#allocation30_spill] sm:$0xff] %v6863_v16  ;;  %4021 = vmatpush1.bf16.msra.mxu1 %v6859_v12  ;;  %v6868_v21 = vpack.c.bf16 %v148_v19, %v140_v18  ;;  %v150_v22 = vld [vmem:[#allocation11 + $0xd0] sm:$0xff]  ;;  %v165_v24 = vld [vmem:[#allocation11 + $0x148] sm:$0xff]  ;;  %3959 = vmatprep.subr.bf16.mxu0 %v6863_v16 }
  0x76   :  { %8839 = vst [vmem:[#allocation31_spill] sm:$0xff] %v6865_v17  ;;  %4023 = vmatprep.subr.bf16.mxu1 %v6865_v17  ;;  %v6872_v25 = vpack.c.bf16 %v150_v22, %v142_v20  ;;  %v6874_v26 = vpack.c.bf16 %v165_v24, %v157_v23  ;;  %v159_v27 = vld [vmem:[#allocation11 + $0x118] sm:$0xff]  ;;  %v156_v29 = vld [vmem:[#allocation11 + $0x100] sm:$0xff]  ;;  %v158_v32 = vld [vmem:[#allocation11 + $0x110] sm:$0xff] }
  0x77   :  { %8840 = vst [vmem:[#allocation32_spill] sm:$0xff] %v6868_v21  ;;  %v167_v28 = vld [vmem:[#allocation11 + $0x158] sm:$0xff]  ;;  %v164_v31 = vld [vmem:[#allocation11 + $0x140] sm:$0xff]  ;;  %v166_v33 = vld [vmem:[#allocation11 + $0x150] sm:$0xff] }
  0x78   :  { %8841 = vst [vmem:[#allocation33_spill] sm:$0xff] %v6872_v25  ;;  %8842 = vst [vmem:[#allocation34_spill] sm:$0xff] %v6874_v26  ;;  %v6876_v30 = vpack.c.bf16 %v167_v28, %v159_v27  ;;  %3961 = vmatpush1.bf16.msra.mxu0 %v6868_v21  ;;  %v6879_v34 = vpack.c.bf16 %v164_v31, %v156_v29  ;;  %v173_v35 = vld [vmem:[#allocation11 + $0x188] sm:$0xff]  ;;  %v175_v37 = vld [vmem:[#allocation11 + $0x198] sm:$0xff]  ;;  %v6883_v38 = vpack.c.bf16 %v166_v33, %v158_v32 }
  0x79   :  { %v181_v36 = vld [vmem:[#allocation11 + $0x1c8] sm:$0xff]  ;;  %4025 = vmatpush1.bf16.msra.mxu1 %v6872_v25  ;;  %3963 = vmatprep.subr.bf16.mxu0 %v6874_v26  ;;  %v183_v40 = vld [vmem:[#allocation11 + $0x1d8] sm:$0xff]  ;;  %v172_v41 = vld [vmem:[#allocation11 + $0x180] sm:$0xff] }
  0x7a   :  { %8843 = vst [vmem:[#allocation35_spill] sm:$0xff] %v6876_v30  ;;  %8844 = vst [vmem:[#allocation36_spill] sm:$0xff] %v6879_v34  ;;  %v6885_v39 = vpack.c.bf16 %v181_v36, %v173_v35  ;;  %v180_v42 = vld [vmem:[#allocation11 + $0x1c0] sm:$0xff]  ;;  %4027 = vmatprep.subr.bf16.mxu1 %v6876_v30  ;;  %v6888_v43 = vpack.c.bf16 %v183_v40, %v175_v37  ;;  %v174_v44 = vld [vmem:[#allocation11 + $0x190] sm:$0xff] }
  0x7b   :  { %8845 = vst [vmem:[#allocation37_spill] sm:$0xff] %v6883_v38  ;;  %v182_v45 = vld [vmem:[#allocation11 + $0x1d0] sm:$0xff]  ;;  %v189_v46 = vld [vmem:[#allocation11 + $0x208] sm:$0xff]  ;;  %v191_v48 = vld [vmem:[#allocation11 + $0x218] sm:$0xff]  ;;  %v6891_v50 = vpack.c.bf16 %v180_v42, %v172_v41 }
  0x7c   :  { %8846 = vst [vmem:[#allocation38_spill] sm:$0xff] %v6885_v39  ;;  %8847 = vst [vmem:[#allocation39_spill] sm:$0xff] %v6888_v43  ;;  %v197_v47 = vld [vmem:[#allocation11 + $0x248] sm:$0xff]  ;;  %v199_v49 = vld [vmem:[#allocation11 + $0x258] sm:$0xff]  ;;  %3965 = vmatpush1.bf16.msra.mxu0 %v6879_v34  ;;  %v6895_v51 = vpack.c.bf16 %v182_v45, %v174_v44 }
  0x7d   :  { %8848 = vst [vmem:[#allocation40_spill] sm:$0xff] %v6891_v50  ;;  %4029 = vmatpush1.bf16.msra.mxu1 %v6883_v38  ;;  %3967 = vmatprep.subr.bf16.mxu0 %v6885_v39  ;;  %v6897_v52 = vpack.c.bf16 %v197_v47, %v189_v46  ;;  %v188_v53 = vld [vmem:[#allocation11 + $0x200] sm:$0xff]  ;;  %v190_v55 = vld [vmem:[#allocation11 + $0x210] sm:$0xff]  ;;  %v6900_v56 = vpack.c.bf16 %v199_v49, %v191_v48  ;;  %v205_v58 = vld [vmem:[#allocation11 + $0x288] sm:$0xff] }
  0x7e   :  { %8849 = vst [vmem:[#allocation41_spill] sm:$0xff] %v6895_v51  ;;  %v196_v54 = vld [vmem:[#allocation11 + $0x240] sm:$0xff]  ;;  %4031 = vmatprep.subr.bf16.mxu1 %v6888_v43  ;;  %v198_v57 = vld [vmem:[#allocation11 + $0x250] sm:$0xff]  ;;  %v213_v59 = vld [vmem:[#allocation11 + $0x2c8] sm:$0xff] }
  0x7f   :  { %8850 = vst [vmem:[#allocation42_spill] sm:$0xff] %v6897_v52  ;;  %8851 = vst [vmem:[#allocation43_spill] sm:$0xff] %v6900_v56  ;;  %v207_v60 = vld [vmem:[#allocation11 + $0x298] sm:$0xff]  ;;  %v6903_v62 = vpack.c.bf16 %v196_v54, %v188_v53  ;;  %v6907_v63 = vpack.c.bf16 %v198_v57, %v190_v55  ;;  %v6909_v0 = vpack.c.bf16 %v213_v59, %v205_v58  ;;  %v204_v1 = vld [vmem:[#allocation11 + $0x280] sm:$0xff] }
  0x80   :  { %v215_v61 = vld [vmem:[#allocation11 + $0x2d8] sm:$0xff]  ;;  %3969 = vmatpush1.bf16.msra.mxu0 %v6891_v50  ;;  %v212_v2 = vld [vmem:[#allocation11 + $0x2c0] sm:$0xff]  ;;  %v206_v4 = vld [vmem:[#allocation11 + $0x290] sm:$0xff] }
  0x81   :  { %8852 = vst [vmem:[#allocation44_spill] sm:$0xff] %v6903_v62  ;;  %4033 = vmatpush1.bf16.msra.mxu1 %v6895_v51  ;;  %3971 = vmatprep.subr.bf16.mxu0 %v6897_v52  ;;  %8853 = vst [vmem:[#allocation45_spill] sm:$0xff] %v6907_v63  ;;  %v6912_v5 = vpack.c.bf16 %v215_v61, %v207_v60  ;;  %v214_v6 = vld [vmem:[#allocation11 + $0x2d0] sm:$0xff]  ;;  %v221_v9 = vld [vmem:[#allocation11 + $0x308] sm:$0xff]  ;;  %v6915_v14 = vpack.c.bf16 %v212_v2, %v204_v1 }
  0x82   :  { %8854 = vst [vmem:[#allocation46_spill] sm:$0xff] %v6909_v0  ;;  %4035 = vmatprep.subr.bf16.mxu1 %v6900_v56  ;;  %v229_v10 = vld [vmem:[#allocation11 + $0x348] sm:$0xff]  ;;  %v223_v11 = vld [vmem:[#allocation11 + $0x318] sm:$0xff]  ;;  %v6919_v15 = vpack.c.bf16 %v214_v6, %v206_v4  ;;  %v220_v19 = vld [vmem:[#allocation11 + $0x300] sm:$0xff] }
  0x83   :  { %8855 = vst [vmem:[#allocation47_spill] sm:$0xff] %v6912_v5  ;;  %v231_v13 = vld [vmem:[#allocation11 + $0x358] sm:$0xff]  ;;  %8856 = vst [vmem:[#allocation48_spill] sm:$0xff] %v6915_v14  ;;  %v6921_v18 = vpack.c.bf16 %v229_v10, %v221_v9  ;;  %v228_v20 = vld [vmem:[#allocation11 + $0x340] sm:$0xff] }
  0x84   :  { %3973 = vmatpush1.bf16.msra.mxu0 %v6903_v62  ;;  %8857 = vst [vmem:[#allocation49_spill] sm:$0xff] %v6919_v15  ;;  %v222_v22 = vld [vmem:[#allocation11 + $0x310] sm:$0xff]  ;;  %v6924_v23 = vpack.c.bf16 %v231_v13, %v223_v11  ;;  %v237_v27 = vld [vmem:[#allocation11 + $0x388] sm:$0xff]  ;;  %v239_v29 = vld [vmem:[#allocation11 + $0x398] sm:$0xff]  ;;  %v6927_v32 = vpack.c.bf16 %v228_v20, %v220_v19 }
  0x85   :  { %4037 = vmatpush1.bf16.msra.mxu1 %v6907_v63  ;;  %3975 = vmatprep.subr.bf16.mxu0 %v6909_v0  ;;  %8858 = vst [vmem:[#allocation50_spill] sm:$0xff] %v6921_v18  ;;  %v230_v24 = vld [vmem:[#allocation11 + $0x350] sm:$0xff]  ;;  %v245_v28 = vld [vmem:[#allocation11 + $0x3c8] sm:$0xff]  ;;  %v247_v31 = vld [vmem:[#allocation11 + $0x3d8] sm:$0xff] }
  0x86   :  { %4039 = vmatprep.subr.bf16.mxu1 %v6912_v5  ;;  %8859 = vst [vmem:[#allocation51_spill] sm:$0xff] %v6924_v23  ;;  %8860 = vst [vmem:[#allocation52_spill] sm:$0xff] %v6927_v32  ;;  %v6931_v33 = vpack.c.bf16 %v230_v24, %v222_v22  ;;  %v6933_v35 = vpack.c.bf16 %v245_v28, %v237_v27  ;;  %v236_v36 = vld [vmem:[#allocation11 + $0x380] sm:$0xff]  ;;  %v238_v40 = vld [vmem:[#allocation11 + $0x390] sm:$0xff]  ;;  %v6936_v41 = vpack.c.bf16 %v247_v31, %v239_v29 }
  0x87   :  { %v244_v37 = vld [vmem:[#allocation11 + $0x3c0] sm:$0xff]  ;;  %v246_v42 = vld [vmem:[#allocation11 + $0x3d0] sm:$0xff]  ;;  %v253_v44 = vld [vmem:[#allocation11 + $0x408] sm:$0xff] }
  0x88   :  { %3977 = vmatpush1.bf16.msra.mxu0 %v6915_v14  ;;  %8861 = vst [vmem:[#allocation53_spill] sm:$0xff] %v6931_v33  ;;  %8862 = vst [vmem:[#allocation54_spill] sm:$0xff] %v6933_v35  ;;  %v261_v45 = vld [vmem:[#allocation11 + $0x448] sm:$0xff]  ;;  %v255_v46 = vld [vmem:[#allocation11 + $0x418] sm:$0xff]  ;;  %v6939_v48 = vpack.c.bf16 %v244_v37, %v236_v36  ;;  %v6943_v49 = vpack.c.bf16 %v246_v42, %v238_v40 }
  0x89   :  { %4041 = vmatpush1.bf16.msra.mxu1 %v6919_v15  ;;  %3979 = vmatprep.subr.bf16.mxu0 %v6921_v18  ;;  %8863 = vst [vmem:[#allocation55_spill] sm:$0xff] %v6936_v41  ;;  %v263_v47 = vld [vmem:[#allocation11 + $0x458] sm:$0xff]  ;;  %v6945_v53 = vpack.c.bf16 %v261_v45, %v253_v44  ;;  %v252_v54 = vld [vmem:[#allocation11 + $0x400] sm:$0xff]  ;;  %v254_v57 = vld [vmem:[#allocation11 + $0x410] sm:$0xff] }
  0x8a   :  { %4043 = vmatprep.subr.bf16.mxu1 %v6924_v23  ;;  %8864 = vst [vmem:[#allocation56_spill] sm:$0xff] %v6939_v48  ;;  %8865 = vst [vmem:[#allocation57_spill] sm:$0xff] %v6943_v49  ;;  %v260_v55 = vld [vmem:[#allocation11 + $0x440] sm:$0xff]  ;;  %v6948_v58 = vpack.c.bf16 %v263_v47, %v255_v46  ;;  %v262_v59 = vld [vmem:[#allocation11 + $0x450] sm:$0xff] }
  0x8b   :  { %8866 = vst [vmem:[#allocation58_spill] sm:$0xff] %v6945_v53  ;;  %v269_v60 = vld [vmem:[#allocation11 + $0x488] sm:$0xff]  ;;  %v271_v1 = vld [vmem:[#allocation11 + $0x498] sm:$0xff]  ;;  %v6951_v4 = vpack.c.bf16 %v260_v55, %v252_v54  ;;  %v6955_v6 = vpack.c.bf16 %v262_v59, %v254_v57  ;;  %v268_v10 = vld [vmem:[#allocation11 + $0x480] sm:$0xff] }
  0x8c   :  { %3981 = vmatpush1.bf16.msra.mxu0 %v6927_v32  ;;  %8867 = vst [vmem:[#allocation59_spill] sm:$0xff] %v6948_v58  ;;  %v277_v61 = vld [vmem:[#allocation11 + $0x4c8] sm:$0xff]  ;;  %v279_v2 = vld [vmem:[#allocation11 + $0x4d8] sm:$0xff]  ;;  %v276_v11 = vld [vmem:[#allocation11 + $0x4c0] sm:$0xff] }
  0x8d   :  { %4045 = vmatpush1.bf16.msra.mxu1 %v6931_v33  ;;  %3983 = vmatprep.subr.bf16.mxu0 %v6933_v35  ;;  %8868 = vst [vmem:[#allocation60_spill] sm:$0xff] %v6951_v4  ;;  %8869 = vst [vmem:[#allocation61_spill] sm:$0xff] %v6955_v6  ;;  %v6957_v9 = vpack.c.bf16 %v277_v61, %v269_v60  ;;  %v270_v13 = vld [vmem:[#allocation11 + $0x490] sm:$0xff]  ;;  %v6960_v19 = vpack.c.bf16 %v279_v2, %v271_v1  ;;  %v285_v22 = vld [vmem:[#allocation11 + $0x508] sm:$0xff] }
  0x8e   :  { %4047 = vmatprep.subr.bf16.mxu1 %v6936_v41  ;;  %v278_v20 = vld [vmem:[#allocation11 + $0x4d0] sm:$0xff]  ;;  %v293_v24 = vld [vmem:[#allocation11 + $0x548] sm:$0xff]  ;;  %v287_v27 = vld [vmem:[#allocation11 + $0x518] sm:$0xff]  ;;  %v6963_v29 = vpack.c.bf16 %v276_v11, %v268_v10 }
  0x8f   :  { %8870 = vst [vmem:[#allocation62_spill] sm:$0xff] %v6957_v9  ;;  %8871 = vst [vmem:[#allocation63_spill] sm:$0xff] %v6960_v19  ;;  %v295_v28 = vld [vmem:[#allocation11 + $0x558] sm:$0xff]  ;;  %v6967_v31 = vpack.c.bf16 %v278_v20, %v270_v13  ;;  %v6969_v36 = vpack.c.bf16 %v293_v24, %v285_v22  ;;  %v284_v37 = vld [vmem:[#allocation11 + $0x500] sm:$0xff] }
  0x90   :  { %3985 = vmatpush1.bf16.msra.mxu0 %v6939_v48  ;;  %8872 = vst [vmem:[#allocation64_spill] sm:$0xff] %v6963_v29  ;;  %v292_v40 = vld [vmem:[#allocation11 + $0x540] sm:$0xff]  ;;  %v286_v42 = vld [vmem:[#allocation11 + $0x510] sm:$0xff]  ;;  %v6972_v44 = vpack.c.bf16 %v295_v28, %v287_v27  ;;  %v301_v46 = vld [vmem:[#allocation11 + $0x588] sm:$0xff] }
  0x91   :  { %4049 = vmatpush1.bf16.msra.mxu1 %v6943_v49  ;;  %3987 = vmatprep.subr.bf16.mxu0 %v6945_v53  ;;  %8873 = vst [vmem:[#allocation65_spill] sm:$0xff] %v6967_v31  ;;  %8874 = vst [vmem:[#allocation66_spill] sm:$0xff] %v6969_v36  ;;  %v294_v45 = vld [vmem:[#allocation11 + $0x550] sm:$0xff]  ;;  %v309_v47 = vld [vmem:[#allocation11 + $0x5c8] sm:$0xff]  ;;  %v6975_v57 = vpack.c.bf16 %v292_v40, %v284_v37 }
  0x92   :  { %4051 = vmatprep.subr.bf16.mxu1 %v6948_v58  ;;  %8875 = vst [vmem:[#allocation67_spill] sm:$0xff] %v6972_v44  ;;  %v303_v54 = vld [vmem:[#allocation11 + $0x598] sm:$0xff]  ;;  %v300_v59 = vld [vmem:[#allocation11 + $0x580] sm:$0xff]  ;;  %v6979_v60 = vpack.c.bf16 %v294_v45, %v286_v42  ;;  %v6981_v61 = vpack.c.bf16 %v309_v47, %v301_v46  ;;  %v302_v2 = vld [vmem:[#allocation11 + $0x590] sm:$0xff] }
  0x93   :  { %v311_v55 = vld [vmem:[#allocation11 + $0x5d8] sm:$0xff]  ;;  %8876 = vst [vmem:[#allocation68_spill] sm:$0xff] %v6975_v57  ;;  %v308_v1 = vld [vmem:[#allocation11 + $0x5c0] sm:$0xff]  ;;  %v310_v10 = vld [vmem:[#allocation11 + $0x5d0] sm:$0xff] }
  0x94   :  { %3989 = vmatpush1.bf16.msra.mxu0 %v6951_v4  ;;  %8877 = vst [vmem:[#allocation69_spill] sm:$0xff] %v6979_v60  ;;  %8878 = vst [vmem:[#allocation70_spill] sm:$0xff] %v6981_v61  ;;  %v6984_v11 = vpack.c.bf16 %v311_v55, %v303_v54  ;;  %v317_v13 = vld [vmem:[#allocation11 + $0x608] sm:$0xff]  ;;  %v319_v24 = vld [vmem:[#allocation11 + $0x618] sm:$0xff]  ;;  %v6991_v28 = vpack.c.bf16 %v308_v1, %v300_v59  ;;  %v6995_v37 = vpack.c.bf16 %v310_v10, %v302_v2 }
  0x95   :  { %4053 = vmatpush1.bf16.msra.mxu1 %v6955_v6  ;;  %3991 = vmatprep.subr.bf16.mxu0 %v6957_v9  ;;  %v325_v20 = vld [vmem:[#allocation11 + $0x648] sm:$0xff]  ;;  %v327_v27 = vld [vmem:[#allocation11 + $0x658] sm:$0xff]  ;;  %v316_v42 = vld [vmem:[#allocation11 + $0x600] sm:$0xff] }
  0x96   :  { %4055 = vmatprep.subr.bf16.mxu1 %v6960_v19  ;;  %8879 = vst [vmem:[#allocation71_spill] sm:$0xff] %v6984_v11  ;;  %v6986_v22 = vld [vmem:[#allocation8 + $0x8] sm:$0xff]  ;;  %8880 = vst [vmem:[#allocation72_spill] sm:$0xff] %v6991_v28  ;;  %v6997_v40 = vpack.c.bf16 %v325_v20, %v317_v13  ;;  %v324_v45 = vld [vmem:[#allocation11 + $0x640] sm:$0xff]  ;;  %v7000_v47 = vpack.c.bf16 %v327_v27, %v319_v24 }
  0x97   :  { %456 = vmatprep.mubr.f32.mxu0 %v6986_v22  ;;  %527 = vmatprep.mubr.f32.mxu1 %v6986_v22  ;;  %8881 = vst [vmem:[#allocation73_spill] sm:$0xff] %v6995_v37  ;;  %v318_v46 = vld [vmem:[#allocation11 + $0x610] sm:$0xff]  ;;  %v333_v55 = vld [vmem:[#allocation11 + $0x688] sm:$0xff]  ;;  %v335_v59 = vld [vmem:[#allocation11 + $0x698] sm:$0xff] }
  0x98   :  { %3993 = vmatpush1.bf16.msra.mxu0 %v6963_v29  ;;  %8882 = vst [vmem:[#allocation74_spill] sm:$0xff] %v6997_v40  ;;  %8883 = vst [vmem:[#allocation75_spill] sm:$0xff] %v7000_v47  ;;  %v326_v54 = vld [vmem:[#allocation11 + $0x650] sm:$0xff]  ;;  %v343_v1 = vld [vmem:[#allocation11 + $0x6d8] sm:$0xff] }
  0x99   :  { %4057 = vmatpush1.bf16.msra.mxu1 %v6967_v31  ;;  %3995 = vmatprep.subr.bf16.mxu0 %v6969_v36  ;;  %v7007_v2 = vpack.c.bf16 %v326_v54, %v318_v46  ;;  %v332_v13 = vld [vmem:[#allocation11 + $0x680] sm:$0xff]  ;;  %v334_v24 = vld [vmem:[#allocation11 + $0x690] sm:$0xff]  ;;  %v7012_v27 = vpack.c.bf16 %v343_v1, %v335_v59 }
  0x9a   :  { %4059 = vmatprep.subr.bf16.mxu1 %v6972_v44  ;;  %v340_v20 = vld [vmem:[#allocation11 + $0x6c0] sm:$0xff]  ;;  %v350_v59 = vld [vmem:[#allocation11 + $0x710] sm:$0xff]  ;;  %v169_v44 = vld [vmem:[#allocation11 + $0x168] sm:$0xff] }
  0x9b   :  { %8885 = vst [vmem:[#allocation77_spill] sm:$0xff] %v7007_v2  ;;  %8887 = vst [vmem:[#allocation79_spill] sm:$0xff] %v7012_v27  ;;  %v348_v54 = vld [vmem:[#allocation11 + $0x700] sm:$0xff] }
  0x9c   :  { %3997 = vmatpush1.bf16.msra.mxu0 %v6975_v57  ;;  %v341_v57 = vld [vmem:[#allocation11 + $0x6c8] sm:$0xff] }
  0x9d   :  { %4061 = vmatpush1.bf16.msra.mxu1 %v6979_v60  ;;  %3999 = vmatprep.subr.bf16.mxu0 %v6981_v61  ;;  %v7003_v60 = vpack.c.bf16 %v324_v45, %v316_v42  ;;  %v7009_v10 = vpack.c.bf16 %v341_v57, %v333_v55  ;;  %v349_v61 = vld [vmem:[#allocation11 + $0x708] sm:$0xff]  ;;  %v351_v42 = vld [vmem:[#allocation11 + $0x718] sm:$0xff]  ;;  %v356_v55 = vld [vmem:[#allocation11 + $0x740] sm:$0xff] }
  0x9e   :  { %4063 = vmatprep.subr.bf16.mxu1 %v6984_v11  ;;  %v342_v11 = vld [vmem:[#allocation11 + $0x6d0] sm:$0xff]  ;;  %v359_v45 = vld [vmem:[#allocation11 + $0x758] sm:$0xff] }
  0x9f   :  { %8884 = vst [vmem:[#allocation76_spill] sm:$0xff] %v7003_v60  ;;  %8886 = vst [vmem:[#allocation78_spill] sm:$0xff] %v7009_v10  ;;  %v7019_v57 = vpack.c.bf16 %v342_v11, %v334_v24  ;;  %v7024_v1 = vpack.c.bf16 %v359_v45, %v351_v42  ;;  %v372_v24 = vld [vmem:[#allocation11 + $0x7c0] sm:$0xff]  ;;  %v366_v42 = vld [vmem:[#allocation11 + $0x790] sm:$0xff] }
  0xa0   :  { %4001 = vmatpush1.bf16.msra.mxu0 %v6991_v28  ;;  %v357_v28 = vld [vmem:[#allocation11 + $0x748] sm:$0xff] }
  0xa1   :  { %4065 = vmatpush1.bf16.msra.mxu1 %v6995_v37  ;;  %4003 = vmatprep.subr.bf16.mxu0 %v6997_v40  ;;  %v7015_v37 = vpack.c.bf16 %v340_v20, %v332_v13  ;;  %8889 = vst [vmem:[#allocation81_spill] sm:$0xff] %v7019_v57  ;;  %v7021_v46 = vpack.c.bf16 %v357_v28, %v349_v61  ;;  %8891 = vst [vmem:[#allocation83_spill] sm:$0xff] %v7024_v1  ;;  %v365_v40 = vld [vmem:[#allocation11 + $0x788] sm:$0xff]  ;;  %v367_v13 = vld [vmem:[#allocation11 + $0x798] sm:$0xff] }
  0xa2   :  { %4067 = vmatprep.subr.bf16.mxu1 %v7000_v47  ;;  %v358_v47 = vld [vmem:[#allocation11 + $0x750] sm:$0xff]  ;;  %v375_v20 = vld [vmem:[#allocation11 + $0x7d8] sm:$0xff]  ;;  %v364_v28 = vld [vmem:[#allocation11 + $0x780] sm:$0xff] }
  0xa3   :  { %8888 = vst [vmem:[#allocation80_spill] sm:$0xff] %v7015_v37  ;;  %8890 = vst [vmem:[#allocation82_spill] sm:$0xff] %v7021_v46  ;;  %v7031_v61 = vpack.c.bf16 %v358_v47, %v350_v59  ;;  %v7036_v45 = vpack.c.bf16 %v375_v20, %v367_v13  ;;  %v128_v47 = vld [vmem:[#allocation11 + $0x20] sm:$0xff]  ;;  %v130_v13 = vld [vmem:[#allocation11 + $0x30] sm:$0xff] }
  0xa4   :  { %4005 = vmatpush1.bf16.msra.mxu0 %v7003_v60  ;;  %v373_v60 = vld [vmem:[#allocation11 + $0x7c8] sm:$0xff]  ;;  %v136_v59 = vld [vmem:[#allocation11 + $0x60] sm:$0xff] }
  0xa5   :  { %4069 = vmatpush1.bf16.msra.mxu1 %v7007_v2  ;;  %4007 = vmatprep.subr.bf16.mxu0 %v7009_v10  ;;  %v7027_v2 = vpack.c.bf16 %v356_v55, %v348_v54  ;;  %8893 = vst [vmem:[#allocation85_spill] sm:$0xff] %v7031_v61  ;;  %v7033_v11 = vpack.c.bf16 %v373_v60, %v365_v40  ;;  %8895 = vst [vmem:[#allocation87_spill] sm:$0xff] %v7036_v45  ;;  %v129_v10 = vld [vmem:[#allocation11 + $0x28] sm:$0xff]  ;;  %v131_v54 = vld [vmem:[#allocation11 + $0x38] sm:$0xff] }
  0xa6   :  { %4071 = vmatprep.subr.bf16.mxu1 %v7012_v27  ;;  %v374_v27 = vld [vmem:[#allocation11 + $0x7d0] sm:$0xff]  ;;  %v139_v55 = vld [vmem:[#allocation11 + $0x78] sm:$0xff] }
  0xa7   :  { %8892 = vst [vmem:[#allocation84_spill] sm:$0xff] %v7027_v2  ;;  %8894 = vst [vmem:[#allocation86_spill] sm:$0xff] %v7033_v11  ;;  %v7043_v60 = vpack.c.bf16 %v374_v27, %v366_v42  ;;  %v7048_v20 = vpack.c.bf16 %v139_v55, %v131_v54  ;;  %v7053_v27 = vpack.c.bf16 %v136_v59, %v128_v47  ;;  %v144_v42 = vld [vmem:[#allocation11 + $0xa0] sm:$0xff]  ;;  %v146_v55 = vld [vmem:[#allocation11 + $0xb0] sm:$0xff] }
  0xa8   :  { %4009 = vmatpush1.bf16.msra.mxu0 %v7015_v37  ;;  %v137_v37 = vld [vmem:[#allocation11 + $0x68] sm:$0xff]  ;;  %v152_v54 = vld [vmem:[#allocation11 + $0xe0] sm:$0xff]  ;;  %v163_v47 = vld [vmem:[#allocation11 + $0x138] sm:$0xff] }
  0xa9   :  { %4073 = vmatpush1.bf16.msra.mxu1 %v7019_v57  ;;  %4011 = vmatprep.subr.bf16.mxu0 %v7021_v46  ;;  %v7039_v57 = vpack.c.bf16 %v372_v24, %v364_v28  ;;  %8897 = vst [vmem:[#allocation89_spill] sm:$0xff] %v7043_v60  ;;  %v7045_v40 = vpack.c.bf16 %v137_v37, %v129_v10  ;;  %8899 = vst [vmem:[#allocation91_spill] sm:$0xff] %v7048_v20  ;;  %v145_v46 = vld [vmem:[#allocation11 + $0xa8] sm:$0xff]  ;;  %v147_v28 = vld [vmem:[#allocation11 + $0xb8] sm:$0xff] }
  0xaa   :  { %4075 = vmatprep.subr.bf16.mxu1 %v7024_v1  ;;  %v138_v1 = vld [vmem:[#allocation11 + $0x70] sm:$0xff]  ;;  %v155_v24 = vld [vmem:[#allocation11 + $0xf8] sm:$0xff]  ;;  %8900 = vst [vmem:[#allocation92_spill] sm:$0xff] %v7053_v27 }
  0xab   :  { %8896 = vst [vmem:[#allocation88_spill] sm:$0xff] %v7039_v57  ;;  %8898 = vst [vmem:[#allocation90_spill] sm:$0xff] %v7045_v40  ;;  %v7057_v37 = vpack.c.bf16 %v138_v1, %v130_v13  ;;  %v171_v59 = vld [vmem:[#allocation11 + $0x178] sm:$0xff]  ;;  %v160_v13 = vld [vmem:[#allocation11 + $0x120] sm:$0xff] }
  0xac   :  { %4013 = vmatpush1.bf16.msra.mxu0 %v7027_v2  ;;  %v153_v2 = vld [vmem:[#allocation11 + $0xe8] sm:$0xff] }
  0xad   :  { %4077 = vmatpush1.bf16.msra.mxu1 %v7031_v61  ;;  %4015 = vmatprep.subr.bf16.mxu0 %v7033_v11  ;;  %v7051_v61 = vld [vmem:[#allocation8] sm:$0xff]  ;;  %v7059_v10 = vpack.c.bf16 %v153_v2, %v145_v46  ;;  %v161_v11 = vld [vmem:[#allocation11 + $0x128] sm:$0xff]  ;;  %v7067_v2 = vpack.c.bf16 %v152_v54, %v144_v42  ;;  %v179_v42 = vld [vmem:[#allocation11 + $0x1b8] sm:$0xff] }
  0xae   :  { %4079 = vmatprep.subr.bf16.mxu1 %v7036_v45  ;;  %v7062_v45 = vpack.c.bf16 %v155_v24, %v147_v28  ;;  %v7073_v1 = vpack.c.bf16 %v169_v44, %v161_v11  ;;  %v168_v28 = vld [vmem:[#allocation11 + $0x160] sm:$0xff]  ;;  %v162_v24 = vld [vmem:[#allocation11 + $0x130] sm:$0xff]  ;;  %v187_v54 = vld [vmem:[#allocation11 + $0x1f8] sm:$0xff] }
  0xaf   :  { %8901 = vst [vmem:[#allocation93_spill] sm:$0xff] %v7059_v10  ;;  %8903 = vst [vmem:[#allocation95_spill] sm:$0xff] %v7067_v2  ;;  %v7081_v44 = vpack.c.bf16 %v168_v28, %v160_v13  ;;  %v195_v13 = vld [vmem:[#allocation11 + $0x238] sm:$0xff] }
  0xb0   :  { %4017 = vmatpush1.bf16.msra.mxu0 %v7039_v57  ;;  %8902 = vst [vmem:[#allocation94_spill] sm:$0xff] %v7062_v45  ;;  %v154_v57 = vld [vmem:[#allocation11 + $0xf0] sm:$0xff]  ;;  %8905 = vst [vmem:[#allocation97_spill] sm:$0xff] %v7073_v1  ;;  %v203_v28 = vld [vmem:[#allocation11 + $0x278] sm:$0xff] }
  0xb1   :  { %4081 = vmatpush1.bf16.msra.mxu1 %v7043_v60  ;;  %4083 = vmatprep.subr.bf16.mxu0 %v7045_v40  ;;  %v7071_v46 = vpack.c.bf16 %v154_v57, %v146_v55  ;;  %v170_v40 = vld [vmem:[#allocation11 + $0x170] sm:$0xff]  ;;  %v177_v60 = vld [vmem:[#allocation11 + $0x1a8] sm:$0xff]  ;;  %8907 = vst [vmem:[#allocation99_spill] sm:$0xff] %v7081_v44  ;;  %v176_v55 = vld [vmem:[#allocation11 + $0x1a0] sm:$0xff] }
  0xb2   :  { %4147 = vmatprep.subr.bf16.mxu1 %v7048_v20  ;;  %v7076_v20 = vpack.c.bf16 %v171_v59, %v163_v47  ;;  %v7085_v57 = vpack.c.bf16 %v170_v40, %v162_v24  ;;  %v184_v47 = vld [vmem:[#allocation11 + $0x1e0] sm:$0xff]  ;;  %v178_v59 = vld [vmem:[#allocation11 + $0x1b0] sm:$0xff] }
  0xb3   :  { %457 = vmatmul.mubr.f32.vlgmr.msra.gmra.mrb[0].mxu0 %v7051_v61  ;;  %8904 = vst [vmem:[#allocation96_spill] sm:$0xff] %v7071_v46  ;;  %v200_v24 = vld [vmem:[#allocation11 + $0x260] sm:$0xff] }
  0xb4   :  { %528 = vmatmul.mubr.f32.vlgmr.msra.gmra.mrb[0].mxu1 %v7051_v61  ;;  %4085 = vmatpush1.bf16.msra.mxu0 %v7053_v27  ;;  %8906 = vst [vmem:[#allocation98_spill] sm:$0xff] %v7076_v20  ;;  %v185_v27 = vld [vmem:[#allocation11 + $0x1e8] sm:$0xff]  ;;  %8908 = vst [vmem:[#allocation100_spill] sm:$0xff] %v7085_v57 }
  0xb5   :  { %4149 = vmatpush1.bf16.msra.mxu1 %v7057_v37  ;;  %4087 = vmatprep.subr.bf16.mxu0 %v7059_v10  ;;  %v7087_v11 = vpack.c.bf16 %v185_v27, %v177_v60  ;;  %v193_v10 = vld [vmem:[#allocation11 + $0x228] sm:$0xff]  ;;  %v192_v27 = vld [vmem:[#allocation11 + $0x220] sm:$0xff] }
  0xb6   :  { %4151 = vmatprep.subr.bf16.mxu1 %v7062_v45  ;;  %598 = vmatprep.mubr.f32.mxu0 %v6986_v22  ;;  %v7090_v45 = vpack.c.bf16 %v187_v54, %v179_v42  ;;  %v194_v42 = vld [vmem:[#allocation11 + $0x230] sm:$0xff]  ;;  %v7102_v54 = vpack.c.bf16 %v203_v28, %v195_v13 }
  0xb7   :  { %669 = vmatprep.mubr.f32.mxu1 %v6986_v22  ;;  %8909 = vst [vmem:[#allocation101_spill] sm:$0xff] %v7087_v11  ;;  %v186_v22 = vld [vmem:[#allocation11 + $0x1f0] sm:$0xff] }
  0xb8   :  { %4089 = vmatpush1.bf16.msra.mxu0 %v7067_v2  ;;  %8910 = vst [vmem:[#allocation102_spill] sm:$0xff] %v7090_v45  ;;  %v201_v2 = vld [vmem:[#allocation11 + $0x268] sm:$0xff]  ;;  %v7097_v60 = vpack.c.bf16 %v186_v22, %v178_v59  ;;  %8914 = vst [vmem:[#allocation106_spill] sm:$0xff] %v7102_v54  ;;  %v208_v59 = vld [vmem:[#allocation11 + $0x2a0] sm:$0xff] }
  0xb9   :  { %4153 = vmatpush1.bf16.msra.mxu1 %v7071_v46  ;;  %4091 = vmatprep.subr.bf16.mxu0 %v7073_v1  ;;  %v7093_v46 = vpack.c.bf16 %v184_v47, %v176_v55  ;;  %v7099_v40 = vpack.c.bf16 %v201_v2, %v193_v10  ;;  %v209_v1 = vld [vmem:[#allocation11 + $0x2a8] sm:$0xff]  ;;  %v211_v55 = vld [vmem:[#allocation11 + $0x2b8] sm:$0xff]  ;;  %v216_v22 = vld [vmem:[#allocation11 + $0x2e0] sm:$0xff] }
  0xba   :  { %4155 = vmatprep.subr.bf16.mxu1 %v7076_v20  ;;  %8912 = vst [vmem:[#allocation104_spill] sm:$0xff] %v7097_v60  ;;  %v202_v20 = vld [vmem:[#allocation11 + $0x270] sm:$0xff]  ;;  %v219_v47 = vld [vmem:[#allocation11 + $0x2f8] sm:$0xff] }
  0xbb   :  { %8911 = vst [vmem:[#allocation103_spill] sm:$0xff] %v7093_v46  ;;  %8913 = vst [vmem:[#allocation105_spill] sm:$0xff] %v7099_v40  ;;  %v7109_v10 = vpack.c.bf16 %v202_v20, %v194_v42  ;;  %v210_v13 = vld [vmem:[#allocation11 + $0x2b0] sm:$0xff]  ;;  %v7114_v28 = vpack.c.bf16 %v219_v47, %v211_v55  ;;  %v232_v42 = vld [vmem:[#allocation11 + $0x360] sm:$0xff] }
  0xbc   :  { %4093 = vmatpush1.bf16.msra.mxu0 %v7081_v44  ;;  %v217_v44 = vld [vmem:[#allocation11 + $0x2e8] sm:$0xff]  ;;  %v226_v55 = vld [vmem:[#allocation11 + $0x330] sm:$0xff] }
  0xbd   :  { %4157 = vmatpush1.bf16.msra.mxu1 %v7085_v57  ;;  %4095 = vmatprep.subr.bf16.mxu0 %v7087_v11  ;;  %v7105_v57 = vpack.c.bf16 %v200_v24, %v192_v27  ;;  %8916 = vst [vmem:[#allocation108_spill] sm:$0xff] %v7109_v10  ;;  %v7111_v2 = vpack.c.bf16 %v217_v44, %v209_v1  ;;  %8918 = vst [vmem:[#allocation110_spill] sm:$0xff] %v7114_v28  ;;  %v225_v11 = vld [vmem:[#allocation11 + $0x328] sm:$0xff]  ;;  %v227_v27 = vld [vmem:[#allocation11 + $0x338] sm:$0xff] }
  0xbe   :  { %4159 = vmatprep.subr.bf16.mxu1 %v7090_v45  ;;  %v218_v45 = vld [vmem:[#allocation11 + $0x2f0] sm:$0xff]  ;;  %v235_v24 = vld [vmem:[#allocation11 + $0x378] sm:$0xff]  ;;  %v224_v44 = vld [vmem:[#allocation11 + $0x320] sm:$0xff] }
  0xbf   :  { %8915 = vst [vmem:[#allocation107_spill] sm:$0xff] %v7105_v57  ;;  %8917 = vst [vmem:[#allocation109_spill] sm:$0xff] %v7111_v2  ;;  %v7121_v20 = vpack.c.bf16 %v218_v45, %v210_v13  ;;  %v7126_v47 = vpack.c.bf16 %v235_v24, %v227_v27  ;;  %v248_v13 = vld [vmem:[#allocation11 + $0x3e0] sm:$0xff]  ;;  %v242_v27 = vld [vmem:[#allocation11 + $0x3b0] sm:$0xff] }
  0xc0   :  { %4097 = vmatpush1.bf16.msra.mxu0 %v7093_v46  ;;  %v233_v46 = vld [vmem:[#allocation11 + $0x368] sm:$0xff] }
  0xc1   :  { %4161 = vmatpush1.bf16.msra.mxu1 %v7097_v60  ;;  %4099 = vmatprep.subr.bf16.mxu0 %v7099_v40  ;;  %v7117_v60 = vpack.c.bf16 %v216_v22, %v208_v59  ;;  %8920 = vst [vmem:[#allocation112_spill] sm:$0xff] %v7121_v20  ;;  %v7123_v1 = vpack.c.bf16 %v233_v46, %v225_v11  ;;  %8922 = vst [vmem:[#allocation114_spill] sm:$0xff] %v7126_v47  ;;  %v241_v40 = vld [vmem:[#allocation11 + $0x3a8] sm:$0xff]  ;;  %v243_v59 = vld [vmem:[#allocation11 + $0x3b8] sm:$0xff] }
  0xc2   :  { %4163 = vmatprep.subr.bf16.mxu1 %v7102_v54  ;;  %v234_v54 = vld [vmem:[#allocation11 + $0x370] sm:$0xff]  ;;  %v251_v22 = vld [vmem:[#allocation11 + $0x3f8] sm:$0xff]  ;;  %v240_v11 = vld [vmem:[#allocation11 + $0x3a0] sm:$0xff] }
  0xc3   :  { %8919 = vst [vmem:[#allocation111_spill] sm:$0xff] %v7117_v60  ;;  %8921 = vst [vmem:[#allocation113_spill] sm:$0xff] %v7123_v1  ;;  %v7133_v45 = vpack.c.bf16 %v234_v54, %v226_v55  ;;  %v7138_v24 = vpack.c.bf16 %v251_v22, %v243_v59  ;;  %v256_v54 = vld [vmem:[#allocation11 + $0x420] sm:$0xff]  ;;  %v258_v59 = vld [vmem:[#allocation11 + $0x430] sm:$0xff] }
  0xc4   :  { %4101 = vmatpush1.bf16.msra.mxu0 %v7105_v57  ;;  %v249_v57 = vld [vmem:[#allocation11 + $0x3e8] sm:$0xff]  ;;  %v264_v55 = vld [vmem:[#allocation11 + $0x460] sm:$0xff] }
  0xc5   :  { %4165 = vmatpush1.bf16.msra.mxu1 %v7109_v10  ;;  %4103 = vmatprep.subr.bf16.mxu0 %v7111_v2  ;;  %v7129_v10 = vpack.c.bf16 %v232_v42, %v224_v44  ;;  %8924 = vst [vmem:[#allocation116_spill] sm:$0xff] %v7133_v45  ;;  %v7135_v46 = vpack.c.bf16 %v249_v57, %v241_v40  ;;  %8926 = vst [vmem:[#allocation118_spill] sm:$0xff] %v7138_v24  ;;  %v257_v2 = vld [vmem:[#allocation11 + $0x428] sm:$0xff]  ;;  %v259_v44 = vld [vmem:[#allocation11 + $0x438] sm:$0xff] }
  0xc6   :  { %4167 = vmatprep.subr.bf16.mxu1 %v7114_v28  ;;  %v250_v28 = vld [vmem:[#allocation11 + $0x3f0] sm:$0xff]  ;;  %v267_v42 = vld [vmem:[#allocation11 + $0x478] sm:$0xff] }
  0xc7   :  { %8923 = vst [vmem:[#allocation115_spill] sm:$0xff] %v7129_v10  ;;  %8925 = vst [vmem:[#allocation117_spill] sm:$0xff] %v7135_v46  ;;  %v7145_v57 = vpack.c.bf16 %v250_v28, %v242_v27  ;;  %v7150_v22 = vpack.c.bf16 %v267_v42, %v259_v44  ;;  %v272_v28 = vld [vmem:[#allocation11 + $0x4a0] sm:$0xff]  ;;  %v274_v44 = vld [vmem:[#allocation11 + $0x4b0] sm:$0xff] }
  0xc8   :  { %4105 = vmatpush1.bf16.msra.mxu0 %v7117_v60  ;;  %v265_v60 = vld [vmem:[#allocation11 + $0x468] sm:$0xff]  ;;  %v280_v27 = vld [vmem:[#allocation11 + $0x4e0] sm:$0xff] }
  0xc9   :  { %4169 = vmatpush1.bf16.msra.mxu1 %v7121_v20  ;;  %4107 = vmatprep.subr.bf16.mxu0 %v7123_v1  ;;  %v7141_v20 = vpack.c.bf16 %v248_v13, %v240_v11  ;;  %8928 = vst [vmem:[#allocation120_spill] sm:$0xff] %v7145_v57  ;;  %v7147_v40 = vpack.c.bf16 %v265_v60, %v257_v2  ;;  %8930 = vst [vmem:[#allocation122_spill] sm:$0xff] %v7150_v22  ;;  %v273_v1 = vld [vmem:[#allocation11 + $0x4a8] sm:$0xff]  ;;  %v275_v11 = vld [vmem:[#allocation11 + $0x4b8] sm:$0xff] }
  0xca   :  { %4171 = vmatprep.subr.bf16.mxu1 %v7126_v47  ;;  %v266_v47 = vld [vmem:[#allocation11 + $0x470] sm:$0xff]  ;;  %v283_v13 = vld [vmem:[#allocation11 + $0x4f8] sm:$0xff] }
  0xcb   :  { %8927 = vst [vmem:[#allocation119_spill] sm:$0xff] %v7141_v20  ;;  %8929 = vst [vmem:[#allocation121_spill] sm:$0xff] %v7147_v40  ;;  %v7157_v60 = vpack.c.bf16 %v266_v47, %v258_v59  ;;  %v7162_v42 = vpack.c.bf16 %v283_v13, %v275_v11  ;;  %v288_v47 = vld [vmem:[#allocation11 + $0x520] sm:$0xff]  ;;  %v290_v11 = vld [vmem:[#allocation11 + $0x530] sm:$0xff] }
  0xcc   :  { %4109 = vmatpush1.bf16.msra.mxu0 %v7129_v10  ;;  %v281_v10 = vld [vmem:[#allocation11 + $0x4e8] sm:$0xff]  ;;  %v296_v59 = vld [vmem:[#allocation11 + $0x560] sm:$0xff] }
  0xcd   :  { %4173 = vmatpush1.bf16.msra.mxu1 %v7133_v45  ;;  %4111 = vmatprep.subr.bf16.mxu0 %v7135_v46  ;;  %v7153_v45 = vpack.c.bf16 %v264_v55, %v256_v54  ;;  %8932 = vst [vmem:[#allocation124_spill] sm:$0xff] %v7157_v60  ;;  %v7159_v2 = vpack.c.bf16 %v281_v10, %v273_v1  ;;  %8934 = vst [vmem:[#allocation126_spill] sm:$0xff] %v7162_v42  ;;  %v289_v46 = vld [vmem:[#allocation11 + $0x528] sm:$0xff]  ;;  %v291_v54 = vld [vmem:[#allocation11 + $0x538] sm:$0xff] }
  0xce   :  { %4175 = vmatprep.subr.bf16.mxu1 %v7138_v24  ;;  %v282_v24 = vld [vmem:[#allocation11 + $0x4f0] sm:$0xff]  ;;  %v299_v55 = vld [vmem:[#allocation11 + $0x578] sm:$0xff] }
  0xcf   :  { %8931 = vst [vmem:[#allocation123_spill] sm:$0xff] %v7153_v45  ;;  %8933 = vst [vmem:[#allocation125_spill] sm:$0xff] %v7159_v2  ;;  %v7169_v10 = vpack.c.bf16 %v282_v24, %v274_v44  ;;  %v7174_v13 = vpack.c.bf16 %v299_v55, %v291_v54  ;;  %v304_v24 = vld [vmem:[#allocation11 + $0x5a0] sm:$0xff]  ;;  %v306_v54 = vld [vmem:[#allocation11 + $0x5b0] sm:$0xff] }
  0xd0   :  { %4113 = vmatpush1.bf16.msra.mxu0 %v7141_v20  ;;  %v297_v20 = vld [vmem:[#allocation11 + $0x568] sm:$0xff]  ;;  %v312_v44 = vld [vmem:[#allocation11 + $0x5e0] sm:$0xff] }
  0xd1   :  { %4177 = vmatpush1.bf16.msra.mxu1 %v7145_v57  ;;  %4115 = vmatprep.subr.bf16.mxu0 %v7147_v40  ;;  %v7165_v57 = vpack.c.bf16 %v280_v27, %v272_v28  ;;  %8936 = vst [vmem:[#allocation128_spill] sm:$0xff] %v7169_v10  ;;  %v7171_v1 = vpack.c.bf16 %v297_v20, %v289_v46  ;;  %8938 = vst [vmem:[#allocation130_spill] sm:$0xff] %v7174_v13  ;;  %v305_v40 = vld [vmem:[#allocation11 + $0x5a8] sm:$0xff]  ;;  %v307_v28 = vld [vmem:[#allocation11 + $0x5b8] sm:$0xff] }
  0xd2   :  { %4179 = vmatprep.subr.bf16.mxu1 %v7150_v22  ;;  %v298_v22 = vld [vmem:[#allocation11 + $0x570] sm:$0xff]  ;;  %v315_v27 = vld [vmem:[#allocation11 + $0x5f8] sm:$0xff] }
  0xd3   :  { %8935 = vst [vmem:[#allocation127_spill] sm:$0xff] %v7165_v57  ;;  %8937 = vst [vmem:[#allocation129_spill] sm:$0xff] %v7171_v1  ;;  %v7181_v20 = vpack.c.bf16 %v298_v22, %v290_v11  ;;  %v7186_v55 = vpack.c.bf16 %v315_v27, %v307_v28  ;;  %v320_v22 = vld [vmem:[#allocation11 + $0x620] sm:$0xff]  ;;  %v322_v28 = vld [vmem:[#allocation11 + $0x630] sm:$0xff] }
  0xd4   :  { %4117 = vmatpush1.bf16.msra.mxu0 %v7153_v45  ;;  %v313_v45 = vld [vmem:[#allocation11 + $0x5e8] sm:$0xff]  ;;  %v328_v11 = vld [vmem:[#allocation11 + $0x660] sm:$0xff] }
  0xd5   :  { %4181 = vmatpush1.bf16.msra.mxu1 %v7157_v60  ;;  %4119 = vmatprep.subr.bf16.mxu0 %v7159_v2  ;;  %v7177_v60 = vpack.c.bf16 %v296_v59, %v288_v47  ;;  %8940 = vst [vmem:[#allocation132_spill] sm:$0xff] %v7181_v20  ;;  %v7183_v46 = vpack.c.bf16 %v313_v45, %v305_v40  ;;  %8942 = vst [vmem:[#allocation134_spill] sm:$0xff] %v7186_v55  ;;  %v321_v2 = vld [vmem:[#allocation11 + $0x628] sm:$0xff]  ;;  %v323_v47 = vld [vmem:[#allocation11 + $0x638] sm:$0xff] }
  0xd6   :  { %4183 = vmatprep.subr.bf16.mxu1 %v7162_v42  ;;  %v314_v42 = vld [vmem:[#allocation11 + $0x5f0] sm:$0xff]  ;;  %v331_v59 = vld [vmem:[#allocation11 + $0x678] sm:$0xff] }
  0xd7   :  { %8939 = vst [vmem:[#allocation131_spill] sm:$0xff] %v7177_v60  ;;  %8941 = vst [vmem:[#allocation133_spill] sm:$0xff] %v7183_v46  ;;  %v7193_v45 = vpack.c.bf16 %v314_v42, %v306_v54  ;;  %v7198_v27 = vpack.c.bf16 %v331_v59, %v323_v47  ;;  %v336_v42 = vld [vmem:[#allocation11 + $0x6a0] sm:$0xff]  ;;  %v338_v47 = vld [vmem:[#allocation11 + $0x6b0] sm:$0xff] }
  0xd8   :  { %4121 = vmatpush1.bf16.msra.mxu0 %v7165_v57  ;;  %v329_v57 = vld [vmem:[#allocation11 + $0x668] sm:$0xff]  ;;  %v344_v54 = vld [vmem:[#allocation11 + $0x6e0] sm:$0xff] }
  0xd9   :  { %4185 = vmatpush1.bf16.msra.mxu1 %v7169_v10  ;;  %4123 = vmatprep.subr.bf16.mxu0 %v7171_v1  ;;  %v7189_v10 = vpack.c.bf16 %v312_v44, %v304_v24  ;;  %8944 = vst [vmem:[#allocation136_spill] sm:$0xff] %v7193_v45  ;;  %v7195_v40 = vpack.c.bf16 %v329_v57, %v321_v2  ;;  %8946 = vst [vmem:[#allocation138_spill] sm:$0xff] %v7198_v27  ;;  %v337_v1 = vld [vmem:[#allocation11 + $0x6a8] sm:$0xff]  ;;  %v339_v24 = vld [vmem:[#allocation11 + $0x6b8] sm:$0xff] }
  0xda   :  { %4187 = vmatprep.subr.bf16.mxu1 %v7174_v13  ;;  %v330_v13 = vld [vmem:[#allocation11 + $0x670] sm:$0xff]  ;;  %v347_v44 = vld [vmem:[#allocation11 + $0x6f8] sm:$0xff] }
  0xdb   :  { %8943 = vst [vmem:[#allocation135_spill] sm:$0xff] %v7189_v10  ;;  %8945 = vst [vmem:[#allocation137_spill] sm:$0xff] %v7195_v40  ;;  %v7205_v57 = vpack.c.bf16 %v330_v13, %v322_v28  ;;  %v7210_v59 = vpack.c.bf16 %v347_v44, %v339_v24  ;;  %v352_v13 = vld [vmem:[#allocation11 + $0x720] sm:$0xff]  ;;  %v354_v24 = vld [vmem:[#allocation11 + $0x730] sm:$0xff] }
  0xdc   :  { %4125 = vmatpush1.bf16.msra.mxu0 %v7177_v60  ;;  %v345_v60 = vld [vmem:[#allocation11 + $0x6e8] sm:$0xff]  ;;  %v360_v28 = vld [vmem:[#allocation11 + $0x760] sm:$0xff] }
  0xdd   :  { %4189 = vmatpush1.bf16.msra.mxu1 %v7181_v20  ;;  %4127 = vmatprep.subr.bf16.mxu0 %v7183_v46  ;;  %v7201_v20 = vpack.c.bf16 %v328_v11, %v320_v22  ;;  %8948 = vst [vmem:[#allocation140_spill] sm:$0xff] %v7205_v57  ;;  %v7207_v2 = vpack.c.bf16 %v345_v60, %v337_v1  ;;  %8950 = vst [vmem:[#allocation142_spill] sm:$0xff] %v7210_v59  ;;  %v353_v46 = vld [vmem:[#allocation11 + $0x728] sm:$0xff]  ;;  %v355_v22 = vld [vmem:[#allocation11 + $0x738] sm:$0xff] }
  0xde   :  { %4191 = vmatprep.subr.bf16.mxu1 %v7186_v55  ;;  %v346_v55 = vld [vmem:[#allocation11 + $0x6f0] sm:$0xff]  ;;  %v363_v11 = vld [vmem:[#allocation11 + $0x778] sm:$0xff] }
  0xdf   :  { %8947 = vst [vmem:[#allocation139_spill] sm:$0xff] %v7201_v20  ;;  %8949 = vst [vmem:[#allocation141_spill] sm:$0xff] %v7207_v2  ;;  %v7217_v60 = vpack.c.bf16 %v346_v55, %v338_v47  ;;  %v7222_v44 = vpack.c.bf16 %v363_v11, %v355_v22  ;;  %v368_v55 = vld [vmem:[#allocation11 + $0x7a0] sm:$0xff]  ;;  %v370_v11 = vld [vmem:[#allocation11 + $0x7b0] sm:$0xff] }
  0xe0   :  { %4129 = vmatpush1.bf16.msra.mxu0 %v7189_v10  ;;  %v361_v10 = vld [vmem:[#allocation11 + $0x768] sm:$0xff]  ;;  %v376_v47 = vld [vmem:[#allocation11 + $0x7e0] sm:$0xff] }
  0xe1   :  { %4193 = vmatpush1.bf16.msra.mxu1 %v7193_v45  ;;  %4131 = vmatprep.subr.bf16.mxu0 %v7195_v40  ;;  %v7213_v45 = vpack.c.bf16 %v344_v54, %v336_v42  ;;  %8952 = vst [vmem:[#allocation144_spill] sm:$0xff] %v7217_v60  ;;  %v7219_v1 = vpack.c.bf16 %v361_v10, %v353_v46  ;;  %8954 = vst [vmem:[#allocation146_spill] sm:$0xff] %v7222_v44  ;;  %v369_v40 = vld [vmem:[#allocation11 + $0x7a8] sm:$0xff]  ;;  %v371_v42 = vld [vmem:[#allocation11 + $0x7b8] sm:$0xff] }
  0xe2   :  { %4195 = vmatprep.subr.bf16.mxu1 %v7198_v27  ;;  %v362_v27 = vld [vmem:[#allocation11 + $0x770] sm:$0xff]  ;;  %v379_v54 = vld [vmem:[#allocation11 + $0x7f8] sm:$0xff] }
  0xe3   :  { %8951 = vst [vmem:[#allocation143_spill] sm:$0xff] %v7213_v45  ;;  %8953 = vst [vmem:[#allocation145_spill] sm:$0xff] %v7219_v1  ;;  %v7229_v10 = vpack.c.bf16 %v362_v27, %v354_v24  ;;  %v7234_v22 = vpack.c.bf16 %v379_v54, %v371_v42  ;;  %v8966_v24 = vld [vmem:[#allocation72_spill] sm:$0xff]  ;;  %v8967_v42 = vld [vmem:[#allocation73_spill] sm:$0xff] }
  0xe4   :  { %4133 = vmatpush1.bf16.msra.mxu0 %v7201_v20  ;;  %v377_v20 = vld [vmem:[#allocation11 + $0x7e8] sm:$0xff]  ;;  %v8968_v54 = vld [vmem:[#allocation74_spill] sm:$0xff] }
  0xe5   :  { %4197 = vmatpush1.bf16.msra.mxu1 %v7205_v57  ;;  %4135 = vmatprep.subr.bf16.mxu0 %v7207_v2  ;;  %v7225_v57 = vpack.c.bf16 %v360_v28, %v352_v13  ;;  %8956 = vst [vmem:[#allocation148_spill] sm:$0xff] %v7229_v10  ;;  %v7231_v46 = vpack.c.bf16 %v377_v20, %v369_v40  ;;  %8958 = vst [vmem:[#allocation150_spill] sm:$0xff] %v7234_v22  ;;  %v8962_v20 = vld [vmem:[#allocation68_spill] sm:$0xff]  ;;  %v8963_v40 = vld [vmem:[#allocation69_spill] sm:$0xff] }
  0xe6   :  { %4199 = vmatprep.subr.bf16.mxu1 %v7210_v59  ;;  %v378_v59 = vld [vmem:[#allocation11 + $0x7f0] sm:$0xff]  ;;  %v7237_v13 = vpack.c.bf16 %v376_v47, %v368_v55  ;;  %v8965_v28 = vld [vmem:[#allocation71_spill] sm:$0xff] }
  0xe7   :  { %8955 = vst [vmem:[#allocation147_spill] sm:$0xff] %v7225_v57  ;;  %8957 = vst [vmem:[#allocation149_spill] sm:$0xff] %v7231_v46  ;;  %v7241_v27 = vpack.c.bf16 %v378_v59, %v370_v11  ;;  %v8964_v59 = vld [vmem:[#allocation70_spill] sm:$0xff]  ;;  %v8969_v55 = vld [vmem:[#allocation75_spill] sm:$0xff] }
  0xe8   :  { %4137 = vmatpush1.bf16.msra.mxu0 %v7213_v45  ;;  %8959 = vst [vmem:[#allocation151_spill] sm:$0xff] %v7237_v13  ;;  %v8970_v47 = vld [vmem:[#allocation76_spill] sm:$0xff]  ;;  %v8971_v11 = vld [vmem:[#allocation77_spill] sm:$0xff] }
  0xe9   :  { %4201 = vmatpush1.bf16.msra.mxu1 %v7217_v60  ;;  %4139 = vmatprep.subr.bf16.mxu0 %v7219_v1  ;;  %8960 = vst [vmem:[#allocation152_spill] sm:$0xff] %v7241_v27 }
  0xea   :  { %4203 = vmatprep.subr.bf16.mxu1 %v7222_v44 }
  0xec   :  { %4141 = vmatpush1.bf16.msra.mxu0 %v7225_v57 }
  0xed   :  { %4205 = vmatpush1.bf16.msra.mxu1 %v7229_v10  ;;  %4143 = vmatprep.subr.bf16.mxu0 %v7231_v46 }
  0xee   :  { %4207 = vmatprep.subr.bf16.mxu1 %v7234_v22 }
  0xf0   :  { %4145 = vmatpush1.bf16.msra.mxu0 %v7237_v13 }
  0xf1   :  { %4209 = vmatpush1.bf16.msra.mxu1 %v7241_v27  ;;  %4211 = vmatprep.subr.bf16.mxu0 %v6852_v3 }
  0xf2   :  { %4275 = vmatprep.subr.bf16.mxu1 %v6854_v7 }
  0xf3   :  { %599 = vmatmul.mubr.f32.vlgmr.msra.gmra.mrb[2].mxu0 %v7051_v61 }
  0xf4   :  { %670 = vmatmul.mubr.f32.vlgmr.msra.gmra.mrb[2].mxu1 %v7051_v61  ;;  %4213 = vmatpush1.bf16.msra.mxu0 %v6856_v8  ;;  %v8961_v61 = vld [vmem:[#allocation67_spill] sm:$0xff] }
  0xf5   :  { %4277 = vmatpush1.bf16.msra.mxu1 %v6859_v12  ;;  %4215 = vmatprep.subr.bf16.mxu0 %v6863_v16 }
  0xf6   :  { %4279 = vmatprep.subr.bf16.mxu1 %v6865_v17 }
  0xf8   :  { %4217 = vmatpush1.bf16.msra.mxu0 %v6868_v21 }
  0xf9   :  { %4281 = vmatpush1.bf16.msra.mxu1 %v6872_v25  ;;  %4219 = vmatprep.subr.bf16.mxu0 %v6874_v26 }
  0xfa   :  { %4283 = vmatprep.subr.bf16.mxu1 %v6876_v30 }
  0xfc   :  { %4221 = vmatpush1.bf16.msra.mxu0 %v6879_v34 }
  0xfd   :  { %4285 = vmatpush1.bf16.msra.mxu1 %v6883_v38  ;;  %4223 = vmatprep.subr.bf16.mxu0 %v6885_v39 }
  0xfe   :  { %4287 = vmatprep.subr.bf16.mxu1 %v6888_v43 }
 0x100   :  { %4225 = vmatpush1.bf16.msra.mxu0 %v6891_v50 }
 0x101   :  { %4289 = vmatpush1.bf16.msra.mxu1 %v6895_v51  ;;  %4227 = vmatprep.subr.bf16.mxu0 %v6897_v52 }
 0x102   :  { %4291 = vmatprep.subr.bf16.mxu1 %v6900_v56 }
 0x104   :  { %4229 = vmatpush1.bf16.msra.mxu0 %v6903_v62 }
 0x105   :  { %4293 = vmatpush1.bf16.msra.mxu1 %v6907_v63  ;;  %4231 = vmatprep.subr.bf16.mxu0 %v6909_v0 }
 0x106   :  { %4295 = vmatprep.subr.bf16.mxu1 %v6912_v5 }
 0x108   :  { %4233 = vmatpush1.bf16.msra.mxu0 %v6915_v14 }
 0x109   :  { %4297 = vmatpush1.bf16.msra.mxu1 %v6919_v15  ;;  %4235 = vmatprep.subr.bf16.mxu0 %v6921_v18 }
 0x10a   :  { %4299 = vmatprep.subr.bf16.mxu1 %v6924_v23 }
 0x10c   :  { %4237 = vmatpush1.bf16.msra.mxu0 %v6927_v32 }
 0x10d   :  { %4301 = vmatpush1.bf16.msra.mxu1 %v6931_v33  ;;  %4239 = vmatprep.subr.bf16.mxu0 %v6933_v35 }
 0x10e   :  { %4303 = vmatprep.subr.bf16.mxu1 %v6936_v41 }
 0x110   :  { %4241 = vmatpush1.bf16.msra.mxu0 %v6939_v48 }
 0x111   :  { %4305 = vmatpush1.bf16.msra.mxu1 %v6943_v49  ;;  %4243 = vmatprep.subr.bf16.mxu0 %v6945_v53 }
 0x112   :  { %4307 = vmatprep.subr.bf16.mxu1 %v6948_v58 }
 0x114   :  { %4245 = vmatpush1.bf16.msra.mxu0 %v6951_v4 }
 0x115   :  { %4309 = vmatpush1.bf16.msra.mxu1 %v6955_v6  ;;  %4247 = vmatprep.subr.bf16.mxu0 %v6957_v9 }
 0x116   :  { %4311 = vmatprep.subr.bf16.mxu1 %v6960_v19  ;;  %v387_v19 = vld [vmem:[#allocation5 + $0x18] sm:$0xff] }
 0x118   :  { %4249 = vmatpush1.bf16.msra.mxu0 %v6963_v29  ;;  %v385_v29 = vld [vmem:[#allocation5 + $0x8] sm:$0xff] }
 0x119   :  { %4313 = vmatpush1.bf16.msra.mxu1 %v6967_v31  ;;  %4251 = vmatprep.subr.bf16.mxu0 %v6969_v36  ;;  %v384_v31 = vld [vmem:[#allocation5] sm:$0xff] }
 0x11a   :  { %4315 = vmatprep.subr.bf16.mxu1 %v8961_v61  ;;  %v8972_v61 = vld [vmem:[#allocation78_spill] sm:$0xff] }
 0x11c   :  { %4253 = vmatpush1.bf16.msra.mxu0 %v8962_v20  ;;  %v8973_v20 = vld [vmem:[#allocation79_spill] sm:$0xff] }
 0x11d   :  { %4317 = vmatpush1.bf16.msra.mxu1 %v8963_v40  ;;  %4255 = vmatprep.subr.bf16.mxu0 %v8964_v59  ;;  %v8974_v40 = vld [vmem:[#allocation80_spill] sm:$0xff]  ;;  %v8975_v59 = vld [vmem:[#allocation81_spill] sm:$0xff] }
 0x11e   :  { %4319 = vmatprep.subr.bf16.mxu1 %v8965_v28  ;;  %v8976_v28 = vld [vmem:[#allocation82_spill] sm:$0xff] }
 0x120   :  { %4257 = vmatpush1.bf16.msra.mxu0 %v8966_v24  ;;  %v8977_v24 = vld [vmem:[#allocation83_spill] sm:$0xff] }
 0x121   :  { %4321 = vmatpush1.bf16.msra.mxu1 %v8967_v42  ;;  %4259 = vmatprep.subr.bf16.mxu0 %v8968_v54  ;;  %v8978_v42 = vld [vmem:[#allocation84_spill] sm:$0xff]  ;;  %v8979_v54 = vld [vmem:[#allocation85_spill] sm:$0xff] }
 0x122   :  { %4323 = vmatprep.subr.bf16.mxu1 %v8969_v55  ;;  %v8980_v55 = vld [vmem:[#allocation86_spill] sm:$0xff] }
 0x124   :  { %4261 = vmatpush1.bf16.msra.mxu0 %v8970_v47  ;;  %v8981_v47 = vld [vmem:[#allocation87_spill] sm:$0xff] }
 0x125   :  { %4325 = vmatpush1.bf16.msra.mxu1 %v8971_v11  ;;  %4263 = vmatprep.subr.bf16.mxu0 %v8972_v61  ;;  %v8982_v11 = vld [vmem:[#allocation88_spill] sm:$0xff]  ;;  %v8983_v61 = vld [vmem:[#allocation89_spill] sm:$0xff] }
 0x126   :  { %4327 = vmatprep.subr.bf16.mxu1 %v8973_v20  ;;  %v8984_v20 = vld [vmem:[#allocation90_spill] sm:$0xff] }
 0x128   :  { %4265 = vmatpush1.bf16.msra.mxu0 %v8974_v40  ;;  %v8985_v40 = vld [vmem:[#allocation91_spill] sm:$0xff] }
 0x129   :  { %4329 = vmatpush1.bf16.msra.mxu1 %v8975_v59  ;;  %4267 = vmatprep.subr.bf16.mxu0 %v8976_v28 }
 0x12a   :  { %4331 = vmatprep.subr.bf16.mxu1 %v8977_v24 }
 0x12c   :  { %4269 = vmatpush1.bf16.msra.mxu0 %v8978_v42  ;;  %v386_v42 = vld [vmem:[#allocation5 + $0x10] sm:$0xff] }
 0x12d   :  { %4333 = vmatpush1.bf16.msra.mxu1 %v8979_v54  ;;  %4271 = vmatprep.subr.bf16.mxu0 %v8980_v55 }
 0x12e   :  { %4335 = vmatprep.subr.bf16.mxu1 %v8981_v47 }
 0x130   :  { %4273 = vmatpush1.bf16.msra.mxu0 %v8982_v11 }
 0x131   :  { %4337 = vmatpush1.bf16.msra.mxu1 %v8983_v61  ;;  %4339 = vmatprep.subr.bf16.mxu0 %v8984_v20 }
 0x132   :  { %4403 = vmatprep.subr.bf16.mxu1 %v8985_v40 }
 0x186   :  { %v458_v59 = vpop.f32.mrb[0].mxu0 }
 0x187   :  { %v529_v28 = vpop.f32.mrb[0].mxu1  ;;  %v460_v36 = vpop.f32.mrb[1].mxu0  ;;  %v676_v54 = vadd.f32 %v458_v59, %v384_v31  ;;  %v388_v31 = vld [vmem:[#allocation5 + $0x20] sm:$0xff] }
 0x188   :  { %v531_v24 = vpop.f32.mrb[1].mxu1  ;;  %v678_v55 = vadd.f32 %v529_v28, %v386_v42  ;;  %v677_v9 = vadd.f32 %v460_v36, %v385_v29  ;;  %v390_v28 = vld [vmem:[#allocation5 + $0x30] sm:$0xff]  ;;  %v389_v29 = vld [vmem:[#allocation5 + $0x28] sm:$0xff]  ;;  %v391_v36 = vld [vmem:[#allocation5 + $0x38] sm:$0xff] }
 0x189   :  { %v679_v47 = vadd.f32 %v531_v24, %v387_v19  ;;  %v3906_v6 = vmul.f32 -1.442695, %v676_v54 }
 0x18a   :  { %v3908_v11 = vmul.f32 -1.442695, %v678_v55  ;;  %v3907_v4 = vmul.f32 -1.442695, %v677_v9  ;;  %v120_v55 = vld [vmem:[#allocation10] sm:$0xff] }
 0x18b   :  { %v3909_v61 = vmul.f32 -1.442695, %v679_v47  ;;  %6241 = vpow2.f32 %v3906_v6 }
 0x18c   :  { %6243 = vpow2.f32 %v3908_v11 }
 0x18d   :  { %6245 = vpow2.f32 %v3907_v4 }
 0x18e   :  { %6247 = vpow2.f32 %v3909_v61 }
 0x195   :  { %v6242_v40 = vpop.eup %6241 }
 0x196   :  { %v6244_v20 = vpop.eup %6243  ;;  %v702_v49 = vadd.f32 1.0, %v6242_v40 }
 0x197   :  { %v6246_v58 = vpop.eup %6245  ;;  %v704_v48 = vadd.f32 1.0, %v6244_v20 }
 0x198   :  { %v6248_v53 = vpop.eup %6247  ;;  %v703_v41 = vadd.f32 1.0, %v6246_v58  ;;  %6249 = vrcp.f32 %v702_v49 }
 0x199   :  { %v705_v59 = vadd.f32 1.0, %v6248_v53  ;;  %6251 = vrcp.f32 %v704_v48 }
 0x19a   :  { %6253 = vrcp.f32 %v703_v41  ;;  %v121_v41 = vld [vmem:[#allocation10 + $0x8] sm:$0xff] }
 0x19b   :  { %6255 = vrcp.f32 %v705_v59 }
 0x1a2   :  { %v6250_v53 = vpop.eup %6249 }
 0x1a3   :  { %v6252_v49 = vpop.eup %6251 }
 0x1a4   :  { %v6254_v20 = vpop.eup %6253 }
 0x1a5   :  { %v6256_v48 = vpop.eup %6255 }
 0x1c6   :  { %v600_v19 = vpop.f32.mrb[2].mxu0 }
 0x1c7   :  { %v680_v9 = vadd.f32 %v600_v19, %v388_v31  ;;  %v671_v6 = vpop.f32.mrb[2].mxu1  ;;  %v602_v24 = vpop.f32.mrb[3].mxu0  ;;  %v722_v31 = vmul.f32 %v6252_v49, %v120_v55  ;;  %v8988_v49 = vld [vmem:[#allocation92_spill] sm:$0xff]  ;;  %v8990_v55 = vld [vmem:[#allocation94_spill] sm:$0xff] }
 0x1c8   :  { %v682_v4 = vadd.f32 %v671_v6, %v390_v28  ;;  %v681_v61 = vadd.f32 %v602_v24, %v389_v29  ;;  %v673_v42 = vpop.f32.mrb[3].mxu1  ;;  %v723_v6 = vmul.f32 %v6256_v48, %v121_v41  ;;  %v8991_v48 = vld [vmem:[#allocation95_spill] sm:$0xff] }
 0x1c9   :  { %v3910_v54 = vmul.f32 -1.442695, %v680_v9  ;;  %v683_v40 = vadd.f32 %v673_v42, %v391_v36  ;;  %v8995_v41 = vld [vmem:[#allocation99_spill] sm:$0xff] }
 0x1ca   :  { %6257 = vtanh.f32 %v682_v4  ;;  %v3911_v58 = vmul.f32 -1.442695, %v681_v61 }
 0x1cb   :  { %6259 = vpow2.f32 %v3910_v54 }
 0x1cc   :  { %6261 = vpow2.f32 %v3911_v58 }
 0x1cd   :  { %6263 = vtanh.f32 %v683_v40 }
 0x1d4   :  { %v6258_v47 = vpop.eup %6257 }
 0x1d5   :  { %v6260_v11 = vpop.eup %6259  ;;  %v724_v28 = vmul.f32 %v6258_v47, %v6250_v53  ;;  %v8992_v47 = vld [vmem:[#allocation96_spill] sm:$0xff] }
 0x1d6   :  { %v6262_v29 = vpop.eup %6261  ;;  %v706_v19 = vadd.f32 1.0, %v6260_v11  ;;  %v8993_v11 = vld [vmem:[#allocation97_spill] sm:$0xff] }
 0x1d7   :  { %v6264_v59 = vpop.eup %6263  ;;  %v7314_v9 = vadd.f32 %v724_v28, %v722_v31  ;;  %v707_v36 = vadd.f32 1.0, %v6262_v29  ;;  %v8994_v31 = vld [vmem:[#allocation98_spill] sm:$0xff]  ;;  %v8996_v28 = vld [vmem:[#allocation100_spill] sm:$0xff]  ;;  %v8997_v29 = vld [vmem:[#allocation101_spill] sm:$0xff] }
 0x1d8   :  { %v725_v24 = vmul.f32 %v6264_v59, %v6254_v20  ;;  %6265 = vrcp.f32 %v706_v19  ;;  %v8989_v20 = vld [vmem:[#allocation93_spill] sm:$0xff]  ;;  %v8998_v19 = vld [vmem:[#allocation102_spill] sm:$0xff]  ;;  %v8999_v59 = vld [vmem:[#allocation103_spill] sm:$0xff] }
 0x1d9   :  { %6267 = vrcp.f32 %v707_v36  ;;  %v9000_v36 = vld [vmem:[#allocation104_spill] sm:$0xff] }
 0x1da   :  { %v7316_v4 = vadd.f32 %v725_v24, %v723_v6  ;;  %6269 = vtanh.f32 %v7314_v9  ;;  %v9001_v6 = vld [vmem:[#allocation105_spill] sm:$0xff]  ;;  %v9002_v24 = vld [vmem:[#allocation106_spill] sm:$0xff] }
 0x1dc   :  { %6271 = vtanh.f32 %v7316_v4 }
 0x1e2   :  { %v6266_v61 = vpop.eup %6265 }
 0x1e3   :  { %v6268_v42 = vpop.eup %6267 }
 0x1e4   :  { %v6270_v54 = vpop.eup %6269 }
 0x1e5   :  { %v7322_v53 = vmul.f32 %v6270_v54, %v6266_v61  ;;  %v9003_v61 = vld [vmem:[#allocation107_spill] sm:$0xff]  ;;  %v9005_v54 = vld [vmem:[#allocation109_spill] sm:$0xff] }
 0x1e6   :  { %v6272_v40 = vpop.eup %6271 }
 0x1e7   :  { %v7320_v58 = vmul.f32 %v6272_v40, %v6268_v42  ;;  %8987 = vst [vmem:[#allocation154_spill] sm:$0xff] %v7322_v53  ;;  %v9004_v42 = vld [vmem:[#allocation108_spill] sm:$0xff]  ;;  %v9006_v40 = vld [vmem:[#allocation110_spill] sm:$0xff] }
 0x1e9   :  { %8986 = vst [vmem:[#allocation153_spill] sm:$0xff] %v7320_v58  ;;  %810 = vmatprep.mubr.f32.mxu0 %v7320_v58  ;;  %881 = vmatprep.mubr.f32.mxu1 %v7320_v58 }
 0x1ea   :  { %811 = vmatmul.mubr.f32.vlgmr.msra.gmra.mrb[4].mxu0 %v7322_v53  ;;  %882 = vmatmul.mubr.f32.vlgmr.msra.gmra.mrb[4].mxu1 %v7322_v53 }
 0x1eb   :  { %4341 = vmatpush1.bf16.msra.mxu0 %v8988_v49  ;;  %4405 = vmatpush1.bf16.msra.mxu1 %v7057_v37 }
 0x1ec   :  { %952 = vmatprep.mubr.f32.mxu0 %v7320_v58  ;;  %1023 = vmatprep.mubr.f32.mxu1 %v7320_v58  ;;  %v9007_v58 = vld [vmem:[#allocation111_spill] sm:$0xff] }
 0x1ed   :  { %4343 = vmatprep.subr.bf16.mxu0 %v8989_v20  ;;  %4407 = vmatprep.subr.bf16.mxu1 %v8990_v55 }
 0x1ef   :  { %4345 = vmatpush1.bf16.msra.mxu0 %v8991_v48  ;;  %4409 = vmatpush1.bf16.msra.mxu1 %v8992_v47 }
 0x1f0   :  { %4347 = vmatprep.subr.bf16.mxu0 %v8993_v11  ;;  %4411 = vmatprep.subr.bf16.mxu1 %v8994_v31 }
 0x1f3   :  { %4349 = vmatpush1.bf16.msra.mxu0 %v8995_v41  ;;  %4413 = vmatpush1.bf16.msra.mxu1 %v8996_v28 }
 0x1f4   :  { %4351 = vmatprep.subr.bf16.mxu0 %v8997_v29  ;;  %4415 = vmatprep.subr.bf16.mxu1 %v8998_v19  ;;  %v9008_v29 = vld [vmem:[#allocation112_spill] sm:$0xff]  ;;  %v9009_v19 = vld [vmem:[#allocation113_spill] sm:$0xff] }
 0x1f7   :  { %4353 = vmatpush1.bf16.msra.mxu0 %v8999_v59  ;;  %4417 = vmatpush1.bf16.msra.mxu1 %v9000_v36  ;;  %v9010_v59 = vld [vmem:[#allocation114_spill] sm:$0xff]  ;;  %v9011_v36 = vld [vmem:[#allocation115_spill] sm:$0xff] }
 0x1f8   :  { %4355 = vmatprep.subr.bf16.mxu0 %v9001_v6  ;;  %4419 = vmatprep.subr.bf16.mxu1 %v9002_v24  ;;  %v9012_v6 = vld [vmem:[#allocation116_spill] sm:$0xff]  ;;  %v9013_v24 = vld [vmem:[#allocation117_spill] sm:$0xff] }
 0x1fb   :  { %4357 = vmatpush1.bf16.msra.mxu0 %v9003_v61  ;;  %4421 = vmatpush1.bf16.msra.mxu1 %v9004_v42  ;;  %v9014_v61 = vld [vmem:[#allocation118_spill] sm:$0xff]  ;;  %v9015_v42 = vld [vmem:[#allocation119_spill] sm:$0xff] }
 0x1fc   :  { %4359 = vmatprep.subr.bf16.mxu0 %v9005_v54  ;;  %4423 = vmatprep.subr.bf16.mxu1 %v9006_v40  ;;  %v9016_v54 = vld [vmem:[#allocation120_spill] sm:$0xff]  ;;  %v9017_v40 = vld [vmem:[#allocation121_spill] sm:$0xff] }
 0x1ff   :  { %4361 = vmatpush1.bf16.msra.mxu0 %v9007_v58  ;;  %4425 = vmatpush1.bf16.msra.mxu1 %v9008_v29  ;;  %v9018_v58 = vld [vmem:[#allocation122_spill] sm:$0xff]  ;;  %v9019_v29 = vld [vmem:[#allocation123_spill] sm:$0xff] }
 0x200   :  { %4363 = vmatprep.subr.bf16.mxu0 %v9009_v19  ;;  %4427 = vmatprep.subr.bf16.mxu1 %v9010_v59  ;;  %v9020_v19 = vld [vmem:[#allocation124_spill] sm:$0xff]  ;;  %v9021_v59 = vld [vmem:[#allocation125_spill] sm:$0xff] }
 0x203   :  { %4365 = vmatpush1.bf16.msra.mxu0 %v9011_v36  ;;  %4429 = vmatpush1.bf16.msra.mxu1 %v9012_v6  ;;  %v9022_v36 = vld [vmem:[#allocation126_spill] sm:$0xff]  ;;  %v9023_v6 = vld [vmem:[#allocation127_spill] sm:$0xff] }
 0x204   :  { %4367 = vmatprep.subr.bf16.mxu0 %v9013_v24  ;;  %4431 = vmatprep.subr.bf16.mxu1 %v9014_v61  ;;  %v9024_v24 = vld [vmem:[#allocation128_spill] sm:$0xff]  ;;  %v9025_v61 = vld [vmem:[#allocation129_spill] sm:$0xff] }
 0x207   :  { %4369 = vmatpush1.bf16.msra.mxu0 %v9015_v42  ;;  %4433 = vmatpush1.bf16.msra.mxu1 %v9016_v54  ;;  %v9026_v42 = vld [vmem:[#allocation130_spill] sm:$0xff]  ;;  %v9027_v54 = vld [vmem:[#allocation131_spill] sm:$0xff] }
 0x208   :  { %4371 = vmatprep.subr.bf16.mxu0 %v9017_v40  ;;  %4435 = vmatprep.subr.bf16.mxu1 %v9018_v58  ;;  %v9028_v40 = vld [vmem:[#allocation132_spill] sm:$0xff]  ;;  %v9029_v58 = vld [vmem:[#allocation133_spill] sm:$0xff] }
 0x20b   :  { %4373 = vmatpush1.bf16.msra.mxu0 %v9019_v29  ;;  %4437 = vmatpush1.bf16.msra.mxu1 %v9020_v19  ;;  %v9030_v29 = vld [vmem:[#allocation134_spill] sm:$0xff]  ;;  %v9031_v19 = vld [vmem:[#allocation135_spill] sm:$0xff] }
 0x20c   :  { %4375 = vmatprep.subr.bf16.mxu0 %v9021_v59  ;;  %4439 = vmatprep.subr.bf16.mxu1 %v9022_v36  ;;  %v9032_v59 = vld [vmem:[#allocation136_spill] sm:$0xff]  ;;  %v9033_v36 = vld [vmem:[#allocation137_spill] sm:$0xff] }
 0x20f   :  { %4377 = vmatpush1.bf16.msra.mxu0 %v9023_v6  ;;  %4441 = vmatpush1.bf16.msra.mxu1 %v9024_v24  ;;  %v9034_v6 = vld [vmem:[#allocation138_spill] sm:$0xff]  ;;  %v9035_v24 = vld [vmem:[#allocation139_spill] sm:$0xff] }
 0x210   :  { %4379 = vmatprep.subr.bf16.mxu0 %v9025_v61  ;;  %4443 = vmatprep.subr.bf16.mxu1 %v9026_v42  ;;  %v9036_v61 = vld [vmem:[#allocation140_spill] sm:$0xff] }
 0x213   :  { %4381 = vmatpush1.bf16.msra.mxu0 %v9027_v54  ;;  %4445 = vmatpush1.bf16.msra.mxu1 %v9028_v40  ;;  %v9037_v54 = vld [vmem:[#allocation142_spill] sm:$0xff] }
 0x214   :  { %4383 = vmatprep.subr.bf16.mxu0 %v9029_v58  ;;  %4447 = vmatprep.subr.bf16.mxu1 %v9030_v29 }
 0x217   :  { %4385 = vmatpush1.bf16.msra.mxu0 %v9031_v19  ;;  %4449 = vmatpush1.bf16.msra.mxu1 %v9032_v59 }
 0x218   :  { %4387 = vmatprep.subr.bf16.mxu0 %v9033_v36  ;;  %4451 = vmatprep.subr.bf16.mxu1 %v9034_v6 }
 0x21b   :  { %4389 = vmatpush1.bf16.msra.mxu0 %v9035_v24  ;;  %4453 = vmatpush1.bf16.msra.mxu1 %v9036_v61 }
 0x21c   :  { %4391 = vmatprep.subr.bf16.mxu0 %v7207_v2  ;;  %4455 = vmatprep.subr.bf16.mxu1 %v9037_v54 }
 0x21f   :  { %4393 = vmatpush1.bf16.msra.mxu0 %v7213_v45  ;;  %4457 = vmatpush1.bf16.msra.mxu1 %v7217_v60 }
 0x220   :  { %4395 = vmatprep.subr.bf16.mxu0 %v7219_v1  ;;  %4459 = vmatprep.subr.bf16.mxu1 %v7222_v44 }
 0x223   :  { %4397 = vmatpush1.bf16.msra.mxu0 %v7225_v57  ;;  %4461 = vmatpush1.bf16.msra.mxu1 %v7229_v10 }
 0x224   :  { %4399 = vmatprep.subr.bf16.mxu0 %v7231_v46  ;;  %4463 = vmatprep.subr.bf16.mxu1 %v7234_v22 }
 0x227   :  { %4401 = vmatpush1.bf16.msra.mxu0 %v7237_v13  ;;  %4465 = vmatpush1.bf16.msra.mxu1 %v7241_v27 }
 0x228   :  { %4467 = vmatprep.subr.bf16.mxu0 %v6852_v3  ;;  %4531 = vmatprep.subr.bf16.mxu1 %v6854_v7 }
 0x22a   :  { %953 = vmatmul.mubr.f32.vlgmr.msra.gmra.mrb[6].mxu0 %v7322_v53  ;;  %1024 = vmatmul.mubr.f32.vlgmr.msra.gmra.mrb[6].mxu1 %v7322_v53  ;;  %v9038_v53 = vld [vmem:[#allocation55_spill] sm:$0xff] }
 0x22b   :  { %4469 = vmatpush1.bf16.msra.mxu0 %v6856_v8  ;;  %4533 = vmatpush1.bf16.msra.mxu1 %v6859_v12 }
 0x22c   :  { %4471 = vmatprep.subr.bf16.mxu0 %v6863_v16  ;;  %4535 = vmatprep.subr.bf16.mxu1 %v6865_v17 }
 0x22f   :  { %4473 = vmatpush1.bf16.msra.mxu0 %v6868_v21  ;;  %4537 = vmatpush1.bf16.msra.mxu1 %v6872_v25 }
 0x230   :  { %4475 = vmatprep.subr.bf16.mxu0 %v6874_v26  ;;  %4539 = vmatprep.subr.bf16.mxu1 %v6876_v30 }
 0x233   :  { %4477 = vmatpush1.bf16.msra.mxu0 %v6879_v34  ;;  %4541 = vmatpush1.bf16.msra.mxu1 %v6883_v38 }
 0x234   :  { %4479 = vmatprep.subr.bf16.mxu0 %v6885_v39  ;;  %4543 = vmatprep.subr.bf16.mxu1 %v6888_v43 }
 0x237   :  { %4481 = vmatpush1.bf16.msra.mxu0 %v6891_v50  ;;  %4545 = vmatpush1.bf16.msra.mxu1 %v6895_v51  ;;  %v741_v51 = vld [vmem:[#allocation5 + $0x58] sm:$0xff] }
 0x238   :  { %4483 = vmatprep.subr.bf16.mxu0 %v6897_v52  ;;  %4547 = vmatprep.subr.bf16.mxu1 %v6900_v56  ;;  %v738_v56 = vld [vmem:[#allocation5 + $0x40] sm:$0xff]  ;;  %v739_v52 = vld [vmem:[#allocation5 + $0x48] sm:$0xff] }
 0x23b   :  { %4485 = vmatpush1.bf16.msra.mxu0 %v6903_v62  ;;  %4549 = vmatpush1.bf16.msra.mxu1 %v6907_v63  ;;  %v9039_v63 = vld [vmem:[#allocation56_spill] sm:$0xff] }
 0x23c   :  { %4487 = vmatprep.subr.bf16.mxu0 %v6909_v0  ;;  %4551 = vmatprep.subr.bf16.mxu1 %v6912_v5  ;;  %v9040_v0 = vld [vmem:[#allocation57_spill] sm:$0xff]  ;;  %v9041_v5 = vld [vmem:[#allocation58_spill] sm:$0xff] }
 0x23f   :  { %4489 = vmatpush1.bf16.msra.mxu0 %v6915_v14  ;;  %4553 = vmatpush1.bf16.msra.mxu1 %v6919_v15  ;;  %v9042_v14 = vld [vmem:[#allocation59_spill] sm:$0xff]  ;;  %v9043_v15 = vld [vmem:[#allocation60_spill] sm:$0xff] }
 0x240   :  { %4491 = vmatprep.subr.bf16.mxu0 %v6921_v18  ;;  %4555 = vmatprep.subr.bf16.mxu1 %v6924_v23  ;;  %v9044_v18 = vld [vmem:[#allocation61_spill] sm:$0xff]  ;;  %v9045_v23 = vld [vmem:[#allocation62_spill] sm:$0xff] }
 0x243   :  { %4493 = vmatpush1.bf16.msra.mxu0 %v6927_v32  ;;  %4557 = vmatpush1.bf16.msra.mxu1 %v6931_v33  ;;  %v9046_v32 = vld [vmem:[#allocation63_spill] sm:$0xff]  ;;  %v9047_v33 = vld [vmem:[#allocation64_spill] sm:$0xff] }
 0x244   :  { %4495 = vmatprep.subr.bf16.mxu0 %v6933_v35  ;;  %4559 = vmatprep.subr.bf16.mxu1 %v9038_v53  ;;  %v9048_v35 = vld [vmem:[#allocation65_spill] sm:$0xff]  ;;  %v9049_v53 = vld [vmem:[#allocation66_spill] sm:$0xff] }
 0x247   :  { %4497 = vmatpush1.bf16.msra.mxu0 %v9039_v63  ;;  %4561 = vmatpush1.bf16.msra.mxu1 %v9040_v0  ;;  %v9050_v63 = vld [vmem:[#allocation67_spill] sm:$0xff]  ;;  %v9051_v0 = vld [vmem:[#allocation68_spill] sm:$0xff] }
 0x248   :  { %4499 = vmatprep.subr.bf16.mxu0 %v9041_v5  ;;  %4563 = vmatprep.subr.bf16.mxu1 %v9042_v14  ;;  %v9052_v5 = vld [vmem:[#allocation69_spill] sm:$0xff]  ;;  %v9053_v14 = vld [vmem:[#allocation70_spill] sm:$0xff] }
 0x24b   :  { %4501 = vmatpush1.bf16.msra.mxu0 %v9043_v15  ;;  %4565 = vmatpush1.bf16.msra.mxu1 %v9044_v18  ;;  %v9054_v15 = vld [vmem:[#allocation71_spill] sm:$0xff]  ;;  %v9055_v18 = vld [vmem:[#allocation72_spill] sm:$0xff] }
 0x24c   :  { %4503 = vmatprep.subr.bf16.mxu0 %v9045_v23  ;;  %4567 = vmatprep.subr.bf16.mxu1 %v9046_v32  ;;  %v9056_v23 = vld [vmem:[#allocation73_spill] sm:$0xff]  ;;  %v9057_v32 = vld [vmem:[#allocation74_spill] sm:$0xff] }
 0x24f   :  { %4505 = vmatpush1.bf16.msra.mxu0 %v9047_v33  ;;  %4569 = vmatpush1.bf16.msra.mxu1 %v9048_v35  ;;  %v9058_v33 = vld [vmem:[#allocation75_spill] sm:$0xff]  ;;  %v9059_v35 = vld [vmem:[#allocation76_spill] sm:$0xff] }
 0x250   :  { %4507 = vmatprep.subr.bf16.mxu0 %v9049_v53  ;;  %4571 = vmatprep.subr.bf16.mxu1 %v9050_v63  ;;  %v9060_v53 = vld [vmem:[#allocation77_spill] sm:$0xff]  ;;  %v9061_v63 = vld [vmem:[#allocation78_spill] sm:$0xff] }
 0x253   :  { %4509 = vmatpush1.bf16.msra.mxu0 %v9051_v0  ;;  %4573 = vmatpush1.bf16.msra.mxu1 %v9052_v5  ;;  %v9062_v0 = vld [vmem:[#allocation79_spill] sm:$0xff]  ;;  %v9063_v5 = vld [vmem:[#allocation80_spill] sm:$0xff] }
 0x254   :  { %4511 = vmatprep.subr.bf16.mxu0 %v9053_v14  ;;  %4575 = vmatprep.subr.bf16.mxu1 %v9054_v15  ;;  %v9064_v14 = vld [vmem:[#allocation81_spill] sm:$0xff]  ;;  %v9065_v15 = vld [vmem:[#allocation82_spill] sm:$0xff] }
 0x257   :  { %4513 = vmatpush1.bf16.msra.mxu0 %v9055_v18  ;;  %4577 = vmatpush1.bf16.msra.mxu1 %v9056_v23  ;;  %v9066_v18 = vld [vmem:[#allocation83_spill] sm:$0xff]  ;;  %v9067_v23 = vld [vmem:[#allocation84_spill] sm:$0xff] }
 0x258   :  { %4515 = vmatprep.subr.bf16.mxu0 %v9057_v32  ;;  %4579 = vmatprep.subr.bf16.mxu1 %v9058_v33  ;;  %v9068_v32 = vld [vmem:[#allocation85_spill] sm:$0xff]  ;;  %v9069_v33 = vld [vmem:[#allocation86_spill] sm:$0xff] }
 0x25b   :  { %4517 = vmatpush1.bf16.msra.mxu0 %v9059_v35  ;;  %4581 = vmatpush1.bf16.msra.mxu1 %v9060_v53  ;;  %v9070_v35 = vld [vmem:[#allocation87_spill] sm:$0xff]  ;;  %v9071_v53 = vld [vmem:[#allocation88_spill] sm:$0xff] }
 0x25c   :  { %4519 = vmatprep.subr.bf16.mxu0 %v9061_v63  ;;  %4583 = vmatprep.subr.bf16.mxu1 %v9062_v0  ;;  %v9072_v63 = vld [vmem:[#allocation89_spill] sm:$0xff]  ;;  %v9073_v0 = vld [vmem:[#allocation90_spill] sm:$0xff] }
 0x25f   :  { %4521 = vmatpush1.bf16.msra.mxu0 %v9063_v5  ;;  %4585 = vmatpush1.bf16.msra.mxu1 %v9064_v14  ;;  %v9074_v5 = vld [vmem:[#allocation91_spill] sm:$0xff] }
 0x260   :  { %4523 = vmatprep.subr.bf16.mxu0 %v9065_v15  ;;  %4587 = vmatprep.subr.bf16.mxu1 %v9066_v18 }
 0x263   :  { %4525 = vmatpush1.bf16.msra.mxu0 %v9067_v23  ;;  %4589 = vmatpush1.bf16.msra.mxu1 %v9068_v32  ;;  %v740_v23 = vld [vmem:[#allocation5 + $0x50] sm:$0xff] }
 0x264   :  { %4527 = vmatprep.subr.bf16.mxu0 %v9069_v33  ;;  %4591 = vmatprep.subr.bf16.mxu1 %v9070_v35 }
 0x267   :  { %4529 = vmatpush1.bf16.msra.mxu0 %v9071_v53  ;;  %4593 = vmatpush1.bf16.msra.mxu1 %v9072_v63 }
 0x268   :  { %4595 = vmatprep.subr.bf16.mxu0 %v9073_v0  ;;  %4659 = vmatprep.subr.bf16.mxu1 %v9074_v5 }
 0x2bd   :  { %v812_v14 = vpop.f32.mrb[4].mxu0  ;;  %v883_v15 = vpop.f32.mrb[4].mxu1 }
 0x2be   :  { %v814_v62 = vpop.f32.mrb[5].mxu0  ;;  %v885_v18 = vpop.f32.mrb[5].mxu1  ;;  %v1030_v32 = vadd.f32 %v812_v14, %v738_v56  ;;  %v1032_v33 = vadd.f32 %v883_v15, %v740_v23  ;;  %v742_v14 = vld [vmem:[#allocation5 + $0x60] sm:$0xff]  ;;  %v744_v15 = vld [vmem:[#allocation5 + $0x70] sm:$0xff] }
 0x2bf   :  { %v1031_v50 = vadd.f32 %v814_v62, %v739_v52  ;;  %v1033_v35 = vadd.f32 %v885_v18, %v741_v51  ;;  %v743_v51 = vld [vmem:[#allocation5 + $0x68] sm:$0xff]  ;;  %v745_v52 = vld [vmem:[#allocation5 + $0x78] sm:$0xff] }
 0x2c0   :  { %v3912_v43 = vmul.f32 -1.442695, %v1030_v32  ;;  %v3914_v53 = vmul.f32 -1.442695, %v1032_v33 }
 0x2c1   :  { %v3913_v39 = vmul.f32 -1.442695, %v1031_v50  ;;  %v3915_v63 = vmul.f32 -1.442695, %v1033_v35 }
 0x2c2   :  { %6273 = vpow2.f32 %v3912_v43 }
 0x2c3   :  { %6275 = vpow2.f32 %v3914_v53 }
 0x2c4   :  { %6277 = vpow2.f32 %v3913_v39 }
 0x2c5   :  { %6279 = vpow2.f32 %v3915_v63 }
 0x2cc   :  { %v6274_v5 = vpop.eup %6273 }
 0x2cd   :  { %v6276_v0 = vpop.eup %6275  ;;  %v1056_v30 = vadd.f32 1.0, %v6274_v5 }
 0x2ce   :  { %v6278_v38 = vpop.eup %6277  ;;  %v1058_v26 = vadd.f32 1.0, %v6276_v0 }
 0x2cf   :  { %v6280_v34 = vpop.eup %6279  ;;  %v1057_v25 = vadd.f32 1.0, %v6278_v38  ;;  %6281 = vrcp.f32 %v1056_v30 }
 0x2d0   :  { %v1059_v56 = vadd.f32 1.0, %v6280_v34  ;;  %6283 = vrcp.f32 %v1058_v26 }
 0x2d1   :  { %6285 = vrcp.f32 %v1057_v25 }
 0x2d2   :  { %6287 = vrcp.f32 %v1059_v56 }
 0x2d9   :  { %v6282_v30 = vpop.eup %6281 }
 0x2da   :  { %v6284_v34 = vpop.eup %6283 }
 0x2db   :  { %v6286_v0 = vpop.eup %6285  ;;  %v1076_v25 = vmul.f32 %v6284_v34, %v7314_v9  ;;  %v9081_v34 = vld [vmem:[#allocation105_spill] sm:$0xff] }
 0x2dc   :  { %v6288_v26 = vpop.eup %6287 }
 0x2dd   :  { %v1077_v56 = vmul.f32 %v6288_v26, %v7316_v4  ;;  %v9083_v26 = vld [vmem:[#allocation107_spill] sm:$0xff] }
 0x2fd   :  { %v954_v50 = vpop.f32.mrb[6].mxu0  ;;  %v1025_v62 = vpop.f32.mrb[6].mxu1 }
 0x2fe   :  { %v1034_v43 = vadd.f32 %v954_v50, %v742_v14  ;;  %v1036_v39 = vadd.f32 %v1025_v62, %v744_v15  ;;  %v956_v63 = vpop.f32.mrb[7].mxu0  ;;  %v1027_v18 = vpop.f32.mrb[7].mxu1 }
 0x2ff   :  { %v1035_v23 = vadd.f32 %v956_v63, %v743_v51  ;;  %v1037_v32 = vadd.f32 %v1027_v18, %v745_v52 }
 0x300   :  { %v3916_v5 = vmul.f32 -1.442695, %v1034_v43  ;;  %6289 = vtanh.f32 %v1036_v39 }
 0x301   :  { %v3917_v38 = vmul.f32 -1.442695, %v1035_v23  ;;  %6291 = vtanh.f32 %v1037_v32  ;;  %v9077_v32 = vld [vmem:[#allocation101_spill] sm:$0xff] }
 0x302   :  { %6293 = vpow2.f32 %v3916_v5  ;;  %v9078_v5 = vld [vmem:[#allocation102_spill] sm:$0xff] }
 0x303   :  { %6295 = vpow2.f32 %v3917_v38  ;;  %v9079_v38 = vld [vmem:[#allocation103_spill] sm:$0xff] }
 0x30a   :  { %v6290_v33 = vpop.eup %6289 }
 0x30b   :  { %v6292_v35 = vpop.eup %6291  ;;  %v1078_v53 = vmul.f32 %v6290_v33, %v6282_v30  ;;  %v9080_v30 = vld [vmem:[#allocation104_spill] sm:$0xff] }
 0x30c   :  { %v6294_v14 = vpop.eup %6293  ;;  %v1079_v15 = vmul.f32 %v6292_v35, %v6286_v0  ;;  %v9082_v0 = vld [vmem:[#allocation106_spill] sm:$0xff]  ;;  %v9084_v33 = vld [vmem:[#allocation108_spill] sm:$0xff]  ;;  %v9085_v35 = vld [vmem:[#allocation109_spill] sm:$0xff] }
 0x30d   :  { %v6296_v51 = vpop.eup %6295  ;;  %v1060_v52 = vadd.f32 1.0, %v6294_v14  ;;  %v7462_v50 = vadd.f32 %v1078_v53, %v1076_v25  ;;  %v9086_v25 = vld [vmem:[#allocation110_spill] sm:$0xff]  ;;  %v9087_v53 = vld [vmem:[#allocation111_spill] sm:$0xff]  ;;  %v9088_v14 = vld [vmem:[#allocation112_spill] sm:$0xff] }
 0x30e   :  { %v1061_v62 = vadd.f32 1.0, %v6296_v51  ;;  %v7464_v43 = vadd.f32 %v1079_v15, %v1077_v56  ;;  %v9089_v56 = vld [vmem:[#allocation113_spill] sm:$0xff]  ;;  %v9090_v15 = vld [vmem:[#allocation114_spill] sm:$0xff]  ;;  %v9091_v51 = vld [vmem:[#allocation115_spill] sm:$0xff] }
 0x30f   :  { %6297 = vrcp.f32 %v1060_v52  ;;  %v9092_v52 = vld [vmem:[#allocation116_spill] sm:$0xff] }
 0x310   :  { %6299 = vtanh.f32 %v7462_v50 }
 0x311   :  { %6301 = vrcp.f32 %v1061_v62  ;;  %v9093_v62 = vld [vmem:[#allocation117_spill] sm:$0xff] }
 0x312   :  { %6303 = vtanh.f32 %v7464_v43 }
 0x319   :  { %v6298_v39 = vpop.eup %6297 }
 0x31a   :  { %v6300_v9 = vpop.eup %6299 }
 0x31b   :  { %v6302_v63 = vpop.eup %6301  ;;  %v7470_v4 = vmul.f32 %v6300_v9, %v6298_v39  ;;  %v9094_v39 = vld [vmem:[#allocation118_spill] sm:$0xff]  ;;  %v9095_v9 = vld [vmem:[#allocation119_spill] sm:$0xff] }
 0x31c   :  { %v6304_v18 = vpop.eup %6303 }
 0x31d   :  { %v7468_v23 = vmul.f32 %v6304_v18, %v6302_v63  ;;  %9076 = vst [vmem:[#allocation93_spill] sm:$0xff] %v7470_v4  ;;  %v9096_v63 = vld [vmem:[#allocation120_spill] sm:$0xff]  ;;  %v9097_v18 = vld [vmem:[#allocation121_spill] sm:$0xff] }
 0x31f   :  { %9075 = vst [vmem:[#allocation92_spill] sm:$0xff] %v7468_v23  ;;  %1164 = vmatprep.mubr.f32.mxu0 %v7468_v23  ;;  %1235 = vmatprep.mubr.f32.mxu1 %v7468_v23 }
 0x320   :  { %1165 = vmatmul.mubr.f32.vlgmr.msra.gmra.mrb[8].mxu0 %v7470_v4  ;;  %1236 = vmatmul.mubr.f32.vlgmr.msra.gmra.mrb[8].mxu1 %v7470_v4 }
 0x321   :  { %4597 = vmatpush1.bf16.msra.mxu0 %v8988_v49  ;;  %4661 = vmatpush1.bf16.msra.mxu1 %v7057_v37 }
 0x322   :  { %1306 = vmatprep.mubr.f32.mxu0 %v7468_v23  ;;  %1377 = vmatprep.mubr.f32.mxu1 %v7468_v23  ;;  %v9098_v23 = vld [vmem:[#allocation122_spill] sm:$0xff] }
 0x323   :  { %4599 = vmatprep.subr.bf16.mxu0 %v8989_v20  ;;  %4663 = vmatprep.subr.bf16.mxu1 %v8990_v55 }
 0x325   :  { %4601 = vmatpush1.bf16.msra.mxu0 %v8991_v48  ;;  %4665 = vmatpush1.bf16.msra.mxu1 %v8992_v47 }
 0x326   :  { %4603 = vmatprep.subr.bf16.mxu0 %v8993_v11  ;;  %4667 = vmatprep.subr.bf16.mxu1 %v8994_v31 }
 0x329   :  { %4605 = vmatpush1.bf16.msra.mxu0 %v8995_v41  ;;  %4669 = vmatpush1.bf16.msra.mxu1 %v8996_v28 }
 0x32a   :  { %4607 = vmatprep.subr.bf16.mxu0 %v9077_v32  ;;  %4671 = vmatprep.subr.bf16.mxu1 %v9078_v5 }
 0x32d   :  { %4609 = vmatpush1.bf16.msra.mxu0 %v9079_v38  ;;  %4673 = vmatpush1.bf16.msra.mxu1 %v9080_v30 }
 0x32e   :  { %4611 = vmatprep.subr.bf16.mxu0 %v9081_v34  ;;  %4675 = vmatprep.subr.bf16.mxu1 %v9082_v0 }
 0x331   :  { %4613 = vmatpush1.bf16.msra.mxu0 %v9083_v26  ;;  %4677 = vmatpush1.bf16.msra.mxu1 %v9084_v33 }
 0x332   :  { %4615 = vmatprep.subr.bf16.mxu0 %v9085_v35  ;;  %4679 = vmatprep.subr.bf16.mxu1 %v9086_v25 }
 0x335   :  { %4617 = vmatpush1.bf16.msra.mxu0 %v9087_v53  ;;  %4681 = vmatpush1.bf16.msra.mxu1 %v9088_v14  ;;  %v9099_v14 = vld [vmem:[#allocation123_spill] sm:$0xff] }
 0x336   :  { %4619 = vmatprep.subr.bf16.mxu0 %v9089_v56  ;;  %4683 = vmatprep.subr.bf16.mxu1 %v9090_v15  ;;  %v9100_v56 = vld [vmem:[#allocation124_spill] sm:$0xff]  ;;  %v9101_v15 = vld [vmem:[#allocation125_spill] sm:$0xff] }
 0x339   :  { %4621 = vmatpush1.bf16.msra.mxu0 %v9091_v51  ;;  %4685 = vmatpush1.bf16.msra.mxu1 %v9092_v52  ;;  %v9102_v51 = vld [vmem:[#allocation126_spill] sm:$0xff]  ;;  %v9103_v52 = vld [vmem:[#allocation127_spill] sm:$0xff] }
 0x33a   :  { %4623 = vmatprep.subr.bf16.mxu0 %v9093_v62  ;;  %4687 = vmatprep.subr.bf16.mxu1 %v9094_v39  ;;  %v9104_v62 = vld [vmem:[#allocation128_spill] sm:$0xff]  ;;  %v9105_v39 = vld [vmem:[#allocation129_spill] sm:$0xff] }
 0x33d   :  { %4625 = vmatpush1.bf16.msra.mxu0 %v9095_v9  ;;  %4689 = vmatpush1.bf16.msra.mxu1 %v9096_v63  ;;  %v9106_v63 = vld [vmem:[#allocation131_spill] sm:$0xff] }
 0x33e   :  { %4627 = vmatprep.subr.bf16.mxu0 %v9097_v18  ;;  %4691 = vmatprep.subr.bf16.mxu1 %v9098_v23 }
 0x341   :  { %4629 = vmatpush1.bf16.msra.mxu0 %v9099_v14  ;;  %4693 = vmatpush1.bf16.msra.mxu1 %v9100_v56 }
 0x342   :  { %4631 = vmatprep.subr.bf16.mxu0 %v9101_v15  ;;  %4695 = vmatprep.subr.bf16.mxu1 %v9102_v51 }
 0x345   :  { %4633 = vmatpush1.bf16.msra.mxu0 %v9103_v52  ;;  %4697 = vmatpush1.bf16.msra.mxu1 %v9104_v62 }
 0x346   :  { %4635 = vmatprep.subr.bf16.mxu0 %v9105_v39  ;;  %4699 = vmatprep.subr.bf16.mxu1 %v9026_v42 }
 0x349   :  { %4637 = vmatpush1.bf16.msra.mxu0 %v9106_v63  ;;  %4701 = vmatpush1.bf16.msra.mxu1 %v9028_v40 }
 0x34a   :  { %4639 = vmatprep.subr.bf16.mxu0 %v9029_v58  ;;  %4703 = vmatprep.subr.bf16.mxu1 %v9030_v29 }
 0x34d   :  { %4641 = vmatpush1.bf16.msra.mxu0 %v9031_v19  ;;  %4705 = vmatpush1.bf16.msra.mxu1 %v9032_v59 }
 0x34e   :  { %4643 = vmatprep.subr.bf16.mxu0 %v9033_v36  ;;  %4707 = vmatprep.subr.bf16.mxu1 %v9034_v6 }
 0x351   :  { %4645 = vmatpush1.bf16.msra.mxu0 %v9035_v24  ;;  %4709 = vmatpush1.bf16.msra.mxu1 %v9036_v61 }
 0x352   :  { %4647 = vmatprep.subr.bf16.mxu0 %v7207_v2  ;;  %4711 = vmatprep.subr.bf16.mxu1 %v9037_v54 }
 0x355   :  { %4649 = vmatpush1.bf16.msra.mxu0 %v7213_v45  ;;  %4713 = vmatpush1.bf16.msra.mxu1 %v7217_v60 }
 0x356   :  { %4651 = vmatprep.subr.bf16.mxu0 %v7219_v1  ;;  %4715 = vmatprep.subr.bf16.mxu1 %v7222_v44  ;;  %v1095_v44 = vld [vmem:[#allocation5 + $0x98] sm:$0xff] }
 0x359   :  { %4653 = vmatpush1.bf16.msra.mxu0 %v7225_v57  ;;  %4717 = vmatpush1.bf16.msra.mxu1 %v7229_v10  ;;  %v1092_v10 = vld [vmem:[#allocation5 + $0x80] sm:$0xff]  ;;  %v1093_v57 = vld [vmem:[#allocation5 + $0x88] sm:$0xff] }
 0x35a   :  { %4655 = vmatprep.subr.bf16.mxu0 %v7231_v46  ;;  %4719 = vmatprep.subr.bf16.mxu1 %v7234_v22  ;;  %v9111_v22 = vld [vmem:[#allocation37_spill] sm:$0xff] }
 0x35d   :  { %4657 = vmatpush1.bf16.msra.mxu0 %v7237_v13  ;;  %4721 = vmatpush1.bf16.msra.mxu1 %v7241_v27  ;;  %v9107_v13 = vld [vmem:[#allocation33_spill] sm:$0xff]  ;;  %v9108_v27 = vld [vmem:[#allocation34_spill] sm:$0xff] }
 0x35e   :  { %4723 = vmatprep.subr.bf16.mxu0 %v6852_v3  ;;  %4787 = vmatprep.subr.bf16.mxu1 %v6854_v7  ;;  %v9109_v3 = vld [vmem:[#allocation35_spill] sm:$0xff]  ;;  %v9110_v7 = vld [vmem:[#allocation36_spill] sm:$0xff] }
 0x360   :  { %1307 = vmatmul.mubr.f32.vlgmr.msra.gmra.mrb[10].mxu0 %v7470_v4  ;;  %1378 = vmatmul.mubr.f32.vlgmr.msra.gmra.mrb[10].mxu1 %v7470_v4  ;;  %v9112_v4 = vld [vmem:[#allocation38_spill] sm:$0xff] }
 0x361   :  { %4725 = vmatpush1.bf16.msra.mxu0 %v6856_v8  ;;  %4789 = vmatpush1.bf16.msra.mxu1 %v6859_v12  ;;  %v9113_v8 = vld [vmem:[#allocation39_spill] sm:$0xff]  ;;  %v9114_v12 = vld [vmem:[#allocation40_spill] sm:$0xff] }
 0x362   :  { %4727 = vmatprep.subr.bf16.mxu0 %v6863_v16  ;;  %4791 = vmatprep.subr.bf16.mxu1 %v6865_v17  ;;  %v9115_v16 = vld [vmem:[#allocation41_spill] sm:$0xff]  ;;  %v9116_v17 = vld [vmem:[#allocation42_spill] sm:$0xff] }
 0x365   :  { %4729 = vmatpush1.bf16.msra.mxu0 %v6868_v21  ;;  %4793 = vmatpush1.bf16.msra.mxu1 %v9107_v13  ;;  %v9117_v21 = vld [vmem:[#allocation43_spill] sm:$0xff]  ;;  %v9118_v13 = vld [vmem:[#allocation44_spill] sm:$0xff] }
 0x366   :  { %4731 = vmatprep.subr.bf16.mxu0 %v9108_v27  ;;  %4795 = vmatprep.subr.bf16.mxu1 %v9109_v3  ;;  %v9119_v27 = vld [vmem:[#allocation45_spill] sm:$0xff]  ;;  %v9120_v3 = vld [vmem:[#allocation46_spill] sm:$0xff] }
 0x369   :  { %4733 = vmatpush1.bf16.msra.mxu0 %v9110_v7  ;;  %4797 = vmatpush1.bf16.msra.mxu1 %v9111_v22  ;;  %v9121_v7 = vld [vmem:[#allocation47_spill] sm:$0xff]  ;;  %v9122_v22 = vld [vmem:[#allocation48_spill] sm:$0xff] }
 0x36a   :  { %4735 = vmatprep.subr.bf16.mxu0 %v9112_v4  ;;  %4799 = vmatprep.subr.bf16.mxu1 %v9113_v8  ;;  %v9123_v4 = vld [vmem:[#allocation49_spill] sm:$0xff]  ;;  %v9124_v8 = vld [vmem:[#allocation50_spill] sm:$0xff] }
 0x36d   :  { %4737 = vmatpush1.bf16.msra.mxu0 %v9114_v12  ;;  %4801 = vmatpush1.bf16.msra.mxu1 %v9115_v16  ;;  %v9125_v12 = vld [vmem:[#allocation51_spill] sm:$0xff]  ;;  %v9126_v16 = vld [vmem:[#allocation52_spill] sm:$0xff] }
 0x36e   :  { %4739 = vmatprep.subr.bf16.mxu0 %v9116_v17  ;;  %4803 = vmatprep.subr.bf16.mxu1 %v9117_v21  ;;  %v9127_v17 = vld [vmem:[#allocation53_spill] sm:$0xff]  ;;  %v9128_v21 = vld [vmem:[#allocation54_spill] sm:$0xff] }
 0x371   :  { %4741 = vmatpush1.bf16.msra.mxu0 %v9118_v13  ;;  %4805 = vmatpush1.bf16.msra.mxu1 %v9119_v27  ;;  %v9129_v13 = vld [vmem:[#allocation55_spill] sm:$0xff]  ;;  %v9130_v27 = vld [vmem:[#allocation56_spill] sm:$0xff] }
 0x372   :  { %4743 = vmatprep.subr.bf16.mxu0 %v9120_v3  ;;  %4807 = vmatprep.subr.bf16.mxu1 %v9121_v7  ;;  %v9131_v3 = vld [vmem:[#allocation57_spill] sm:$0xff]  ;;  %v9132_v7 = vld [vmem:[#allocation58_spill] sm:$0xff] }
 0x375   :  { %4745 = vmatpush1.bf16.msra.mxu0 %v9122_v22  ;;  %4809 = vmatpush1.bf16.msra.mxu1 %v9123_v4  ;;  %v9133_v22 = vld [vmem:[#allocation59_spill] sm:$0xff]  ;;  %v9134_v4 = vld [vmem:[#allocation60_spill] sm:$0xff] }
 0x376   :  { %4747 = vmatprep.subr.bf16.mxu0 %v9124_v8  ;;  %4811 = vmatprep.subr.bf16.mxu1 %v9125_v12  ;;  %v9135_v8 = vld [vmem:[#allocation61_spill] sm:$0xff]  ;;  %v9136_v12 = vld [vmem:[#allocation62_spill] sm:$0xff] }
 0x379   :  { %4749 = vmatpush1.bf16.msra.mxu0 %v9126_v16  ;;  %4813 = vmatpush1.bf16.msra.mxu1 %v9127_v17  ;;  %v9137_v16 = vld [vmem:[#allocation63_spill] sm:$0xff]  ;;  %v9138_v17 = vld [vmem:[#allocation64_spill] sm:$0xff] }
 0x37a   :  { %4751 = vmatprep.subr.bf16.mxu0 %v9128_v21  ;;  %4815 = vmatprep.subr.bf16.mxu1 %v9129_v13  ;;  %v9139_v21 = vld [vmem:[#allocation65_spill] sm:$0xff]  ;;  %v9140_v13 = vld [vmem:[#allocation66_spill] sm:$0xff] }
 0x37d   :  { %4753 = vmatpush1.bf16.msra.mxu0 %v9130_v27  ;;  %4817 = vmatpush1.bf16.msra.mxu1 %v9131_v3  ;;  %v9141_v27 = vld [vmem:[#allocation67_spill] sm:$0xff]  ;;  %v9142_v3 = vld [vmem:[#allocation68_spill] sm:$0xff] }
 0x37e   :  { %4755 = vmatprep.subr.bf16.mxu0 %v9132_v7  ;;  %4819 = vmatprep.subr.bf16.mxu1 %v9133_v22  ;;  %v9143_v7 = vld [vmem:[#allocation69_spill] sm:$0xff]  ;;  %v9144_v22 = vld [vmem:[#allocation70_spill] sm:$0xff] }
 0x381   :  { %4757 = vmatpush1.bf16.msra.mxu0 %v9134_v4  ;;  %4821 = vmatpush1.bf16.msra.mxu1 %v9135_v8  ;;  %v9145_v4 = vld [vmem:[#allocation71_spill] sm:$0xff]  ;;  %v9146_v8 = vld [vmem:[#allocation72_spill] sm:$0xff] }
 0x382   :  { %4759 = vmatprep.subr.bf16.mxu0 %v9136_v12  ;;  %4823 = vmatprep.subr.bf16.mxu1 %v9137_v16  ;;  %v9147_v12 = vld [vmem:[#allocation73_spill] sm:$0xff]  ;;  %v9148_v16 = vld [vmem:[#allocation74_spill] sm:$0xff] }
 0x385   :  { %4761 = vmatpush1.bf16.msra.mxu0 %v9138_v17  ;;  %4825 = vmatpush1.bf16.msra.mxu1 %v9139_v21  ;;  %v9149_v17 = vld [vmem:[#allocation75_spill] sm:$0xff]  ;;  %v9150_v21 = vld [vmem:[#allocation76_spill] sm:$0xff] }
 0x386   :  { %4763 = vmatprep.subr.bf16.mxu0 %v9140_v13  ;;  %4827 = vmatprep.subr.bf16.mxu1 %v9141_v27  ;;  %v9151_v13 = vld [vmem:[#allocation77_spill] sm:$0xff]  ;;  %v9152_v27 = vld [vmem:[#allocation78_spill] sm:$0xff] }
 0x389   :  { %4765 = vmatpush1.bf16.msra.mxu0 %v9142_v3  ;;  %4829 = vmatpush1.bf16.msra.mxu1 %v9143_v7  ;;  %v9153_v3 = vld [vmem:[#allocation79_spill] sm:$0xff]  ;;  %v9154_v7 = vld [vmem:[#allocation80_spill] sm:$0xff] }
 0x38a   :  { %4767 = vmatprep.subr.bf16.mxu0 %v9144_v22  ;;  %4831 = vmatprep.subr.bf16.mxu1 %v9145_v4  ;;  %v9155_v22 = vld [vmem:[#allocation81_spill] sm:$0xff]  ;;  %v9156_v4 = vld [vmem:[#allocation82_spill] sm:$0xff] }
 0x38d   :  { %4769 = vmatpush1.bf16.msra.mxu0 %v9146_v8  ;;  %4833 = vmatpush1.bf16.msra.mxu1 %v9147_v12  ;;  %v9157_v8 = vld [vmem:[#allocation83_spill] sm:$0xff]  ;;  %v9158_v12 = vld [vmem:[#allocation84_spill] sm:$0xff] }
 0x38e   :  { %4771 = vmatprep.subr.bf16.mxu0 %v9148_v16  ;;  %4835 = vmatprep.subr.bf16.mxu1 %v9149_v17  ;;  %v9159_v16 = vld [vmem:[#allocation85_spill] sm:$0xff]  ;;  %v9160_v17 = vld [vmem:[#allocation86_spill] sm:$0xff] }
 0x391   :  { %4773 = vmatpush1.bf16.msra.mxu0 %v9150_v21  ;;  %4837 = vmatpush1.bf16.msra.mxu1 %v9151_v13  ;;  %v9161_v21 = vld [vmem:[#allocation87_spill] sm:$0xff]  ;;  %v9162_v13 = vld [vmem:[#allocation88_spill] sm:$0xff] }
 0x392   :  { %4775 = vmatprep.subr.bf16.mxu0 %v9152_v27  ;;  %4839 = vmatprep.subr.bf16.mxu1 %v9153_v3  ;;  %v9163_v27 = vld [vmem:[#allocation89_spill] sm:$0xff]  ;;  %v9164_v3 = vld [vmem:[#allocation90_spill] sm:$0xff] }
 0x395   :  { %4777 = vmatpush1.bf16.msra.mxu0 %v9154_v7  ;;  %4841 = vmatpush1.bf16.msra.mxu1 %v9155_v22  ;;  %v9165_v7 = vld [vmem:[#allocation91_spill] sm:$0xff] }
 0x396   :  { %4779 = vmatprep.subr.bf16.mxu0 %v9156_v4  ;;  %4843 = vmatprep.subr.bf16.mxu1 %v9157_v8 }
 0x399   :  { %4781 = vmatpush1.bf16.msra.mxu0 %v9158_v12  ;;  %4845 = vmatpush1.bf16.msra.mxu1 %v9159_v16  ;;  %v1094_v12 = vld [vmem:[#allocation5 + $0x90] sm:$0xff] }
 0x39a   :  { %4783 = vmatprep.subr.bf16.mxu0 %v9160_v17  ;;  %4847 = vmatprep.subr.bf16.mxu1 %v9161_v21 }
 0x39d   :  { %4785 = vmatpush1.bf16.msra.mxu0 %v9162_v13  ;;  %4849 = vmatpush1.bf16.msra.mxu1 %v9163_v27 }
 0x39e   :  { %4851 = vmatprep.subr.bf16.mxu0 %v9164_v3  ;;  %4915 = vmatprep.subr.bf16.mxu1 %v9165_v7 }
 0x3f3   :  { %v1166_v22 = vpop.f32.mrb[8].mxu0  ;;  %v1237_v4 = vpop.f32.mrb[8].mxu1 }
 0x3f4   :  { %v1168_v46 = vpop.f32.mrb[9].mxu0  ;;  %v1239_v8 = vpop.f32.mrb[9].mxu1  ;;  %v1384_v16 = vadd.f32 %v1166_v22, %v1092_v10  ;;  %v1386_v17 = vadd.f32 %v1237_v4, %v1094_v12  ;;  %v1096_v22 = vld [vmem:[#allocation5 + $0xa0] sm:$0xff]  ;;  %v1098_v12 = vld [vmem:[#allocation5 + $0xb0] sm:$0xff] }
 0x3f5   :  { %v1385_v1 = vadd.f32 %v1168_v46, %v1093_v57  ;;  %v1387_v21 = vadd.f32 %v1239_v8, %v1095_v44  ;;  %v1097_v8 = vld [vmem:[#allocation5 + $0xa8] sm:$0xff] }
 0x3f6   :  { %v3918_v60 = vmul.f32 -1.442695, %v1384_v16  ;;  %v3920_v13 = vmul.f32 -1.442695, %v1386_v17  ;;  %v1099_v16 = vld [vmem:[#allocation5 + $0xb8] sm:$0xff] }
 0x3f7   :  { %v3919_v45 = vmul.f32 -1.442695, %v1385_v1  ;;  %v3921_v27 = vmul.f32 -1.442695, %v1387_v21 }
 0x3f8   :  { %6305 = vpow2.f32 %v3918_v60 }
 0x3f9   :  { %6307 = vpow2.f32 %v3920_v13 }
 0x3fa   :  { %6309 = vpow2.f32 %v3919_v45 }
 0x3fb   :  { %6311 = vpow2.f32 %v3921_v27 }
 0x402   :  { %v6306_v7 = vpop.eup %6305 }
 0x403   :  { %v6308_v3 = vpop.eup %6307  ;;  %v1410_v61 = vadd.f32 1.0, %v6306_v7 }
 0x404   :  { %v6310_v54 = vpop.eup %6309  ;;  %v1412_v24 = vadd.f32 1.0, %v6308_v3 }
 0x405   :  { %v6312_v2 = vpop.eup %6311  ;;  %v1411_v6 = vadd.f32 1.0, %v6310_v54  ;;  %6313 = vrcp.f32 %v1410_v61 }
 0x406   :  { %v1413_v10 = vadd.f32 1.0, %v6312_v2  ;;  %6315 = vrcp.f32 %v1412_v24 }
 0x407   :  { %6317 = vrcp.f32 %v1411_v6 }
 0x408   :  { %6319 = vrcp.f32 %v1413_v10 }
 0x40f   :  { %v6314_v2 = vpop.eup %6313 }
 0x410   :  { %v6316_v13 = vpop.eup %6315 }
 0x411   :  { %v6318_v27 = vpop.eup %6317  ;;  %v1430_v6 = vmul.f32 %v6316_v13, %v7462_v50  ;;  %v9172_v13 = vld [vmem:[#allocation116_spill] sm:$0xff] }
 0x412   :  { %v6320_v24 = vpop.eup %6319 }
 0x413   :  { %v1431_v10 = vmul.f32 %v6320_v24, %v7464_v43  ;;  %v9174_v24 = vld [vmem:[#allocation118_spill] sm:$0xff] }
 0x433   :  { %v1308_v17 = vpop.f32.mrb[10].mxu0  ;;  %v1379_v21 = vpop.f32.mrb[10].mxu1 }
 0x434   :  { %v1388_v57 = vadd.f32 %v1308_v17, %v1096_v22  ;;  %v1390_v45 = vadd.f32 %v1379_v21, %v1098_v12  ;;  %v1310_v60 = vpop.f32.mrb[11].mxu0  ;;  %v1381_v1 = vpop.f32.mrb[11].mxu1 }
 0x435   :  { %v1389_v44 = vadd.f32 %v1310_v60, %v1097_v8  ;;  %v1391_v46 = vadd.f32 %v1381_v1, %v1099_v16 }
 0x436   :  { %v3922_v7 = vmul.f32 -1.442695, %v1388_v57  ;;  %6321 = vtanh.f32 %v1390_v45 }
 0x437   :  { %v3923_v3 = vmul.f32 -1.442695, %v1389_v44  ;;  %6323 = vtanh.f32 %v1391_v46  ;;  %v9168_v46 = vld [vmem:[#allocation112_spill] sm:$0xff] }
 0x438   :  { %6325 = vpow2.f32 %v3922_v7  ;;  %v9169_v7 = vld [vmem:[#allocation113_spill] sm:$0xff] }
 0x439   :  { %6327 = vpow2.f32 %v3923_v3  ;;  %v9170_v3 = vld [vmem:[#allocation114_spill] sm:$0xff] }
 0x440   :  { %v6322_v61 = vpop.eup %6321 }
 0x441   :  { %v6324_v54 = vpop.eup %6323  ;;  %v1432_v4 = vmul.f32 %v6322_v61, %v6314_v2  ;;  %v9171_v2 = vld [vmem:[#allocation115_spill] sm:$0xff]  ;;  %v9175_v61 = vld [vmem:[#allocation120_spill] sm:$0xff] }
 0x442   :  { %v6326_v22 = vpop.eup %6325  ;;  %v1433_v12 = vmul.f32 %v6324_v54, %v6318_v27  ;;  %v9173_v27 = vld [vmem:[#allocation117_spill] sm:$0xff]  ;;  %v9176_v54 = vld [vmem:[#allocation138_spill] sm:$0xff] }
 0x443   :  { %v6328_v8 = vpop.eup %6327  ;;  %v1414_v16 = vadd.f32 1.0, %v6326_v22  ;;  %v7610_v17 = vadd.f32 %v1432_v4, %v1430_v6  ;;  %v9177_v6 = vld [vmem:[#allocation139_spill] sm:$0xff]  ;;  %v9178_v4 = vld [vmem:[#allocation140_spill] sm:$0xff]  ;;  %v9179_v22 = vld [vmem:[#allocation141_spill] sm:$0xff] }
 0x444   :  { %v1415_v21 = vadd.f32 1.0, %v6328_v8  ;;  %v7612_v57 = vadd.f32 %v1433_v12, %v1431_v10  ;;  %v9180_v10 = vld [vmem:[#allocation142_spill] sm:$0xff]  ;;  %v9181_v12 = vld [vmem:[#allocation143_spill] sm:$0xff]  ;;  %v9182_v8 = vld [vmem:[#allocation144_spill] sm:$0xff] }
 0x445   :  { %6329 = vrcp.f32 %v1414_v16  ;;  %v9183_v16 = vld [vmem:[#allocation145_spill] sm:$0xff] }
 0x446   :  { %6331 = vtanh.f32 %v7610_v17 }
 0x447   :  { %6333 = vrcp.f32 %v1415_v21  ;;  %v9184_v21 = vld [vmem:[#allocation146_spill] sm:$0xff] }
 0x448   :  { %6335 = vtanh.f32 %v7612_v57 }
 0x44f   :  { %v6330_v45 = vpop.eup %6329 }
 0x450   :  { %v6332_v50 = vpop.eup %6331 }
 0x451   :  { %v6334_v60 = vpop.eup %6333  ;;  %v7618_v43 = vmul.f32 %v6332_v50, %v6330_v45  ;;  %v9185_v45 = vld [vmem:[#allocation147_spill] sm:$0xff]  ;;  %v9186_v50 = vld [vmem:[#allocation148_spill] sm:$0xff] }
 0x452   :  { %v6336_v1 = vpop.eup %6335 }
 0x453   :  { %v7616_v44 = vmul.f32 %v6336_v1, %v6334_v60  ;;  %9167 = vst [vmem:[#allocation95_spill] sm:$0xff] %v7618_v43  ;;  %v9187_v60 = vld [vmem:[#allocation149_spill] sm:$0xff]  ;;  %v9188_v1 = vld [vmem:[#allocation150_spill] sm:$0xff] }
 0x455   :  { %9166 = vst [vmem:[#allocation94_spill] sm:$0xff] %v7616_v44  ;;  %1518 = vmatprep.mubr.f32.mxu0 %v7616_v44  ;;  %1589 = vmatprep.mubr.f32.mxu1 %v7616_v44 }
 0x456   :  { %1519 = vmatmul.mubr.f32.vlgmr.msra.gmra.mrb[12].mxu0 %v7618_v43  ;;  %1590 = vmatmul.mubr.f32.vlgmr.msra.gmra.mrb[12].mxu1 %v7618_v43 }
 0x457   :  { %4853 = vmatpush1.bf16.msra.mxu0 %v8988_v49  ;;  %4917 = vmatpush1.bf16.msra.mxu1 %v7057_v37 }
 0x458   :  { %1660 = vmatprep.mubr.f32.mxu0 %v7616_v44  ;;  %1731 = vmatprep.mubr.f32.mxu1 %v7616_v44  ;;  %v9189_v44 = vld [vmem:[#allocation151_spill] sm:$0xff] }
 0x459   :  { %4855 = vmatprep.subr.bf16.mxu0 %v8989_v20  ;;  %4919 = vmatprep.subr.bf16.mxu1 %v8990_v55 }
 0x45b   :  { %4857 = vmatpush1.bf16.msra.mxu0 %v8991_v48  ;;  %4921 = vmatpush1.bf16.msra.mxu1 %v8992_v47 }
 0x45c   :  { %4859 = vmatprep.subr.bf16.mxu0 %v8993_v11  ;;  %4923 = vmatprep.subr.bf16.mxu1 %v8994_v31 }
 0x45f   :  { %4861 = vmatpush1.bf16.msra.mxu0 %v8995_v41  ;;  %4925 = vmatpush1.bf16.msra.mxu1 %v8996_v28 }
 0x460   :  { %4863 = vmatprep.subr.bf16.mxu0 %v9077_v32  ;;  %4927 = vmatprep.subr.bf16.mxu1 %v9078_v5 }
 0x463   :  { %4865 = vmatpush1.bf16.msra.mxu0 %v9079_v38  ;;  %4929 = vmatpush1.bf16.msra.mxu1 %v9080_v30 }
 0x464   :  { %4867 = vmatprep.subr.bf16.mxu0 %v9081_v34  ;;  %4931 = vmatprep.subr.bf16.mxu1 %v9082_v0 }
 0x467   :  { %4869 = vmatpush1.bf16.msra.mxu0 %v9083_v26  ;;  %4933 = vmatpush1.bf16.msra.mxu1 %v9084_v33 }
 0x468   :  { %4871 = vmatprep.subr.bf16.mxu0 %v9085_v35  ;;  %4935 = vmatprep.subr.bf16.mxu1 %v9086_v25 }
 0x46b   :  { %4873 = vmatpush1.bf16.msra.mxu0 %v9087_v53  ;;  %4937 = vmatpush1.bf16.msra.mxu1 %v9168_v46 }
 0x46c   :  { %4875 = vmatprep.subr.bf16.mxu0 %v9169_v7  ;;  %4939 = vmatprep.subr.bf16.mxu1 %v9170_v3 }
 0x46f   :  { %4877 = vmatpush1.bf16.msra.mxu0 %v9171_v2  ;;  %4941 = vmatpush1.bf16.msra.mxu1 %v9172_v13 }
 0x470   :  { %4879 = vmatprep.subr.bf16.mxu0 %v9173_v27  ;;  %4943 = vmatprep.subr.bf16.mxu1 %v9174_v24 }
 0x473   :  { %4881 = vmatpush1.bf16.msra.mxu0 %v9095_v9  ;;  %4945 = vmatpush1.bf16.msra.mxu1 %v9175_v61 }
 0x474   :  { %4883 = vmatprep.subr.bf16.mxu0 %v9097_v18  ;;  %4947 = vmatprep.subr.bf16.mxu1 %v9098_v23 }
 0x477   :  { %4885 = vmatpush1.bf16.msra.mxu0 %v9099_v14  ;;  %4949 = vmatpush1.bf16.msra.mxu1 %v9100_v56 }
 0x478   :  { %4887 = vmatprep.subr.bf16.mxu0 %v9101_v15  ;;  %4951 = vmatprep.subr.bf16.mxu1 %v9102_v51 }
 0x47b   :  { %4889 = vmatpush1.bf16.msra.mxu0 %v9103_v52  ;;  %4953 = vmatpush1.bf16.msra.mxu1 %v9104_v62 }
 0x47c   :  { %4891 = vmatprep.subr.bf16.mxu0 %v9105_v39  ;;  %4955 = vmatprep.subr.bf16.mxu1 %v9026_v42 }
 0x47f   :  { %4893 = vmatpush1.bf16.msra.mxu0 %v9106_v63  ;;  %4957 = vmatpush1.bf16.msra.mxu1 %v9028_v40 }
 0x480   :  { %4895 = vmatprep.subr.bf16.mxu0 %v9029_v58  ;;  %4959 = vmatprep.subr.bf16.mxu1 %v9030_v29 }
 0x483   :  { %4897 = vmatpush1.bf16.msra.mxu0 %v9031_v19  ;;  %4961 = vmatpush1.bf16.msra.mxu1 %v9032_v59 }
 0x484   :  { %4899 = vmatprep.subr.bf16.mxu0 %v9033_v36  ;;  %4963 = vmatprep.subr.bf16.mxu1 %v9176_v54  ;;  %v1449_v54 = vld [vmem:[#allocation5 + $0xd8] sm:$0xff] }
 0x487   :  { %4901 = vmatpush1.bf16.msra.mxu0 %v9177_v6  ;;  %4965 = vmatpush1.bf16.msra.mxu1 %v9178_v4  ;;  %v1446_v4 = vld [vmem:[#allocation5 + $0xc0] sm:$0xff]  ;;  %v1447_v6 = vld [vmem:[#allocation5 + $0xc8] sm:$0xff] }
 0x488   :  { %4903 = vmatprep.subr.bf16.mxu0 %v9179_v22  ;;  %4967 = vmatprep.subr.bf16.mxu1 %v9180_v10  ;;  %v9190_v22 = vld [vmem:[#allocation152_spill] sm:$0xff]  ;;  %v9191_v10 = vld [vmem:[#allocation26_spill] sm:$0xff] }
 0x48b   :  { %4905 = vmatpush1.bf16.msra.mxu0 %v9181_v12  ;;  %4969 = vmatpush1.bf16.msra.mxu1 %v9182_v8  ;;  %v9192_v12 = vld [vmem:[#allocation27_spill] sm:$0xff] }
 0x48c   :  { %4907 = vmatprep.subr.bf16.mxu0 %v9183_v16  ;;  %4971 = vmatprep.subr.bf16.mxu1 %v9184_v21  ;;  %v9193_v21 = vld [vmem:[#allocation28_spill] sm:$0xff]  ;;  %v9202_v16 = vld [vmem:[#allocation37_spill] sm:$0xff] }
 0x48f   :  { %4909 = vmatpush1.bf16.msra.mxu0 %v9185_v45  ;;  %4973 = vmatpush1.bf16.msra.mxu1 %v9186_v50  ;;  %v9194_v45 = vld [vmem:[#allocation29_spill] sm:$0xff]  ;;  %v9195_v50 = vld [vmem:[#allocation30_spill] sm:$0xff] }
 0x490   :  { %4911 = vmatprep.subr.bf16.mxu0 %v9187_v60  ;;  %4975 = vmatprep.subr.bf16.mxu1 %v9188_v1  ;;  %v9196_v60 = vld [vmem:[#allocation31_spill] sm:$0xff]  ;;  %v9197_v1 = vld [vmem:[#allocation32_spill] sm:$0xff] }
 0x493   :  { %4913 = vmatpush1.bf16.msra.mxu0 %v9189_v44  ;;  %4977 = vmatpush1.bf16.msra.mxu1 %v9190_v22  ;;  %v9198_v44 = vld [vmem:[#allocation33_spill] sm:$0xff]  ;;  %v9199_v22 = vld [vmem:[#allocation34_spill] sm:$0xff] }
 0x494   :  { %4979 = vmatprep.subr.bf16.mxu0 %v9191_v10  ;;  %5043 = vmatprep.subr.bf16.mxu1 %v9192_v12  ;;  %v9200_v10 = vld [vmem:[#allocation35_spill] sm:$0xff]  ;;  %v9201_v12 = vld [vmem:[#allocation36_spill] sm:$0xff] }
 0x496   :  { %1661 = vmatmul.mubr.f32.vlgmr.msra.gmra.mrb[14].mxu0 %v7618_v43  ;;  %1732 = vmatmul.mubr.f32.vlgmr.msra.gmra.mrb[14].mxu1 %v7618_v43  ;;  %v9203_v43 = vld [vmem:[#allocation38_spill] sm:$0xff] }
 0x497   :  { %4981 = vmatpush1.bf16.msra.mxu0 %v9193_v21  ;;  %5045 = vmatpush1.bf16.msra.mxu1 %v9194_v45  ;;  %v9204_v21 = vld [vmem:[#allocation39_spill] sm:$0xff]  ;;  %v9205_v45 = vld [vmem:[#allocation40_spill] sm:$0xff] }
 0x498   :  { %4983 = vmatprep.subr.bf16.mxu0 %v9195_v50  ;;  %5047 = vmatprep.subr.bf16.mxu1 %v9196_v60  ;;  %v9206_v50 = vld [vmem:[#allocation41_spill] sm:$0xff]  ;;  %v9207_v60 = vld [vmem:[#allocation42_spill] sm:$0xff] }
 0x49b   :  { %4985 = vmatpush1.bf16.msra.mxu0 %v9197_v1  ;;  %5049 = vmatpush1.bf16.msra.mxu1 %v9198_v44  ;;  %v9208_v1 = vld [vmem:[#allocation43_spill] sm:$0xff]  ;;  %v9209_v44 = vld [vmem:[#allocation44_spill] sm:$0xff] }
 0x49c   :  { %4987 = vmatprep.subr.bf16.mxu0 %v9199_v22  ;;  %5051 = vmatprep.subr.bf16.mxu1 %v9200_v10  ;;  %v9210_v22 = vld [vmem:[#allocation45_spill] sm:$0xff]  ;;  %v9211_v10 = vld [vmem:[#allocation46_spill] sm:$0xff] }
 0x49f   :  { %4989 = vmatpush1.bf16.msra.mxu0 %v9201_v12  ;;  %5053 = vmatpush1.bf16.msra.mxu1 %v9202_v16  ;;  %v9212_v12 = vld [vmem:[#allocation47_spill] sm:$0xff]  ;;  %v9213_v16 = vld [vmem:[#allocation48_spill] sm:$0xff] }
 0x4a0   :  { %4991 = vmatprep.subr.bf16.mxu0 %v9203_v43  ;;  %5055 = vmatprep.subr.bf16.mxu1 %v9204_v21  ;;  %v9214_v43 = vld [vmem:[#allocation49_spill] sm:$0xff]  ;;  %v9215_v21 = vld [vmem:[#allocation50_spill] sm:$0xff] }
 0x4a3   :  { %4993 = vmatpush1.bf16.msra.mxu0 %v9205_v45  ;;  %5057 = vmatpush1.bf16.msra.mxu1 %v9206_v50  ;;  %v9216_v45 = vld [vmem:[#allocation51_spill] sm:$0xff]  ;;  %v9217_v50 = vld [vmem:[#allocation52_spill] sm:$0xff] }
 0x4a4   :  { %4995 = vmatprep.subr.bf16.mxu0 %v9207_v60  ;;  %5059 = vmatprep.subr.bf16.mxu1 %v9208_v1  ;;  %v9218_v60 = vld [vmem:[#allocation53_spill] sm:$0xff]  ;;  %v9219_v1 = vld [vmem:[#allocation54_spill] sm:$0xff] }
 0x4a7   :  { %4997 = vmatpush1.bf16.msra.mxu0 %v9209_v44  ;;  %5061 = vmatpush1.bf16.msra.mxu1 %v9210_v22  ;;  %v9220_v44 = vld [vmem:[#allocation55_spill] sm:$0xff]  ;;  %v9221_v22 = vld [vmem:[#allocation56_spill] sm:$0xff] }
 0x4a8   :  { %4999 = vmatprep.subr.bf16.mxu0 %v9211_v10  ;;  %5063 = vmatprep.subr.bf16.mxu1 %v9212_v12  ;;  %v9222_v10 = vld [vmem:[#allocation57_spill] sm:$0xff]  ;;  %v9223_v12 = vld [vmem:[#allocation58_spill] sm:$0xff] }
 0x4ab   :  { %5001 = vmatpush1.bf16.msra.mxu0 %v9213_v16  ;;  %5065 = vmatpush1.bf16.msra.mxu1 %v9214_v43  ;;  %v9224_v16 = vld [vmem:[#allocation59_spill] sm:$0xff]  ;;  %v9225_v43 = vld [vmem:[#allocation60_spill] sm:$0xff] }
 0x4ac   :  { %5003 = vmatprep.subr.bf16.mxu0 %v9215_v21  ;;  %5067 = vmatprep.subr.bf16.mxu1 %v9216_v45  ;;  %v9226_v21 = vld [vmem:[#allocation61_spill] sm:$0xff]  ;;  %v9227_v45 = vld [vmem:[#allocation62_spill] sm:$0xff] }
 0x4af   :  { %5005 = vmatpush1.bf16.msra.mxu0 %v9217_v50  ;;  %5069 = vmatpush1.bf16.msra.mxu1 %v9218_v60  ;;  %v9228_v50 = vld [vmem:[#allocation63_spill] sm:$0xff]  ;;  %v9229_v60 = vld [vmem:[#allocation64_spill] sm:$0xff] }
 0x4b0   :  { %5007 = vmatprep.subr.bf16.mxu0 %v9219_v1  ;;  %5071 = vmatprep.subr.bf16.mxu1 %v9220_v44  ;;  %v9230_v1 = vld [vmem:[#allocation65_spill] sm:$0xff]  ;;  %v9231_v44 = vld [vmem:[#allocation66_spill] sm:$0xff] }
 0x4b3   :  { %5009 = vmatpush1.bf16.msra.mxu0 %v9221_v22  ;;  %5073 = vmatpush1.bf16.msra.mxu1 %v9222_v10  ;;  %v9232_v22 = vld [vmem:[#allocation67_spill] sm:$0xff]  ;;  %v9233_v10 = vld [vmem:[#allocation68_spill] sm:$0xff] }
 0x4b4   :  { %5011 = vmatprep.subr.bf16.mxu0 %v9223_v12  ;;  %5075 = vmatprep.subr.bf16.mxu1 %v9224_v16  ;;  %v9234_v12 = vld [vmem:[#allocation69_spill] sm:$0xff]  ;;  %v9235_v16 = vld [vmem:[#allocation70_spill] sm:$0xff] }
 0x4b7   :  { %5013 = vmatpush1.bf16.msra.mxu0 %v9225_v43  ;;  %5077 = vmatpush1.bf16.msra.mxu1 %v9226_v21  ;;  %v9236_v43 = vld [vmem:[#allocation71_spill] sm:$0xff]  ;;  %v9237_v21 = vld [vmem:[#allocation72_spill] sm:$0xff] }
 0x4b8   :  { %5015 = vmatprep.subr.bf16.mxu0 %v9227_v45  ;;  %5079 = vmatprep.subr.bf16.mxu1 %v9228_v50  ;;  %v9238_v45 = vld [vmem:[#allocation73_spill] sm:$0xff]  ;;  %v9239_v50 = vld [vmem:[#allocation74_spill] sm:$0xff] }
 0x4bb   :  { %5017 = vmatpush1.bf16.msra.mxu0 %v9229_v60  ;;  %5081 = vmatpush1.bf16.msra.mxu1 %v9230_v1  ;;  %v9240_v60 = vld [vmem:[#allocation75_spill] sm:$0xff]  ;;  %v9241_v1 = vld [vmem:[#allocation76_spill] sm:$0xff] }
 0x4bc   :  { %5019 = vmatprep.subr.bf16.mxu0 %v9231_v44  ;;  %5083 = vmatprep.subr.bf16.mxu1 %v9232_v22  ;;  %v9242_v44 = vld [vmem:[#allocation77_spill] sm:$0xff]  ;;  %v9243_v22 = vld [vmem:[#allocation78_spill] sm:$0xff] }
 0x4bf   :  { %5021 = vmatpush1.bf16.msra.mxu0 %v9233_v10  ;;  %5085 = vmatpush1.bf16.msra.mxu1 %v9234_v12  ;;  %v9244_v10 = vld [vmem:[#allocation79_spill] sm:$0xff]  ;;  %v9245_v12 = vld [vmem:[#allocation80_spill] sm:$0xff] }
 0x4c0   :  { %5023 = vmatprep.subr.bf16.mxu0 %v9235_v16  ;;  %5087 = vmatprep.subr.bf16.mxu1 %v9236_v43  ;;  %v9246_v16 = vld [vmem:[#allocation81_spill] sm:$0xff]  ;;  %v9247_v43 = vld [vmem:[#allocation82_spill] sm:$0xff] }
 0x4c3   :  { %5025 = vmatpush1.bf16.msra.mxu0 %v9237_v21  ;;  %5089 = vmatpush1.bf16.msra.mxu1 %v9238_v45  ;;  %v9248_v21 = vld [vmem:[#allocation83_spill] sm:$0xff]  ;;  %v9249_v45 = vld [vmem:[#allocation84_spill] sm:$0xff] }
 0x4c4   :  { %5027 = vmatprep.subr.bf16.mxu0 %v9239_v50  ;;  %5091 = vmatprep.subr.bf16.mxu1 %v9240_v60  ;;  %v9250_v50 = vld [vmem:[#allocation85_spill] sm:$0xff]  ;;  %v9251_v60 = vld [vmem:[#allocation86_spill] sm:$0xff] }
 0x4c7   :  { %5029 = vmatpush1.bf16.msra.mxu0 %v9241_v1  ;;  %5093 = vmatpush1.bf16.msra.mxu1 %v9242_v44  ;;  %v9252_v1 = vld [vmem:[#allocation87_spill] sm:$0xff]  ;;  %v9253_v44 = vld [vmem:[#allocation88_spill] sm:$0xff] }
 0x4c8   :  { %5031 = vmatprep.subr.bf16.mxu0 %v9243_v22  ;;  %5095 = vmatprep.subr.bf16.mxu1 %v9244_v10  ;;  %v9254_v22 = vld [vmem:[#allocation89_spill] sm:$0xff]  ;;  %v9255_v10 = vld [vmem:[#allocation90_spill] sm:$0xff] }
 0x4cb   :  { %5033 = vmatpush1.bf16.msra.mxu0 %v9245_v12  ;;  %5097 = vmatpush1.bf16.msra.mxu1 %v9246_v16  ;;  %v9256_v12 = vld [vmem:[#allocation91_spill] sm:$0xff] }
 0x4cc   :  { %5035 = vmatprep.subr.bf16.mxu0 %v9247_v43  ;;  %5099 = vmatprep.subr.bf16.mxu1 %v9248_v21 }
 0x4cf   :  { %5037 = vmatpush1.bf16.msra.mxu0 %v9249_v45  ;;  %5101 = vmatpush1.bf16.msra.mxu1 %v9250_v50  ;;  %v1448_v45 = vld [vmem:[#allocation5 + $0xd0] sm:$0xff] }
 0x4d0   :  { %5039 = vmatprep.subr.bf16.mxu0 %v9251_v60  ;;  %5103 = vmatprep.subr.bf16.mxu1 %v9252_v1 }
 0x4d3   :  { %5041 = vmatpush1.bf16.msra.mxu0 %v9253_v44  ;;  %5105 = vmatpush1.bf16.msra.mxu1 %v9254_v22 }
 0x4d4   :  { %5107 = vmatprep.subr.bf16.mxu0 %v9255_v10  ;;  %5171 = vmatprep.subr.bf16.mxu1 %v9256_v12 }
 0x529   :  { %v1520_v16 = vpop.f32.mrb[12].mxu0  ;;  %v1591_v43 = vpop.f32.mrb[12].mxu1 }
 0x52a   :  { %v1522_v8 = vpop.f32.mrb[13].mxu0  ;;  %v1593_v21 = vpop.f32.mrb[13].mxu1  ;;  %v1738_v50 = vadd.f32 %v1520_v16, %v1446_v4  ;;  %v1740_v60 = vadd.f32 %v1591_v43, %v1448_v45  ;;  %v1450_v16 = vld [vmem:[#allocation5 + $0xe0] sm:$0xff]  ;;  %v1452_v43 = vld [vmem:[#allocation5 + $0xf0] sm:$0xff] }
 0x52b   :  { %v1739_v36 = vadd.f32 %v1522_v8, %v1447_v6  ;;  %v1741_v1 = vadd.f32 %v1593_v21, %v1449_v54  ;;  %v1451_v54 = vld [vmem:[#allocation5 + $0xe8] sm:$0xff]  ;;  %v1453_v6 = vld [vmem:[#allocation5 + $0xf8] sm:$0xff] }
 0x52c   :  { %v3924_v59 = vmul.f32 -1.442695, %v1738_v50  ;;  %v3926_v44 = vmul.f32 -1.442695, %v1740_v60 }
 0x52d   :  { %v3925_v19 = vmul.f32 -1.442695, %v1739_v36  ;;  %v3927_v22 = vmul.f32 -1.442695, %v1741_v1 }
 0x52e   :  { %6337 = vpow2.f32 %v3924_v59 }
 0x52f   :  { %6339 = vpow2.f32 %v3926_v44 }
 0x530   :  { %6341 = vpow2.f32 %v3925_v19 }
 0x531   :  { %6343 = vpow2.f32 %v3927_v22 }
 0x538   :  { %v6338_v12 = vpop.eup %6337 }
 0x539   :  { %v6340_v10 = vpop.eup %6339  ;;  %v1764_v40 = vadd.f32 1.0, %v6338_v12 }
 0x53a   :  { %v6342_v29 = vpop.eup %6341  ;;  %v1766_v63 = vadd.f32 1.0, %v6340_v10 }
 0x53b   :  { %v6344_v58 = vpop.eup %6343  ;;  %v1765_v42 = vadd.f32 1.0, %v6342_v29  ;;  %6345 = vrcp.f32 %v1764_v40 }
 0x53c   :  { %v1767_v4 = vadd.f32 1.0, %v6344_v58  ;;  %6347 = vrcp.f32 %v1766_v63 }
 0x53d   :  { %6349 = vrcp.f32 %v1765_v42 }
 0x53e   :  { %6351 = vrcp.f32 %v1767_v4 }
 0x545   :  { %v6346_v58 = vpop.eup %6345 }
 0x546   :  { %v6348_v40 = vpop.eup %6347 }
 0x547   :  { %v6350_v10 = vpop.eup %6349  ;;  %v1784_v42 = vmul.f32 %v6348_v40, %v7610_v17  ;;  %v9263_v40 = vld [vmem:[#allocation134_spill] sm:$0xff] }
 0x548   :  { %v6352_v63 = vpop.eup %6351 }
 0x549   :  { %v1785_v4 = vmul.f32 %v6352_v63, %v7612_v57  ;;  %v9265_v63 = vld [vmem:[#allocation136_spill] sm:$0xff] }
 0x569   :  { %v1662_v36 = vpop.f32.mrb[14].mxu0  ;;  %v1733_v8 = vpop.f32.mrb[14].mxu1 }
 0x56a   :  { %v1742_v59 = vadd.f32 %v1662_v36, %v1450_v16  ;;  %v1744_v19 = vadd.f32 %v1733_v8, %v1452_v43  ;;  %v1664_v44 = vpop.f32.mrb[15].mxu0  ;;  %v1735_v22 = vpop.f32.mrb[15].mxu1 }
 0x56b   :  { %v1743_v21 = vadd.f32 %v1664_v44, %v1451_v54  ;;  %v1745_v45 = vadd.f32 %v1735_v22, %v1453_v6 }
 0x56c   :  { %v3928_v12 = vmul.f32 -1.442695, %v1742_v59  ;;  %6353 = vtanh.f32 %v1744_v19 }
 0x56d   :  { %v3929_v29 = vmul.f32 -1.442695, %v1743_v21  ;;  %6355 = vtanh.f32 %v1745_v45  ;;  %v9259_v45 = vld [vmem:[#allocation130_spill] sm:$0xff] }
 0x56e   :  { %6357 = vpow2.f32 %v3928_v12  ;;  %v9260_v12 = vld [vmem:[#allocation131_spill] sm:$0xff] }
 0x56f   :  { %6359 = vpow2.f32 %v3929_v29  ;;  %v9261_v29 = vld [vmem:[#allocation132_spill] sm:$0xff] }
 0x576   :  { %v6354_v50 = vpop.eup %6353 }
 0x577   :  { %v6356_v60 = vpop.eup %6355  ;;  %v1786_v1 = vmul.f32 %v6354_v50, %v6346_v58  ;;  %v9262_v58 = vld [vmem:[#allocation133_spill] sm:$0xff] }
 0x578   :  { %v6358_v16 = vpop.eup %6357  ;;  %v1787_v43 = vmul.f32 %v6356_v60, %v6350_v10  ;;  %v9264_v10 = vld [vmem:[#allocation135_spill] sm:$0xff]  ;;  %v9266_v50 = vld [vmem:[#allocation137_spill] sm:$0xff]  ;;  %v9267_v60 = vld [vmem:[#allocation138_spill] sm:$0xff] }
 0x579   :  { %v6360_v54 = vpop.eup %6359  ;;  %v1768_v6 = vadd.f32 1.0, %v6358_v16  ;;  %v7758_v36 = vadd.f32 %v1786_v1, %v1784_v42  ;;  %v9268_v42 = vld [vmem:[#allocation139_spill] sm:$0xff]  ;;  %v9269_v1 = vld [vmem:[#allocation140_spill] sm:$0xff]  ;;  %v9270_v16 = vld [vmem:[#allocation141_spill] sm:$0xff] }
 0x57a   :  { %v1769_v8 = vadd.f32 1.0, %v6360_v54  ;;  %v7760_v59 = vadd.f32 %v1787_v43, %v1785_v4  ;;  %v9271_v4 = vld [vmem:[#allocation142_spill] sm:$0xff]  ;;  %v9272_v43 = vld [vmem:[#allocation143_spill] sm:$0xff]  ;;  %v9273_v54 = vld [vmem:[#allocation144_spill] sm:$0xff] }
 0x57b   :  { %6361 = vrcp.f32 %v1768_v6  ;;  %v9274_v6 = vld [vmem:[#allocation145_spill] sm:$0xff] }
 0x57c   :  { %6363 = vtanh.f32 %v7758_v36 }
 0x57d   :  { %6365 = vrcp.f32 %v1769_v8  ;;  %v9275_v8 = vld [vmem:[#allocation146_spill] sm:$0xff] }
 0x57e   :  { %6367 = vtanh.f32 %v7760_v59 }
 0x585   :  { %v6362_v19 = vpop.eup %6361 }
 0x586   :  { %v6364_v17 = vpop.eup %6363 }
 0x587   :  { %v6366_v44 = vpop.eup %6365  ;;  %v7766_v57 = vmul.f32 %v6364_v17, %v6362_v19  ;;  %v9276_v19 = vld [vmem:[#allocation147_spill] sm:$0xff]  ;;  %v9277_v17 = vld [vmem:[#allocation148_spill] sm:$0xff] }
 0x588   :  { %v6368_v22 = vpop.eup %6367 }
 0x589   :  { %v7764_v21 = vmul.f32 %v6368_v22, %v6366_v44  ;;  %9258 = vst [vmem:[#allocation97_spill] sm:$0xff] %v7766_v57  ;;  %v9278_v44 = vld [vmem:[#allocation149_spill] sm:$0xff]  ;;  %v9279_v22 = vld [vmem:[#allocation150_spill] sm:$0xff] }
 0x58b   :  { %9257 = vst [vmem:[#allocation96_spill] sm:$0xff] %v7764_v21  ;;  %1872 = vmatprep.mubr.f32.mxu0 %v7764_v21  ;;  %1943 = vmatprep.mubr.f32.mxu1 %v7764_v21 }
 0x58c   :  { %1873 = vmatmul.mubr.f32.vlgmr.msra.gmra.mrb[16].mxu0 %v7766_v57  ;;  %1944 = vmatmul.mubr.f32.vlgmr.msra.gmra.mrb[16].mxu1 %v7766_v57 }
 0x58d   :  { %5109 = vmatpush1.bf16.msra.mxu0 %v8988_v49  ;;  %5173 = vmatpush1.bf16.msra.mxu1 %v7057_v37 }
 0x58e   :  { %2014 = vmatprep.mubr.f32.mxu0 %v7764_v21  ;;  %2085 = vmatprep.mubr.f32.mxu1 %v7764_v21  ;;  %v9280_v21 = vld [vmem:[#allocation151_spill] sm:$0xff] }
 0x58f   :  { %5111 = vmatprep.subr.bf16.mxu0 %v8989_v20  ;;  %5175 = vmatprep.subr.bf16.mxu1 %v8990_v55 }
 0x591   :  { %5113 = vmatpush1.bf16.msra.mxu0 %v8991_v48  ;;  %5177 = vmatpush1.bf16.msra.mxu1 %v8992_v47 }
 0x592   :  { %5115 = vmatprep.subr.bf16.mxu0 %v8993_v11  ;;  %5179 = vmatprep.subr.bf16.mxu1 %v8994_v31 }
 0x595   :  { %5117 = vmatpush1.bf16.msra.mxu0 %v8995_v41  ;;  %5181 = vmatpush1.bf16.msra.mxu1 %v8996_v28 }
 0x596   :  { %5119 = vmatprep.subr.bf16.mxu0 %v9077_v32  ;;  %5183 = vmatprep.subr.bf16.mxu1 %v9078_v5 }
 0x599   :  { %5121 = vmatpush1.bf16.msra.mxu0 %v9079_v38  ;;  %5185 = vmatpush1.bf16.msra.mxu1 %v9080_v30 }
 0x59a   :  { %5123 = vmatprep.subr.bf16.mxu0 %v9081_v34  ;;  %5187 = vmatprep.subr.bf16.mxu1 %v9082_v0 }
 0x59d   :  { %5125 = vmatpush1.bf16.msra.mxu0 %v9083_v26  ;;  %5189 = vmatpush1.bf16.msra.mxu1 %v9084_v33 }
 0x59e   :  { %5127 = vmatprep.subr.bf16.mxu0 %v9085_v35  ;;  %5191 = vmatprep.subr.bf16.mxu1 %v9086_v25 }
 0x5a1   :  { %5129 = vmatpush1.bf16.msra.mxu0 %v9087_v53  ;;  %5193 = vmatpush1.bf16.msra.mxu1 %v9168_v46 }
 0x5a2   :  { %5131 = vmatprep.subr.bf16.mxu0 %v9169_v7  ;;  %5195 = vmatprep.subr.bf16.mxu1 %v9170_v3 }
 0x5a5   :  { %5133 = vmatpush1.bf16.msra.mxu0 %v9171_v2  ;;  %5197 = vmatpush1.bf16.msra.mxu1 %v9172_v13 }
 0x5a6   :  { %5135 = vmatprep.subr.bf16.mxu0 %v9173_v27  ;;  %5199 = vmatprep.subr.bf16.mxu1 %v9174_v24 }
 0x5a9   :  { %5137 = vmatpush1.bf16.msra.mxu0 %v9095_v9  ;;  %5201 = vmatpush1.bf16.msra.mxu1 %v9175_v61 }
 0x5aa   :  { %5139 = vmatprep.subr.bf16.mxu0 %v9097_v18  ;;  %5203 = vmatprep.subr.bf16.mxu1 %v9098_v23 }
 0x5ad   :  { %5141 = vmatpush1.bf16.msra.mxu0 %v9099_v14  ;;  %5205 = vmatpush1.bf16.msra.mxu1 %v9100_v56 }
 0x5ae   :  { %5143 = vmatprep.subr.bf16.mxu0 %v9101_v15  ;;  %5207 = vmatprep.subr.bf16.mxu1 %v9102_v51 }
 0x5b1   :  { %5145 = vmatpush1.bf16.msra.mxu0 %v9103_v52  ;;  %5209 = vmatpush1.bf16.msra.mxu1 %v9104_v62 }
 0x5b2   :  { %5147 = vmatprep.subr.bf16.mxu0 %v9105_v39  ;;  %5211 = vmatprep.subr.bf16.mxu1 %v9259_v45 }
 0x5b5   :  { %5149 = vmatpush1.bf16.msra.mxu0 %v9260_v12  ;;  %5213 = vmatpush1.bf16.msra.mxu1 %v9261_v29 }
 0x5b6   :  { %5151 = vmatprep.subr.bf16.mxu0 %v9262_v58  ;;  %5215 = vmatprep.subr.bf16.mxu1 %v9263_v40 }
 0x5b9   :  { %5153 = vmatpush1.bf16.msra.mxu0 %v9264_v10  ;;  %5217 = vmatpush1.bf16.msra.mxu1 %v9265_v63 }
 0x5ba   :  { %5155 = vmatprep.subr.bf16.mxu0 %v9266_v50  ;;  %5219 = vmatprep.subr.bf16.mxu1 %v9267_v60  ;;  %v1803_v60 = vld [vmem:[#allocation5 + $0x118] sm:$0xff] }
 0x5bd   :  { %5157 = vmatpush1.bf16.msra.mxu0 %v9268_v42  ;;  %5221 = vmatpush1.bf16.msra.mxu1 %v9269_v1  ;;  %v1800_v1 = vld [vmem:[#allocation5 + $0x100] sm:$0xff]  ;;  %v1801_v42 = vld [vmem:[#allocation5 + $0x108] sm:$0xff] }
 0x5be   :  { %5159 = vmatprep.subr.bf16.mxu0 %v9270_v16  ;;  %5223 = vmatprep.subr.bf16.mxu1 %v9271_v4  ;;  %v9281_v16 = vld [vmem:[#allocation152_spill] sm:$0xff]  ;;  %v9282_v4 = vld [vmem:[#allocation26_spill] sm:$0xff] }
 0x5c1   :  { %5161 = vmatpush1.bf16.msra.mxu0 %v9272_v43  ;;  %5225 = vmatpush1.bf16.msra.mxu1 %v9273_v54  ;;  %v9283_v43 = vld [vmem:[#allocation27_spill] sm:$0xff] }
 0x5c2   :  { %5163 = vmatprep.subr.bf16.mxu0 %v9274_v6  ;;  %5227 = vmatprep.subr.bf16.mxu1 %v9275_v8  ;;  %v9284_v8 = vld [vmem:[#allocation28_spill] sm:$0xff]  ;;  %v9293_v6 = vld [vmem:[#allocation37_spill] sm:$0xff] }
 0x5c5   :  { %5165 = vmatpush1.bf16.msra.mxu0 %v9276_v19  ;;  %5229 = vmatpush1.bf16.msra.mxu1 %v9277_v17  ;;  %v9285_v19 = vld [vmem:[#allocation29_spill] sm:$0xff]  ;;  %v9286_v17 = vld [vmem:[#allocation30_spill] sm:$0xff] }
 0x5c6   :  { %5167 = vmatprep.subr.bf16.mxu0 %v9278_v44  ;;  %5231 = vmatprep.subr.bf16.mxu1 %v9279_v22  ;;  %v9287_v44 = vld [vmem:[#allocation31_spill] sm:$0xff]  ;;  %v9288_v22 = vld [vmem:[#allocation32_spill] sm:$0xff] }
 0x5c9   :  { %5169 = vmatpush1.bf16.msra.mxu0 %v9280_v21  ;;  %5233 = vmatpush1.bf16.msra.mxu1 %v9281_v16  ;;  %v9289_v21 = vld [vmem:[#allocation33_spill] sm:$0xff]  ;;  %v9290_v16 = vld [vmem:[#allocation34_spill] sm:$0xff] }
 0x5ca   :  { %5235 = vmatprep.subr.bf16.mxu0 %v9282_v4  ;;  %5299 = vmatprep.subr.bf16.mxu1 %v9283_v43  ;;  %v9291_v4 = vld [vmem:[#allocation35_spill] sm:$0xff]  ;;  %v9292_v43 = vld [vmem:[#allocation36_spill] sm:$0xff] }
 0x5cc   :  { %2015 = vmatmul.mubr.f32.vlgmr.msra.gmra.mrb[18].mxu0 %v7766_v57  ;;  %2086 = vmatmul.mubr.f32.vlgmr.msra.gmra.mrb[18].mxu1 %v7766_v57  ;;  %v9294_v57 = vld [vmem:[#allocation38_spill] sm:$0xff] }
 0x5cd   :  { %5237 = vmatpush1.bf16.msra.mxu0 %v9284_v8  ;;  %5301 = vmatpush1.bf16.msra.mxu1 %v9285_v19  ;;  %v9295_v8 = vld [vmem:[#allocation39_spill] sm:$0xff]  ;;  %v9296_v19 = vld [vmem:[#allocation40_spill] sm:$0xff] }
 0x5ce   :  { %5239 = vmatprep.subr.bf16.mxu0 %v9286_v17  ;;  %5303 = vmatprep.subr.bf16.mxu1 %v9287_v44  ;;  %v9297_v17 = vld [vmem:[#allocation41_spill] sm:$0xff]  ;;  %v9298_v44 = vld [vmem:[#allocation42_spill] sm:$0xff] }
 0x5d1   :  { %5241 = vmatpush1.bf16.msra.mxu0 %v9288_v22  ;;  %5305 = vmatpush1.bf16.msra.mxu1 %v9289_v21  ;;  %v9299_v22 = vld [vmem:[#allocation43_spill] sm:$0xff]  ;;  %v9300_v21 = vld [vmem:[#allocation44_spill] sm:$0xff] }
 0x5d2   :  { %5243 = vmatprep.subr.bf16.mxu0 %v9290_v16  ;;  %5307 = vmatprep.subr.bf16.mxu1 %v9291_v4  ;;  %v9301_v16 = vld [vmem:[#allocation45_spill] sm:$0xff]  ;;  %v9302_v4 = vld [vmem:[#allocation46_spill] sm:$0xff] }
 0x5d5   :  { %5245 = vmatpush1.bf16.msra.mxu0 %v9292_v43  ;;  %5309 = vmatpush1.bf16.msra.mxu1 %v9293_v6  ;;  %v9303_v43 = vld [vmem:[#allocation47_spill] sm:$0xff]  ;;  %v9304_v6 = vld [vmem:[#allocation48_spill] sm:$0xff] }
 0x5d6   :  { %5247 = vmatprep.subr.bf16.mxu0 %v9294_v57  ;;  %5311 = vmatprep.subr.bf16.mxu1 %v9295_v8  ;;  %v9305_v57 = vld [vmem:[#allocation49_spill] sm:$0xff]  ;;  %v9306_v8 = vld [vmem:[#allocation50_spill] sm:$0xff] }
 0x5d9   :  { %5249 = vmatpush1.bf16.msra.mxu0 %v9296_v19  ;;  %5313 = vmatpush1.bf16.msra.mxu1 %v9297_v17  ;;  %v9307_v19 = vld [vmem:[#allocation51_spill] sm:$0xff]  ;;  %v9308_v17 = vld [vmem:[#allocation52_spill] sm:$0xff] }
 0x5da   :  { %5251 = vmatprep.subr.bf16.mxu0 %v9298_v44  ;;  %5315 = vmatprep.subr.bf16.mxu1 %v9299_v22  ;;  %v9309_v44 = vld [vmem:[#allocation53_spill] sm:$0xff]  ;;  %v9310_v22 = vld [vmem:[#allocation54_spill] sm:$0xff] }
 0x5dd   :  { %5253 = vmatpush1.bf16.msra.mxu0 %v9300_v21  ;;  %5317 = vmatpush1.bf16.msra.mxu1 %v9301_v16  ;;  %v9311_v21 = vld [vmem:[#allocation55_spill] sm:$0xff]  ;;  %v9312_v16 = vld [vmem:[#allocation56_spill] sm:$0xff] }
 0x5de   :  { %5255 = vmatprep.subr.bf16.mxu0 %v9302_v4  ;;  %5319 = vmatprep.subr.bf16.mxu1 %v9303_v43  ;;  %v9313_v4 = vld [vmem:[#allocation57_spill] sm:$0xff]  ;;  %v9314_v43 = vld [vmem:[#allocation58_spill] sm:$0xff] }
 0x5e1   :  { %5257 = vmatpush1.bf16.msra.mxu0 %v9304_v6  ;;  %5321 = vmatpush1.bf16.msra.mxu1 %v9305_v57  ;;  %v9315_v6 = vld [vmem:[#allocation59_spill] sm:$0xff]  ;;  %v9316_v57 = vld [vmem:[#allocation60_spill] sm:$0xff] }
 0x5e2   :  { %5259 = vmatprep.subr.bf16.mxu0 %v9306_v8  ;;  %5323 = vmatprep.subr.bf16.mxu1 %v9307_v19  ;;  %v9317_v8 = vld [vmem:[#allocation61_spill] sm:$0xff]  ;;  %v9318_v19 = vld [vmem:[#allocation62_spill] sm:$0xff] }
 0x5e5   :  { %5261 = vmatpush1.bf16.msra.mxu0 %v9308_v17  ;;  %5325 = vmatpush1.bf16.msra.mxu1 %v9309_v44  ;;  %v9319_v17 = vld [vmem:[#allocation63_spill] sm:$0xff]  ;;  %v9320_v44 = vld [vmem:[#allocation64_spill] sm:$0xff] }
 0x5e6   :  { %5263 = vmatprep.subr.bf16.mxu0 %v9310_v22  ;;  %5327 = vmatprep.subr.bf16.mxu1 %v9311_v21  ;;  %v9321_v22 = vld [vmem:[#allocation65_spill] sm:$0xff]  ;;  %v9322_v21 = vld [vmem:[#allocation66_spill] sm:$0xff] }
 0x5e9   :  { %5265 = vmatpush1.bf16.msra.mxu0 %v9312_v16  ;;  %5329 = vmatpush1.bf16.msra.mxu1 %v9313_v4  ;;  %v9323_v16 = vld [vmem:[#allocation67_spill] sm:$0xff]  ;;  %v9324_v4 = vld [vmem:[#allocation68_spill] sm:$0xff] }
 0x5ea   :  { %5267 = vmatprep.subr.bf16.mxu0 %v9314_v43  ;;  %5331 = vmatprep.subr.bf16.mxu1 %v9315_v6  ;;  %v9325_v43 = vld [vmem:[#allocation69_spill] sm:$0xff]  ;;  %v9326_v6 = vld [vmem:[#allocation70_spill] sm:$0xff] }
 0x5ed   :  { %5269 = vmatpush1.bf16.msra.mxu0 %v9316_v57  ;;  %5333 = vmatpush1.bf16.msra.mxu1 %v9317_v8  ;;  %v9327_v57 = vld [vmem:[#allocation71_spill] sm:$0xff]  ;;  %v9328_v8 = vld [vmem:[#allocation72_spill] sm:$0xff] }
 0x5ee   :  { %5271 = vmatprep.subr.bf16.mxu0 %v9318_v19  ;;  %5335 = vmatprep.subr.bf16.mxu1 %v9319_v17  ;;  %v9329_v19 = vld [vmem:[#allocation73_spill] sm:$0xff]  ;;  %v9330_v17 = vld [vmem:[#allocation74_spill] sm:$0xff] }
 0x5f1   :  { %5273 = vmatpush1.bf16.msra.mxu0 %v9320_v44  ;;  %5337 = vmatpush1.bf16.msra.mxu1 %v9321_v22  ;;  %v9331_v44 = vld [vmem:[#allocation75_spill] sm:$0xff]  ;;  %v9332_v22 = vld [vmem:[#allocation76_spill] sm:$0xff] }
 0x5f2   :  { %5275 = vmatprep.subr.bf16.mxu0 %v9322_v21  ;;  %5339 = vmatprep.subr.bf16.mxu1 %v9323_v16  ;;  %v9333_v21 = vld [vmem:[#allocation77_spill] sm:$0xff]  ;;  %v9334_v16 = vld [vmem:[#allocation78_spill] sm:$0xff] }
 0x5f5   :  { %5277 = vmatpush1.bf16.msra.mxu0 %v9324_v4  ;;  %5341 = vmatpush1.bf16.msra.mxu1 %v9325_v43  ;;  %v9335_v4 = vld [vmem:[#allocation79_spill] sm:$0xff]  ;;  %v9336_v43 = vld [vmem:[#allocation80_spill] sm:$0xff] }
 0x5f6   :  { %5279 = vmatprep.subr.bf16.mxu0 %v9326_v6  ;;  %5343 = vmatprep.subr.bf16.mxu1 %v9327_v57  ;;  %v9337_v6 = vld [vmem:[#allocation81_spill] sm:$0xff]  ;;  %v9338_v57 = vld [vmem:[#allocation82_spill] sm:$0xff] }
 0x5f9   :  { %5281 = vmatpush1.bf16.msra.mxu0 %v9328_v8  ;;  %5345 = vmatpush1.bf16.msra.mxu1 %v9329_v19  ;;  %v9339_v8 = vld [vmem:[#allocation83_spill] sm:$0xff]  ;;  %v9340_v19 = vld [vmem:[#allocation84_spill] sm:$0xff] }
 0x5fa   :  { %5283 = vmatprep.subr.bf16.mxu0 %v9330_v17  ;;  %5347 = vmatprep.subr.bf16.mxu1 %v9331_v44  ;;  %v9341_v17 = vld [vmem:[#allocation85_spill] sm:$0xff]  ;;  %v9342_v44 = vld [vmem:[#allocation86_spill] sm:$0xff] }
 0x5fd   :  { %5285 = vmatpush1.bf16.msra.mxu0 %v9332_v22  ;;  %5349 = vmatpush1.bf16.msra.mxu1 %v9333_v21  ;;  %v9343_v22 = vld [vmem:[#allocation87_spill] sm:$0xff]  ;;  %v9344_v21 = vld [vmem:[#allocation88_spill] sm:$0xff] }
 0x5fe   :  { %5287 = vmatprep.subr.bf16.mxu0 %v9334_v16  ;;  %5351 = vmatprep.subr.bf16.mxu1 %v9335_v4  ;;  %v9345_v16 = vld [vmem:[#allocation89_spill] sm:$0xff]  ;;  %v9346_v4 = vld [vmem:[#allocation90_spill] sm:$0xff] }
 0x601   :  { %5289 = vmatpush1.bf16.msra.mxu0 %v9336_v43  ;;  %5353 = vmatpush1.bf16.msra.mxu1 %v9337_v6  ;;  %v9347_v43 = vld [vmem:[#allocation91_spill] sm:$0xff] }
 0x602   :  { %5291 = vmatprep.subr.bf16.mxu0 %v9338_v57  ;;  %5355 = vmatprep.subr.bf16.mxu1 %v9339_v8 }
 0x605   :  { %5293 = vmatpush1.bf16.msra.mxu0 %v9340_v19  ;;  %5357 = vmatpush1.bf16.msra.mxu1 %v9341_v17  ;;  %v1802_v19 = vld [vmem:[#allocation5 + $0x110] sm:$0xff] }
 0x606   :  { %5295 = vmatprep.subr.bf16.mxu0 %v9342_v44  ;;  %5359 = vmatprep.subr.bf16.mxu1 %v9343_v22 }
 0x609   :  { %5297 = vmatpush1.bf16.msra.mxu0 %v9344_v21  ;;  %5361 = vmatpush1.bf16.msra.mxu1 %v9345_v16 }
 0x60a   :  { %5363 = vmatprep.subr.bf16.mxu0 %v9346_v4  ;;  %5427 = vmatprep.subr.bf16.mxu1 %v9347_v43 }
 0x65f   :  { %v1874_v6 = vpop.f32.mrb[16].mxu0  ;;  %v1945_v57 = vpop.f32.mrb[16].mxu1 }
 0x660   :  { %v1876_v54 = vpop.f32.mrb[17].mxu0  ;;  %v1947_v8 = vpop.f32.mrb[17].mxu1  ;;  %v2092_v17 = vadd.f32 %v1874_v6, %v1800_v1  ;;  %v2094_v44 = vadd.f32 %v1945_v57, %v1802_v19  ;;  %v1804_v6 = vld [vmem:[#allocation5 + $0x120] sm:$0xff]  ;;  %v1806_v57 = vld [vmem:[#allocation5 + $0x130] sm:$0xff] }
 0x661   :  { %v2093_v50 = vadd.f32 %v1876_v54, %v1801_v42  ;;  %v2095_v22 = vadd.f32 %v1947_v8, %v1803_v60  ;;  %v1805_v60 = vld [vmem:[#allocation5 + $0x128] sm:$0xff]  ;;  %v1807_v42 = vld [vmem:[#allocation5 + $0x138] sm:$0xff] }
 0x662   :  { %v3930_v63 = vmul.f32 -1.442695, %v2092_v17  ;;  %v3932_v21 = vmul.f32 -1.442695, %v2094_v44 }
 0x663   :  { %v3931_v10 = vmul.f32 -1.442695, %v2093_v50  ;;  %v3933_v16 = vmul.f32 -1.442695, %v2095_v22 }
 0x664   :  { %6369 = vpow2.f32 %v3930_v63 }
 0x665   :  { %6371 = vpow2.f32 %v3932_v21 }
 0x666   :  { %6373 = vpow2.f32 %v3931_v10 }
 0x667   :  { %6375 = vpow2.f32 %v3933_v16 }
 0x66e   :  { %v6370_v43 = vpop.eup %6369 }
 0x66f   :  { %v6372_v4 = vpop.eup %6371  ;;  %v2118_v29 = vadd.f32 1.0, %v6370_v43 }
 0x670   :  { %v6374_v40 = vpop.eup %6373  ;;  %v2120_v12 = vadd.f32 1.0, %v6372_v4 }
 0x671   :  { %v6376_v58 = vpop.eup %6375  ;;  %v2119_v45 = vadd.f32 1.0, %v6374_v40  ;;  %6377 = vrcp.f32 %v2118_v29 }
 0x672   :  { %v2121_v1 = vadd.f32 1.0, %v6376_v58  ;;  %6379 = vrcp.f32 %v2120_v12 }
 0x673   :  { %6381 = vrcp.f32 %v2119_v45 }
 0x674   :  { %6383 = vrcp.f32 %v2121_v1 }
 0x67b   :  { %v6378_v29 = vpop.eup %6377 }
 0x67c   :  { %v6380_v58 = vpop.eup %6379 }
 0x67d   :  { %v6382_v4 = vpop.eup %6381  ;;  %v2138_v45 = vmul.f32 %v6380_v58, %v7758_v36  ;;  %v9354_v58 = vld [vmem:[#allocation134_spill] sm:$0xff] }
 0x67e   :  { %v6384_v12 = vpop.eup %6383 }
 0x67f   :  { %v2139_v1 = vmul.f32 %v6384_v12, %v7760_v59  ;;  %v9356_v12 = vld [vmem:[#allocation136_spill] sm:$0xff] }
 0x69f   :  { %v2016_v50 = vpop.f32.mrb[18].mxu0  ;;  %v2087_v54 = vpop.f32.mrb[18].mxu1 }
 0x6a0   :  { %v2096_v21 = vadd.f32 %v2016_v50, %v1804_v6  ;;  %v2098_v10 = vadd.f32 %v2087_v54, %v1806_v57  ;;  %v2018_v63 = vpop.f32.mrb[19].mxu0  ;;  %v2089_v16 = vpop.f32.mrb[19].mxu1 }
 0x6a1   :  { %v2097_v8 = vadd.f32 %v2018_v63, %v1805_v60  ;;  %v2099_v19 = vadd.f32 %v2089_v16, %v1807_v42 }
 0x6a2   :  { %v3934_v43 = vmul.f32 -1.442695, %v2096_v21  ;;  %6385 = vtanh.f32 %v2098_v10 }
 0x6a3   :  { %v3935_v40 = vmul.f32 -1.442695, %v2097_v8  ;;  %6387 = vtanh.f32 %v2099_v19  ;;  %v9350_v19 = vld [vmem:[#allocation130_spill] sm:$0xff] }
 0x6a4   :  { %6389 = vpow2.f32 %v3934_v43  ;;  %v9351_v43 = vld [vmem:[#allocation131_spill] sm:$0xff] }
 0x6a5   :  { %6391 = vpow2.f32 %v3935_v40  ;;  %v9352_v40 = vld [vmem:[#allocation132_spill] sm:$0xff] }
 0x6ac   :  { %v6386_v17 = vpop.eup %6385 }
 0x6ad   :  { %v6388_v44 = vpop.eup %6387  ;;  %v2140_v22 = vmul.f32 %v6386_v17, %v6378_v29  ;;  %v9353_v29 = vld [vmem:[#allocation133_spill] sm:$0xff] }
 0x6ae   :  { %v6390_v6 = vpop.eup %6389  ;;  %v2141_v57 = vmul.f32 %v6388_v44, %v6382_v4  ;;  %v9355_v4 = vld [vmem:[#allocation135_spill] sm:$0xff]  ;;  %v9357_v17 = vld [vmem:[#allocation137_spill] sm:$0xff]  ;;  %v9358_v44 = vld [vmem:[#allocation138_spill] sm:$0xff] }
 0x6af   :  { %v6392_v60 = vpop.eup %6391  ;;  %v2122_v42 = vadd.f32 1.0, %v6390_v6  ;;  %v7906_v50 = vadd.f32 %v2140_v22, %v2138_v45  ;;  %v9359_v45 = vld [vmem:[#allocation139_spill] sm:$0xff]  ;;  %v9360_v22 = vld [vmem:[#allocation140_spill] sm:$0xff]  ;;  %v9361_v6 = vld [vmem:[#allocation141_spill] sm:$0xff] }
 0x6b0   :  { %v2123_v54 = vadd.f32 1.0, %v6392_v60  ;;  %v7908_v21 = vadd.f32 %v2141_v57, %v2139_v1  ;;  %v9362_v1 = vld [vmem:[#allocation142_spill] sm:$0xff]  ;;  %v9363_v57 = vld [vmem:[#allocation143_spill] sm:$0xff]  ;;  %v9364_v60 = vld [vmem:[#allocation144_spill] sm:$0xff] }
 0x6b1   :  { %6393 = vrcp.f32 %v2122_v42  ;;  %v9365_v42 = vld [vmem:[#allocation145_spill] sm:$0xff] }
 0x6b2   :  { %6395 = vtanh.f32 %v7906_v50 }
 0x6b3   :  { %6397 = vrcp.f32 %v2123_v54  ;;  %v9366_v54 = vld [vmem:[#allocation146_spill] sm:$0xff] }
 0x6b4   :  { %6399 = vtanh.f32 %v7908_v21 }
 0x6bb   :  { %v6394_v10 = vpop.eup %6393 }
 0x6bc   :  { %v6396_v36 = vpop.eup %6395 }
 0x6bd   :  { %v6398_v63 = vpop.eup %6397  ;;  %v7914_v59 = vmul.f32 %v6396_v36, %v6394_v10  ;;  %v9367_v10 = vld [vmem:[#allocation147_spill] sm:$0xff]  ;;  %v9368_v36 = vld [vmem:[#allocation148_spill] sm:$0xff] }
 0x6be   :  { %v6400_v16 = vpop.eup %6399 }
 0x6bf   :  { %v7912_v8 = vmul.f32 %v6400_v16, %v6398_v63  ;;  %9349 = vst [vmem:[#allocation99_spill] sm:$0xff] %v7914_v59  ;;  %v9369_v63 = vld [vmem:[#allocation149_spill] sm:$0xff]  ;;  %v9370_v16 = vld [vmem:[#allocation150_spill] sm:$0xff] }
 0x6c1   :  { %9348 = vst [vmem:[#allocation98_spill] sm:$0xff] %v7912_v8  ;;  %2226 = vmatprep.mubr.f32.mxu0 %v7912_v8  ;;  %2297 = vmatprep.mubr.f32.mxu1 %v7912_v8 }
 0x6c2   :  { %2227 = vmatmul.mubr.f32.vlgmr.msra.gmra.mrb[20].mxu0 %v7914_v59  ;;  %2298 = vmatmul.mubr.f32.vlgmr.msra.gmra.mrb[20].mxu1 %v7914_v59 }
 0x6c3   :  { %5365 = vmatpush1.bf16.msra.mxu0 %v8988_v49  ;;  %5429 = vmatpush1.bf16.msra.mxu1 %v7057_v37 }
 0x6c4   :  { %2368 = vmatprep.mubr.f32.mxu0 %v7912_v8  ;;  %2439 = vmatprep.mubr.f32.mxu1 %v7912_v8  ;;  %v9371_v8 = vld [vmem:[#allocation151_spill] sm:$0xff] }
 0x6c5   :  { %5367 = vmatprep.subr.bf16.mxu0 %v8989_v20  ;;  %5431 = vmatprep.subr.bf16.mxu1 %v8990_v55 }
 0x6c7   :  { %5369 = vmatpush1.bf16.msra.mxu0 %v8991_v48  ;;  %5433 = vmatpush1.bf16.msra.mxu1 %v8992_v47 }
 0x6c8   :  { %5371 = vmatprep.subr.bf16.mxu0 %v8993_v11  ;;  %5435 = vmatprep.subr.bf16.mxu1 %v8994_v31 }
 0x6cb   :  { %5373 = vmatpush1.bf16.msra.mxu0 %v8995_v41  ;;  %5437 = vmatpush1.bf16.msra.mxu1 %v8996_v28 }
 0x6cc   :  { %5375 = vmatprep.subr.bf16.mxu0 %v9077_v32  ;;  %5439 = vmatprep.subr.bf16.mxu1 %v9078_v5 }
 0x6cf   :  { %5377 = vmatpush1.bf16.msra.mxu0 %v9079_v38  ;;  %5441 = vmatpush1.bf16.msra.mxu1 %v9080_v30 }
 0x6d0   :  { %5379 = vmatprep.subr.bf16.mxu0 %v9081_v34  ;;  %5443 = vmatprep.subr.bf16.mxu1 %v9082_v0 }
 0x6d3   :  { %5381 = vmatpush1.bf16.msra.mxu0 %v9083_v26  ;;  %5445 = vmatpush1.bf16.msra.mxu1 %v9084_v33 }
 0x6d4   :  { %5383 = vmatprep.subr.bf16.mxu0 %v9085_v35  ;;  %5447 = vmatprep.subr.bf16.mxu1 %v9086_v25 }
 0x6d7   :  { %5385 = vmatpush1.bf16.msra.mxu0 %v9087_v53  ;;  %5449 = vmatpush1.bf16.msra.mxu1 %v9168_v46 }
 0x6d8   :  { %5387 = vmatprep.subr.bf16.mxu0 %v9169_v7  ;;  %5451 = vmatprep.subr.bf16.mxu1 %v9170_v3 }
 0x6db   :  { %5389 = vmatpush1.bf16.msra.mxu0 %v9171_v2  ;;  %5453 = vmatpush1.bf16.msra.mxu1 %v9172_v13 }
 0x6dc   :  { %5391 = vmatprep.subr.bf16.mxu0 %v9173_v27  ;;  %5455 = vmatprep.subr.bf16.mxu1 %v9174_v24 }
 0x6df   :  { %5393 = vmatpush1.bf16.msra.mxu0 %v9095_v9  ;;  %5457 = vmatpush1.bf16.msra.mxu1 %v9175_v61 }
 0x6e0   :  { %5395 = vmatprep.subr.bf16.mxu0 %v9097_v18  ;;  %5459 = vmatprep.subr.bf16.mxu1 %v9098_v23 }
 0x6e3   :  { %5397 = vmatpush1.bf16.msra.mxu0 %v9099_v14  ;;  %5461 = vmatpush1.bf16.msra.mxu1 %v9100_v56 }
 0x6e4   :  { %5399 = vmatprep.subr.bf16.mxu0 %v9101_v15  ;;  %5463 = vmatprep.subr.bf16.mxu1 %v9102_v51 }
 0x6e7   :  { %5401 = vmatpush1.bf16.msra.mxu0 %v9103_v52  ;;  %5465 = vmatpush1.bf16.msra.mxu1 %v9104_v62 }
 0x6e8   :  { %5403 = vmatprep.subr.bf16.mxu0 %v9105_v39  ;;  %5467 = vmatprep.subr.bf16.mxu1 %v9350_v19 }
 0x6eb   :  { %5405 = vmatpush1.bf16.msra.mxu0 %v9351_v43  ;;  %5469 = vmatpush1.bf16.msra.mxu1 %v9352_v40 }
 0x6ec   :  { %5407 = vmatprep.subr.bf16.mxu0 %v9353_v29  ;;  %5471 = vmatprep.subr.bf16.mxu1 %v9354_v58 }
 0x6ef   :  { %5409 = vmatpush1.bf16.msra.mxu0 %v9355_v4  ;;  %5473 = vmatpush1.bf16.msra.mxu1 %v9356_v12 }
 0x6f0   :  { %5411 = vmatprep.subr.bf16.mxu0 %v9357_v17  ;;  %5475 = vmatprep.subr.bf16.mxu1 %v9358_v44  ;;  %v2157_v44 = vld [vmem:[#allocation5 + $0x158] sm:$0xff] }
 0x6f3   :  { %5413 = vmatpush1.bf16.msra.mxu0 %v9359_v45  ;;  %5477 = vmatpush1.bf16.msra.mxu1 %v9360_v22  ;;  %v2154_v22 = vld [vmem:[#allocation5 + $0x140] sm:$0xff]  ;;  %v2155_v45 = vld [vmem:[#allocation5 + $0x148] sm:$0xff] }
 0x6f4   :  { %5415 = vmatprep.subr.bf16.mxu0 %v9361_v6  ;;  %5479 = vmatprep.subr.bf16.mxu1 %v9362_v1  ;;  %v9372_v6 = vld [vmem:[#allocation152_spill] sm:$0xff]  ;;  %v9373_v1 = vld [vmem:[#allocation26_spill] sm:$0xff] }
 0x6f7   :  { %5417 = vmatpush1.bf16.msra.mxu0 %v9363_v57  ;;  %5481 = vmatpush1.bf16.msra.mxu1 %v9364_v60  ;;  %v9374_v57 = vld [vmem:[#allocation27_spill] sm:$0xff] }
 0x6f8   :  { %5419 = vmatprep.subr.bf16.mxu0 %v9365_v42  ;;  %5483 = vmatprep.subr.bf16.mxu1 %v9366_v54  ;;  %v9375_v54 = vld [vmem:[#allocation28_spill] sm:$0xff]  ;;  %v9384_v42 = vld [vmem:[#allocation37_spill] sm:$0xff] }
 0x6fb   :  { %5421 = vmatpush1.bf16.msra.mxu0 %v9367_v10  ;;  %5485 = vmatpush1.bf16.msra.mxu1 %v9368_v36  ;;  %v9376_v10 = vld [vmem:[#allocation29_spill] sm:$0xff]  ;;  %v9377_v36 = vld [vmem:[#allocation30_spill] sm:$0xff] }
 0x6fc   :  { %5423 = vmatprep.subr.bf16.mxu0 %v9369_v63  ;;  %5487 = vmatprep.subr.bf16.mxu1 %v9370_v16  ;;  %v9378_v63 = vld [vmem:[#allocation31_spill] sm:$0xff]  ;;  %v9379_v16 = vld [vmem:[#allocation32_spill] sm:$0xff] }
 0x6ff   :  { %5425 = vmatpush1.bf16.msra.mxu0 %v9371_v8  ;;  %5489 = vmatpush1.bf16.msra.mxu1 %v9372_v6  ;;  %v9380_v8 = vld [vmem:[#allocation33_spill] sm:$0xff]  ;;  %v9381_v6 = vld [vmem:[#allocation34_spill] sm:$0xff] }
 0x700   :  { %5491 = vmatprep.subr.bf16.mxu0 %v9373_v1  ;;  %5555 = vmatprep.subr.bf16.mxu1 %v9374_v57  ;;  %v9382_v1 = vld [vmem:[#allocation35_spill] sm:$0xff]  ;;  %v9383_v57 = vld [vmem:[#allocation36_spill] sm:$0xff] }
 0x702   :  { %2369 = vmatmul.mubr.f32.vlgmr.msra.gmra.mrb[22].mxu0 %v7914_v59  ;;  %2440 = vmatmul.mubr.f32.vlgmr.msra.gmra.mrb[22].mxu1 %v7914_v59  ;;  %v9385_v59 = vld [vmem:[#allocation38_spill] sm:$0xff] }
 0x703   :  { %5493 = vmatpush1.bf16.msra.mxu0 %v9375_v54  ;;  %5557 = vmatpush1.bf16.msra.mxu1 %v9376_v10  ;;  %v9386_v54 = vld [vmem:[#allocation39_spill] sm:$0xff]  ;;  %v9387_v10 = vld [vmem:[#allocation40_spill] sm:$0xff] }
 0x704   :  { %5495 = vmatprep.subr.bf16.mxu0 %v9377_v36  ;;  %5559 = vmatprep.subr.bf16.mxu1 %v9378_v63  ;;  %v9388_v36 = vld [vmem:[#allocation41_spill] sm:$0xff]  ;;  %v9389_v63 = vld [vmem:[#allocation42_spill] sm:$0xff] }
 0x707   :  { %5497 = vmatpush1.bf16.msra.mxu0 %v9379_v16  ;;  %5561 = vmatpush1.bf16.msra.mxu1 %v9380_v8  ;;  %v9390_v16 = vld [vmem:[#allocation43_spill] sm:$0xff]  ;;  %v9391_v8 = vld [vmem:[#allocation44_spill] sm:$0xff] }
 0x708   :  { %5499 = vmatprep.subr.bf16.mxu0 %v9381_v6  ;;  %5563 = vmatprep.subr.bf16.mxu1 %v9382_v1  ;;  %v9392_v6 = vld [vmem:[#allocation45_spill] sm:$0xff]  ;;  %v9393_v1 = vld [vmem:[#allocation46_spill] sm:$0xff] }
 0x70b   :  { %5501 = vmatpush1.bf16.msra.mxu0 %v9383_v57  ;;  %5565 = vmatpush1.bf16.msra.mxu1 %v9384_v42  ;;  %v9394_v57 = vld [vmem:[#allocation47_spill] sm:$0xff]  ;;  %v9395_v42 = vld [vmem:[#allocation48_spill] sm:$0xff] }
 0x70c   :  { %5503 = vmatprep.subr.bf16.mxu0 %v9385_v59  ;;  %5567 = vmatprep.subr.bf16.mxu1 %v9386_v54  ;;  %v9396_v59 = vld [vmem:[#allocation49_spill] sm:$0xff]  ;;  %v9397_v54 = vld [vmem:[#allocation50_spill] sm:$0xff] }
 0x70f   :  { %5505 = vmatpush1.bf16.msra.mxu0 %v9387_v10  ;;  %5569 = vmatpush1.bf16.msra.mxu1 %v9388_v36  ;;  %v9398_v10 = vld [vmem:[#allocation51_spill] sm:$0xff]  ;;  %v9399_v36 = vld [vmem:[#allocation52_spill] sm:$0xff] }
 0x710   :  { %5507 = vmatprep.subr.bf16.mxu0 %v9389_v63  ;;  %5571 = vmatprep.subr.bf16.mxu1 %v9390_v16  ;;  %v9400_v63 = vld [vmem:[#allocation53_spill] sm:$0xff]  ;;  %v9401_v16 = vld [vmem:[#allocation54_spill] sm:$0xff] }
 0x713   :  { %5509 = vmatpush1.bf16.msra.mxu0 %v9391_v8  ;;  %5573 = vmatpush1.bf16.msra.mxu1 %v9392_v6  ;;  %v9402_v8 = vld [vmem:[#allocation55_spill] sm:$0xff]  ;;  %v9403_v6 = vld [vmem:[#allocation56_spill] sm:$0xff] }
 0x714   :  { %5511 = vmatprep.subr.bf16.mxu0 %v9393_v1  ;;  %5575 = vmatprep.subr.bf16.mxu1 %v9394_v57  ;;  %v9404_v1 = vld [vmem:[#allocation57_spill] sm:$0xff]  ;;  %v9405_v57 = vld [vmem:[#allocation58_spill] sm:$0xff] }
 0x717   :  { %5513 = vmatpush1.bf16.msra.mxu0 %v9395_v42  ;;  %5577 = vmatpush1.bf16.msra.mxu1 %v9396_v59  ;;  %v9406_v42 = vld [vmem:[#allocation59_spill] sm:$0xff]  ;;  %v9407_v59 = vld [vmem:[#allocation60_spill] sm:$0xff] }
 0x718   :  { %5515 = vmatprep.subr.bf16.mxu0 %v9397_v54  ;;  %5579 = vmatprep.subr.bf16.mxu1 %v9398_v10  ;;  %v9408_v54 = vld [vmem:[#allocation61_spill] sm:$0xff]  ;;  %v9409_v10 = vld [vmem:[#allocation62_spill] sm:$0xff] }
 0x71b   :  { %5517 = vmatpush1.bf16.msra.mxu0 %v9399_v36  ;;  %5581 = vmatpush1.bf16.msra.mxu1 %v9400_v63  ;;  %v9410_v36 = vld [vmem:[#allocation63_spill] sm:$0xff]  ;;  %v9411_v63 = vld [vmem:[#allocation64_spill] sm:$0xff] }
 0x71c   :  { %5519 = vmatprep.subr.bf16.mxu0 %v9401_v16  ;;  %5583 = vmatprep.subr.bf16.mxu1 %v9402_v8  ;;  %v9412_v16 = vld [vmem:[#allocation65_spill] sm:$0xff]  ;;  %v9413_v8 = vld [vmem:[#allocation66_spill] sm:$0xff] }
 0x71f   :  { %5521 = vmatpush1.bf16.msra.mxu0 %v9403_v6  ;;  %5585 = vmatpush1.bf16.msra.mxu1 %v9404_v1  ;;  %v9414_v6 = vld [vmem:[#allocation67_spill] sm:$0xff]  ;;  %v9415_v1 = vld [vmem:[#allocation68_spill] sm:$0xff] }
 0x720   :  { %5523 = vmatprep.subr.bf16.mxu0 %v9405_v57  ;;  %5587 = vmatprep.subr.bf16.mxu1 %v9406_v42  ;;  %v9416_v57 = vld [vmem:[#allocation69_spill] sm:$0xff]  ;;  %v9417_v42 = vld [vmem:[#allocation70_spill] sm:$0xff] }
 0x723   :  { %5525 = vmatpush1.bf16.msra.mxu0 %v9407_v59  ;;  %5589 = vmatpush1.bf16.msra.mxu1 %v9408_v54  ;;  %v9418_v59 = vld [vmem:[#allocation71_spill] sm:$0xff]  ;;  %v9419_v54 = vld [vmem:[#allocation72_spill] sm:$0xff] }
 0x724   :  { %5527 = vmatprep.subr.bf16.mxu0 %v9409_v10  ;;  %5591 = vmatprep.subr.bf16.mxu1 %v9410_v36  ;;  %v9420_v10 = vld [vmem:[#allocation73_spill] sm:$0xff]  ;;  %v9421_v36 = vld [vmem:[#allocation74_spill] sm:$0xff] }
 0x727   :  { %5529 = vmatpush1.bf16.msra.mxu0 %v9411_v63  ;;  %5593 = vmatpush1.bf16.msra.mxu1 %v9412_v16  ;;  %v9422_v63 = vld [vmem:[#allocation75_spill] sm:$0xff]  ;;  %v9423_v16 = vld [vmem:[#allocation76_spill] sm:$0xff] }
 0x728   :  { %5531 = vmatprep.subr.bf16.mxu0 %v9413_v8  ;;  %5595 = vmatprep.subr.bf16.mxu1 %v9414_v6  ;;  %v9424_v8 = vld [vmem:[#allocation77_spill] sm:$0xff]  ;;  %v9425_v6 = vld [vmem:[#allocation78_spill] sm:$0xff] }
 0x72b   :  { %5533 = vmatpush1.bf16.msra.mxu0 %v9415_v1  ;;  %5597 = vmatpush1.bf16.msra.mxu1 %v9416_v57  ;;  %v9426_v1 = vld [vmem:[#allocation79_spill] sm:$0xff]  ;;  %v9427_v57 = vld [vmem:[#allocation80_spill] sm:$0xff] }
 0x72c   :  { %5535 = vmatprep.subr.bf16.mxu0 %v9417_v42  ;;  %5599 = vmatprep.subr.bf16.mxu1 %v9418_v59  ;;  %v9428_v42 = vld [vmem:[#allocation81_spill] sm:$0xff]  ;;  %v9429_v59 = vld [vmem:[#allocation82_spill] sm:$0xff] }
 0x72f   :  { %5537 = vmatpush1.bf16.msra.mxu0 %v9419_v54  ;;  %5601 = vmatpush1.bf16.msra.mxu1 %v9420_v10  ;;  %v9430_v54 = vld [vmem:[#allocation83_spill] sm:$0xff]  ;;  %v9431_v10 = vld [vmem:[#allocation84_spill] sm:$0xff] }
 0x730   :  { %5539 = vmatprep.subr.bf16.mxu0 %v9421_v36  ;;  %5603 = vmatprep.subr.bf16.mxu1 %v9422_v63  ;;  %v9432_v36 = vld [vmem:[#allocation85_spill] sm:$0xff]  ;;  %v9433_v63 = vld [vmem:[#allocation86_spill] sm:$0xff] }
 0x733   :  { %5541 = vmatpush1.bf16.msra.mxu0 %v9423_v16  ;;  %5605 = vmatpush1.bf16.msra.mxu1 %v9424_v8  ;;  %v9434_v16 = vld [vmem:[#allocation87_spill] sm:$0xff]  ;;  %v9435_v8 = vld [vmem:[#allocation88_spill] sm:$0xff] }
 0x734   :  { %5543 = vmatprep.subr.bf16.mxu0 %v9425_v6  ;;  %5607 = vmatprep.subr.bf16.mxu1 %v9426_v1  ;;  %v9436_v6 = vld [vmem:[#allocation89_spill] sm:$0xff]  ;;  %v9437_v1 = vld [vmem:[#allocation90_spill] sm:$0xff] }
 0x737   :  { %5545 = vmatpush1.bf16.msra.mxu0 %v9427_v57  ;;  %5609 = vmatpush1.bf16.msra.mxu1 %v9428_v42  ;;  %v9438_v57 = vld [vmem:[#allocation91_spill] sm:$0xff] }
 0x738   :  { %5547 = vmatprep.subr.bf16.mxu0 %v9429_v59  ;;  %5611 = vmatprep.subr.bf16.mxu1 %v9430_v54 }
 0x73b   :  { %5549 = vmatpush1.bf16.msra.mxu0 %v9431_v10  ;;  %5613 = vmatpush1.bf16.msra.mxu1 %v9432_v36  ;;  %v2156_v10 = vld [vmem:[#allocation5 + $0x150] sm:$0xff] }
 0x73c   :  { %5551 = vmatprep.subr.bf16.mxu0 %v9433_v63  ;;  %5615 = vmatprep.subr.bf16.mxu1 %v9434_v16 }
 0x73f   :  { %5553 = vmatpush1.bf16.msra.mxu0 %v9435_v8  ;;  %5617 = vmatpush1.bf16.msra.mxu1 %v9436_v6 }
 0x740   :  { %5619 = vmatprep.subr.bf16.mxu0 %v9437_v1  ;;  %5683 = vmatprep.subr.bf16.mxu1 %v9438_v57 }
 0x795   :  { %v2228_v42 = vpop.f32.mrb[20].mxu0  ;;  %v2299_v59 = vpop.f32.mrb[20].mxu1 }
 0x796   :  { %v2230_v60 = vpop.f32.mrb[21].mxu0  ;;  %v2301_v54 = vpop.f32.mrb[21].mxu1  ;;  %v2446_v36 = vadd.f32 %v2228_v42, %v2154_v22  ;;  %v2448_v63 = vadd.f32 %v2299_v59, %v2156_v10  ;;  %v2158_v42 = vld [vmem:[#allocation5 + $0x160] sm:$0xff]  ;;  %v2160_v59 = vld [vmem:[#allocation5 + $0x170] sm:$0xff] }
 0x797   :  { %v2447_v17 = vadd.f32 %v2230_v60, %v2155_v45  ;;  %v2449_v16 = vadd.f32 %v2301_v54, %v2157_v44  ;;  %v2159_v44 = vld [vmem:[#allocation5 + $0x168] sm:$0xff]  ;;  %v2161_v45 = vld [vmem:[#allocation5 + $0x178] sm:$0xff] }
 0x798   :  { %v3936_v12 = vmul.f32 -1.442695, %v2446_v36  ;;  %v3938_v8 = vmul.f32 -1.442695, %v2448_v63 }
 0x799   :  { %v3937_v4 = vmul.f32 -1.442695, %v2447_v17  ;;  %v3939_v6 = vmul.f32 -1.442695, %v2449_v16 }
 0x79a   :  { %6401 = vpow2.f32 %v3936_v12 }
 0x79b   :  { %6403 = vpow2.f32 %v3938_v8 }
 0x79c   :  { %6405 = vpow2.f32 %v3937_v4 }
 0x79d   :  { %6407 = vpow2.f32 %v3939_v6 }
 0x7a4   :  { %v6402_v57 = vpop.eup %6401 }
 0x7a5   :  { %v6404_v1 = vpop.eup %6403  ;;  %v2472_v40 = vadd.f32 1.0, %v6402_v57 }
 0x7a6   :  { %v6406_v58 = vpop.eup %6405  ;;  %v2474_v43 = vadd.f32 1.0, %v6404_v1 }
 0x7a7   :  { %v6408_v29 = vpop.eup %6407  ;;  %v2473_v19 = vadd.f32 1.0, %v6406_v58  ;;  %6409 = vrcp.f32 %v2472_v40 }
 0x7a8   :  { %v2475_v22 = vadd.f32 1.0, %v6408_v29  ;;  %6411 = vrcp.f32 %v2474_v43 }
 0x7a9   :  { %6413 = vrcp.f32 %v2473_v19 }
 0x7aa   :  { %6415 = vrcp.f32 %v2475_v22 }
 0x7b1   :  { %v6410_v40 = vpop.eup %6409 }
 0x7b2   :  { %v6412_v29 = vpop.eup %6411 }
 0x7b3   :  { %v6414_v1 = vpop.eup %6413  ;;  %v2492_v19 = vmul.f32 %v6412_v29, %v7906_v50  ;;  %v9445_v29 = vld [vmem:[#allocation134_spill] sm:$0xff] }
 0x7b4   :  { %v6416_v43 = vpop.eup %6415 }
 0x7b5   :  { %v2493_v22 = vmul.f32 %v6416_v43, %v7908_v21  ;;  %v9447_v43 = vld [vmem:[#allocation136_spill] sm:$0xff] }
 0x7d5   :  { %v2370_v17 = vpop.f32.mrb[22].mxu0  ;;  %v2441_v60 = vpop.f32.mrb[22].mxu1 }
 0x7d6   :  { %v2450_v8 = vadd.f32 %v2370_v17, %v2158_v42  ;;  %v2452_v4 = vadd.f32 %v2441_v60, %v2160_v59  ;;  %v2372_v12 = vpop.f32.mrb[23].mxu0  ;;  %v2443_v6 = vpop.f32.mrb[23].mxu1 }
 0x7d7   :  { %v2451_v54 = vadd.f32 %v2372_v12, %v2159_v44  ;;  %v2453_v10 = vadd.f32 %v2443_v6, %v2161_v45 }
 0x7d8   :  { %v3940_v57 = vmul.f32 -1.442695, %v2450_v8  ;;  %6417 = vtanh.f32 %v2452_v4 }
 0x7d9   :  { %v3941_v58 = vmul.f32 -1.442695, %v2451_v54  ;;  %6419 = vtanh.f32 %v2453_v10  ;;  %v9441_v10 = vld [vmem:[#allocation130_spill] sm:$0xff] }
 0x7da   :  { %6421 = vpow2.f32 %v3940_v57  ;;  %v9442_v57 = vld [vmem:[#allocation131_spill] sm:$0xff] }
 0x7db   :  { %6423 = vpow2.f32 %v3941_v58  ;;  %v9443_v58 = vld [vmem:[#allocation132_spill] sm:$0xff] }
 0x7e2   :  { %v6418_v36 = vpop.eup %6417 }
 0x7e3   :  { %v6420_v63 = vpop.eup %6419  ;;  %v2494_v16 = vmul.f32 %v6418_v36, %v6410_v40  ;;  %v9444_v40 = vld [vmem:[#allocation133_spill] sm:$0xff] }
 0x7e4   :  { %v6422_v42 = vpop.eup %6421  ;;  %v2495_v59 = vmul.f32 %v6420_v63, %v6414_v1  ;;  %v9446_v1 = vld [vmem:[#allocation135_spill] sm:$0xff]  ;;  %v9448_v36 = vld [vmem:[#allocation137_spill] sm:$0xff]  ;;  %v9449_v63 = vld [vmem:[#allocation138_spill] sm:$0xff] }
 0x7e5   :  { %v6424_v44 = vpop.eup %6423  ;;  %v2476_v45 = vadd.f32 1.0, %v6422_v42  ;;  %v8054_v17 = vadd.f32 %v2494_v16, %v2492_v19  ;;  %v9450_v19 = vld [vmem:[#allocation139_spill] sm:$0xff]  ;;  %v9451_v16 = vld [vmem:[#allocation140_spill] sm:$0xff]  ;;  %v9452_v42 = vld [vmem:[#allocation141_spill] sm:$0xff] }
 0x7e6   :  { %v2477_v60 = vadd.f32 1.0, %v6424_v44  ;;  %v8056_v8 = vadd.f32 %v2495_v59, %v2493_v22  ;;  %v9453_v22 = vld [vmem:[#allocation142_spill] sm:$0xff]  ;;  %v9454_v59 = vld [vmem:[#allocation143_spill] sm:$0xff]  ;;  %v9455_v44 = vld [vmem:[#allocation144_spill] sm:$0xff] }
 0x7e7   :  { %6425 = vrcp.f32 %v2476_v45  ;;  %v9456_v45 = vld [vmem:[#allocation145_spill] sm:$0xff] }
 0x7e8   :  { %6427 = vtanh.f32 %v8054_v17 }
 0x7e9   :  { %6429 = vrcp.f32 %v2477_v60  ;;  %v9457_v60 = vld [vmem:[#allocation146_spill] sm:$0xff] }
 0x7ea   :  { %6431 = vtanh.f32 %v8056_v8 }
 0x7f1   :  { %v6426_v4 = vpop.eup %6425 }
 0x7f2   :  { %v6428_v50 = vpop.eup %6427 }
 0x7f3   :  { %v6430_v12 = vpop.eup %6429  ;;  %v8062_v21 = vmul.f32 %v6428_v50, %v6426_v4  ;;  %v9458_v4 = vld [vmem:[#allocation147_spill] sm:$0xff]  ;;  %v9459_v50 = vld [vmem:[#allocation148_spill] sm:$0xff] }
 0x7f4   :  { %v6432_v6 = vpop.eup %6431 }
 0x7f5   :  { %v8060_v54 = vmul.f32 %v6432_v6, %v6430_v12  ;;  %9440 = vst [vmem:[#allocation101_spill] sm:$0xff] %v8062_v21  ;;  %v9460_v12 = vld [vmem:[#allocation149_spill] sm:$0xff]  ;;  %v9461_v6 = vld [vmem:[#allocation150_spill] sm:$0xff] }
 0x7f7   :  { %9439 = vst [vmem:[#allocation100_spill] sm:$0xff] %v8060_v54  ;;  %2580 = vmatprep.mubr.f32.mxu0 %v8060_v54  ;;  %2651 = vmatprep.mubr.f32.mxu1 %v8060_v54 }
 0x7f8   :  { %2581 = vmatmul.mubr.f32.vlgmr.msra.gmra.mrb[24].mxu0 %v8062_v21  ;;  %2652 = vmatmul.mubr.f32.vlgmr.msra.gmra.mrb[24].mxu1 %v8062_v21 }
 0x7f9   :  { %5621 = vmatpush1.bf16.msra.mxu0 %v8988_v49  ;;  %5685 = vmatpush1.bf16.msra.mxu1 %v7057_v37 }
 0x7fa   :  { %2722 = vmatprep.mubr.f32.mxu0 %v8060_v54  ;;  %2793 = vmatprep.mubr.f32.mxu1 %v8060_v54  ;;  %v9462_v54 = vld [vmem:[#allocation151_spill] sm:$0xff] }
 0x7fb   :  { %5623 = vmatprep.subr.bf16.mxu0 %v8989_v20  ;;  %5687 = vmatprep.subr.bf16.mxu1 %v8990_v55 }
 0x7fd   :  { %5625 = vmatpush1.bf16.msra.mxu0 %v8991_v48  ;;  %5689 = vmatpush1.bf16.msra.mxu1 %v8992_v47 }
 0x7fe   :  { %5627 = vmatprep.subr.bf16.mxu0 %v8993_v11  ;;  %5691 = vmatprep.subr.bf16.mxu1 %v8994_v31 }
 0x801   :  { %5629 = vmatpush1.bf16.msra.mxu0 %v8995_v41  ;;  %5693 = vmatpush1.bf16.msra.mxu1 %v8996_v28 }
 0x802   :  { %5631 = vmatprep.subr.bf16.mxu0 %v9077_v32  ;;  %5695 = vmatprep.subr.bf16.mxu1 %v9078_v5 }
 0x805   :  { %5633 = vmatpush1.bf16.msra.mxu0 %v9079_v38  ;;  %5697 = vmatpush1.bf16.msra.mxu1 %v9080_v30 }
 0x806   :  { %5635 = vmatprep.subr.bf16.mxu0 %v9081_v34  ;;  %5699 = vmatprep.subr.bf16.mxu1 %v9082_v0 }
 0x809   :  { %5637 = vmatpush1.bf16.msra.mxu0 %v9083_v26  ;;  %5701 = vmatpush1.bf16.msra.mxu1 %v9084_v33 }
 0x80a   :  { %5639 = vmatprep.subr.bf16.mxu0 %v9085_v35  ;;  %5703 = vmatprep.subr.bf16.mxu1 %v9086_v25 }
 0x80d   :  { %5641 = vmatpush1.bf16.msra.mxu0 %v9087_v53  ;;  %5705 = vmatpush1.bf16.msra.mxu1 %v9168_v46 }
 0x80e   :  { %5643 = vmatprep.subr.bf16.mxu0 %v9169_v7  ;;  %5707 = vmatprep.subr.bf16.mxu1 %v9170_v3 }
 0x811   :  { %5645 = vmatpush1.bf16.msra.mxu0 %v9171_v2  ;;  %5709 = vmatpush1.bf16.msra.mxu1 %v9172_v13 }
 0x812   :  { %5647 = vmatprep.subr.bf16.mxu0 %v9173_v27  ;;  %5711 = vmatprep.subr.bf16.mxu1 %v9174_v24 }
 0x815   :  { %5649 = vmatpush1.bf16.msra.mxu0 %v9095_v9  ;;  %5713 = vmatpush1.bf16.msra.mxu1 %v9175_v61 }
 0x816   :  { %5651 = vmatprep.subr.bf16.mxu0 %v9097_v18  ;;  %5715 = vmatprep.subr.bf16.mxu1 %v9098_v23 }
 0x819   :  { %5653 = vmatpush1.bf16.msra.mxu0 %v9099_v14  ;;  %5717 = vmatpush1.bf16.msra.mxu1 %v9100_v56 }
 0x81a   :  { %5655 = vmatprep.subr.bf16.mxu0 %v9101_v15  ;;  %5719 = vmatprep.subr.bf16.mxu1 %v9102_v51 }
 0x81d   :  { %5657 = vmatpush1.bf16.msra.mxu0 %v9103_v52  ;;  %5721 = vmatpush1.bf16.msra.mxu1 %v9104_v62 }
 0x81e   :  { %5659 = vmatprep.subr.bf16.mxu0 %v9105_v39  ;;  %5723 = vmatprep.subr.bf16.mxu1 %v9441_v10 }
 0x821   :  { %5661 = vmatpush1.bf16.msra.mxu0 %v9442_v57  ;;  %5725 = vmatpush1.bf16.msra.mxu1 %v9443_v58 }
 0x822   :  { %5663 = vmatprep.subr.bf16.mxu0 %v9444_v40  ;;  %5727 = vmatprep.subr.bf16.mxu1 %v9445_v29 }
 0x825   :  { %5665 = vmatpush1.bf16.msra.mxu0 %v9446_v1  ;;  %5729 = vmatpush1.bf16.msra.mxu1 %v9447_v43 }
 0x826   :  { %5667 = vmatprep.subr.bf16.mxu0 %v9448_v36  ;;  %5731 = vmatprep.subr.bf16.mxu1 %v9449_v63  ;;  %v2511_v63 = vld [vmem:[#allocation5 + $0x198] sm:$0xff] }
 0x829   :  { %5669 = vmatpush1.bf16.msra.mxu0 %v9450_v19  ;;  %5733 = vmatpush1.bf16.msra.mxu1 %v9451_v16  ;;  %v2508_v16 = vld [vmem:[#allocation5 + $0x180] sm:$0xff]  ;;  %v2509_v19 = vld [vmem:[#allocation5 + $0x188] sm:$0xff] }
 0x82a   :  { %5671 = vmatprep.subr.bf16.mxu0 %v9452_v42  ;;  %5735 = vmatprep.subr.bf16.mxu1 %v9453_v22  ;;  %v9463_v42 = vld [vmem:[#allocation152_spill] sm:$0xff]  ;;  %v9464_v22 = vld [vmem:[#allocation26_spill] sm:$0xff] }
 0x82d   :  { %5673 = vmatpush1.bf16.msra.mxu0 %v9454_v59  ;;  %5737 = vmatpush1.bf16.msra.mxu1 %v9455_v44  ;;  %v9465_v59 = vld [vmem:[#allocation27_spill] sm:$0xff] }
 0x82e   :  { %5675 = vmatprep.subr.bf16.mxu0 %v9456_v45  ;;  %5739 = vmatprep.subr.bf16.mxu1 %v9457_v60  ;;  %v9466_v60 = vld [vmem:[#allocation28_spill] sm:$0xff]  ;;  %v9475_v45 = vld [vmem:[#allocation37_spill] sm:$0xff] }
 0x831   :  { %5677 = vmatpush1.bf16.msra.mxu0 %v9458_v4  ;;  %5741 = vmatpush1.bf16.msra.mxu1 %v9459_v50  ;;  %v9467_v4 = vld [vmem:[#allocation29_spill] sm:$0xff]  ;;  %v9468_v50 = vld [vmem:[#allocation30_spill] sm:$0xff] }
 0x832   :  { %5679 = vmatprep.subr.bf16.mxu0 %v9460_v12  ;;  %5743 = vmatprep.subr.bf16.mxu1 %v9461_v6  ;;  %v9469_v12 = vld [vmem:[#allocation31_spill] sm:$0xff]  ;;  %v9470_v6 = vld [vmem:[#allocation32_spill] sm:$0xff] }
 0x835   :  { %5681 = vmatpush1.bf16.msra.mxu0 %v9462_v54  ;;  %5745 = vmatpush1.bf16.msra.mxu1 %v9463_v42  ;;  %v9471_v54 = vld [vmem:[#allocation33_spill] sm:$0xff]  ;;  %v9472_v42 = vld [vmem:[#allocation34_spill] sm:$0xff] }
 0x836   :  { %5747 = vmatprep.subr.bf16.mxu0 %v9464_v22  ;;  %5811 = vmatprep.subr.bf16.mxu1 %v9465_v59  ;;  %v9473_v22 = vld [vmem:[#allocation35_spill] sm:$0xff]  ;;  %v9474_v59 = vld [vmem:[#allocation36_spill] sm:$0xff] }
 0x838   :  { %2723 = vmatmul.mubr.f32.vlgmr.msra.gmra.mrb[26].mxu0 %v8062_v21  ;;  %2794 = vmatmul.mubr.f32.vlgmr.msra.gmra.mrb[26].mxu1 %v8062_v21  ;;  %v9476_v21 = vld [vmem:[#allocation38_spill] sm:$0xff] }
 0x839   :  { %5749 = vmatpush1.bf16.msra.mxu0 %v9466_v60  ;;  %5813 = vmatpush1.bf16.msra.mxu1 %v9467_v4  ;;  %v9477_v60 = vld [vmem:[#allocation39_spill] sm:$0xff]  ;;  %v9478_v4 = vld [vmem:[#allocation40_spill] sm:$0xff] }
 0x83a   :  { %5751 = vmatprep.subr.bf16.mxu0 %v9468_v50  ;;  %5815 = vmatprep.subr.bf16.mxu1 %v9469_v12  ;;  %v9479_v50 = vld [vmem:[#allocation41_spill] sm:$0xff]  ;;  %v9480_v12 = vld [vmem:[#allocation42_spill] sm:$0xff] }
 0x83d   :  { %5753 = vmatpush1.bf16.msra.mxu0 %v9470_v6  ;;  %5817 = vmatpush1.bf16.msra.mxu1 %v9471_v54  ;;  %v9481_v6 = vld [vmem:[#allocation43_spill] sm:$0xff]  ;;  %v9482_v54 = vld [vmem:[#allocation44_spill] sm:$0xff] }
 0x83e   :  { %5755 = vmatprep.subr.bf16.mxu0 %v9472_v42  ;;  %5819 = vmatprep.subr.bf16.mxu1 %v9473_v22  ;;  %v9483_v42 = vld [vmem:[#allocation45_spill] sm:$0xff]  ;;  %v9484_v22 = vld [vmem:[#allocation46_spill] sm:$0xff] }
 0x841   :  { %5757 = vmatpush1.bf16.msra.mxu0 %v9474_v59  ;;  %5821 = vmatpush1.bf16.msra.mxu1 %v9475_v45  ;;  %v9485_v59 = vld [vmem:[#allocation47_spill] sm:$0xff]  ;;  %v9486_v45 = vld [vmem:[#allocation48_spill] sm:$0xff] }
 0x842   :  { %5759 = vmatprep.subr.bf16.mxu0 %v9476_v21  ;;  %5823 = vmatprep.subr.bf16.mxu1 %v9477_v60  ;;  %v9487_v21 = vld [vmem:[#allocation49_spill] sm:$0xff]  ;;  %v9488_v60 = vld [vmem:[#allocation50_spill] sm:$0xff] }
 0x845   :  { %5761 = vmatpush1.bf16.msra.mxu0 %v9478_v4  ;;  %5825 = vmatpush1.bf16.msra.mxu1 %v9479_v50  ;;  %v9489_v4 = vld [vmem:[#allocation51_spill] sm:$0xff]  ;;  %v9490_v50 = vld [vmem:[#allocation52_spill] sm:$0xff] }
 0x846   :  { %5763 = vmatprep.subr.bf16.mxu0 %v9480_v12  ;;  %5827 = vmatprep.subr.bf16.mxu1 %v9481_v6  ;;  %v9491_v12 = vld [vmem:[#allocation53_spill] sm:$0xff]  ;;  %v9492_v6 = vld [vmem:[#allocation54_spill] sm:$0xff] }
 0x849   :  { %5765 = vmatpush1.bf16.msra.mxu0 %v9482_v54  ;;  %5829 = vmatpush1.bf16.msra.mxu1 %v9483_v42  ;;  %v9493_v54 = vld [vmem:[#allocation55_spill] sm:$0xff]  ;;  %v9494_v42 = vld [vmem:[#allocation56_spill] sm:$0xff] }
 0x84a   :  { %5767 = vmatprep.subr.bf16.mxu0 %v9484_v22  ;;  %5831 = vmatprep.subr.bf16.mxu1 %v9485_v59  ;;  %v9495_v22 = vld [vmem:[#allocation57_spill] sm:$0xff]  ;;  %v9496_v59 = vld [vmem:[#allocation58_spill] sm:$0xff] }
 0x84d   :  { %5769 = vmatpush1.bf16.msra.mxu0 %v9486_v45  ;;  %5833 = vmatpush1.bf16.msra.mxu1 %v9487_v21  ;;  %v9497_v45 = vld [vmem:[#allocation59_spill] sm:$0xff]  ;;  %v9498_v21 = vld [vmem:[#allocation60_spill] sm:$0xff] }
 0x84e   :  { %5771 = vmatprep.subr.bf16.mxu0 %v9488_v60  ;;  %5835 = vmatprep.subr.bf16.mxu1 %v9489_v4  ;;  %v9499_v60 = vld [vmem:[#allocation61_spill] sm:$0xff]  ;;  %v9500_v4 = vld [vmem:[#allocation62_spill] sm:$0xff] }
 0x851   :  { %5773 = vmatpush1.bf16.msra.mxu0 %v9490_v50  ;;  %5837 = vmatpush1.bf16.msra.mxu1 %v9491_v12  ;;  %v9501_v50 = vld [vmem:[#allocation63_spill] sm:$0xff]  ;;  %v9502_v12 = vld [vmem:[#allocation64_spill] sm:$0xff] }
 0x852   :  { %5775 = vmatprep.subr.bf16.mxu0 %v9492_v6  ;;  %5839 = vmatprep.subr.bf16.mxu1 %v9493_v54  ;;  %v9503_v6 = vld [vmem:[#allocation65_spill] sm:$0xff]  ;;  %v9504_v54 = vld [vmem:[#allocation66_spill] sm:$0xff] }
 0x855   :  { %5777 = vmatpush1.bf16.msra.mxu0 %v9494_v42  ;;  %5841 = vmatpush1.bf16.msra.mxu1 %v9495_v22  ;;  %v9505_v42 = vld [vmem:[#allocation67_spill] sm:$0xff]  ;;  %v9506_v22 = vld [vmem:[#allocation68_spill] sm:$0xff] }
 0x856   :  { %5779 = vmatprep.subr.bf16.mxu0 %v9496_v59  ;;  %5843 = vmatprep.subr.bf16.mxu1 %v9497_v45  ;;  %v9507_v59 = vld [vmem:[#allocation69_spill] sm:$0xff]  ;;  %v9508_v45 = vld [vmem:[#allocation70_spill] sm:$0xff] }
 0x859   :  { %5781 = vmatpush1.bf16.msra.mxu0 %v9498_v21  ;;  %5845 = vmatpush1.bf16.msra.mxu1 %v9499_v60  ;;  %v9509_v21 = vld [vmem:[#allocation71_spill] sm:$0xff]  ;;  %v9510_v60 = vld [vmem:[#allocation72_spill] sm:$0xff] }
 0x85a   :  { %5783 = vmatprep.subr.bf16.mxu0 %v9500_v4  ;;  %5847 = vmatprep.subr.bf16.mxu1 %v9501_v50  ;;  %v9511_v4 = vld [vmem:[#allocation73_spill] sm:$0xff]  ;;  %v9512_v50 = vld [vmem:[#allocation74_spill] sm:$0xff] }
 0x85d   :  { %5785 = vmatpush1.bf16.msra.mxu0 %v9502_v12  ;;  %5849 = vmatpush1.bf16.msra.mxu1 %v9503_v6  ;;  %v9513_v12 = vld [vmem:[#allocation75_spill] sm:$0xff]  ;;  %v9514_v6 = vld [vmem:[#allocation76_spill] sm:$0xff] }
 0x85e   :  { %5787 = vmatprep.subr.bf16.mxu0 %v9504_v54  ;;  %5851 = vmatprep.subr.bf16.mxu1 %v9505_v42  ;;  %v9515_v54 = vld [vmem:[#allocation77_spill] sm:$0xff]  ;;  %v9516_v42 = vld [vmem:[#allocation78_spill] sm:$0xff] }
 0x861   :  { %5789 = vmatpush1.bf16.msra.mxu0 %v9506_v22  ;;  %5853 = vmatpush1.bf16.msra.mxu1 %v9507_v59  ;;  %v9517_v22 = vld [vmem:[#allocation79_spill] sm:$0xff]  ;;  %v9518_v59 = vld [vmem:[#allocation80_spill] sm:$0xff] }
 0x862   :  { %5791 = vmatprep.subr.bf16.mxu0 %v9508_v45  ;;  %5855 = vmatprep.subr.bf16.mxu1 %v9509_v21  ;;  %v9519_v45 = vld [vmem:[#allocation81_spill] sm:$0xff]  ;;  %v9520_v21 = vld [vmem:[#allocation82_spill] sm:$0xff] }
 0x865   :  { %5793 = vmatpush1.bf16.msra.mxu0 %v9510_v60  ;;  %5857 = vmatpush1.bf16.msra.mxu1 %v9511_v4  ;;  %v9521_v60 = vld [vmem:[#allocation83_spill] sm:$0xff]  ;;  %v9522_v4 = vld [vmem:[#allocation84_spill] sm:$0xff] }
 0x866   :  { %5795 = vmatprep.subr.bf16.mxu0 %v9512_v50  ;;  %5859 = vmatprep.subr.bf16.mxu1 %v9513_v12  ;;  %v9523_v50 = vld [vmem:[#allocation85_spill] sm:$0xff]  ;;  %v9524_v12 = vld [vmem:[#allocation86_spill] sm:$0xff] }
 0x869   :  { %5797 = vmatpush1.bf16.msra.mxu0 %v9514_v6  ;;  %5861 = vmatpush1.bf16.msra.mxu1 %v9515_v54  ;;  %v9525_v6 = vld [vmem:[#allocation87_spill] sm:$0xff]  ;;  %v9526_v54 = vld [vmem:[#allocation88_spill] sm:$0xff] }
 0x86a   :  { %5799 = vmatprep.subr.bf16.mxu0 %v9516_v42  ;;  %5863 = vmatprep.subr.bf16.mxu1 %v9517_v22  ;;  %v9527_v42 = vld [vmem:[#allocation89_spill] sm:$0xff]  ;;  %v9528_v22 = vld [vmem:[#allocation90_spill] sm:$0xff] }
 0x86d   :  { %5801 = vmatpush1.bf16.msra.mxu0 %v9518_v59  ;;  %5865 = vmatpush1.bf16.msra.mxu1 %v9519_v45  ;;  %v9529_v59 = vld [vmem:[#allocation91_spill] sm:$0xff] }
 0x86e   :  { %5803 = vmatprep.subr.bf16.mxu0 %v9520_v21  ;;  %5867 = vmatprep.subr.bf16.mxu1 %v9521_v60 }
 0x871   :  { %5805 = vmatpush1.bf16.msra.mxu0 %v9522_v4  ;;  %5869 = vmatpush1.bf16.msra.mxu1 %v9523_v50  ;;  %v2510_v4 = vld [vmem:[#allocation5 + $0x190] sm:$0xff] }
 0x872   :  { %5807 = vmatprep.subr.bf16.mxu0 %v9524_v12  ;;  %5871 = vmatprep.subr.bf16.mxu1 %v9525_v6 }
 0x875   :  { %5809 = vmatpush1.bf16.msra.mxu0 %v9526_v54  ;;  %5873 = vmatpush1.bf16.msra.mxu1 %v9527_v42 }
 0x876   :  { %5875 = vmatprep.subr.bf16.mxu0 %v9528_v22  ;;  %5939 = vmatprep.subr.bf16.mxu1 %v9529_v59 }
 0x8cb   :  { %v2582_v45 = vpop.f32.mrb[24].mxu0  ;;  %v2653_v21 = vpop.f32.mrb[24].mxu1 }
 0x8cc   :  { %v2584_v44 = vpop.f32.mrb[25].mxu0  ;;  %v2655_v60 = vpop.f32.mrb[25].mxu1  ;;  %v2800_v50 = vadd.f32 %v2582_v45, %v2508_v16  ;;  %v2802_v12 = vadd.f32 %v2653_v21, %v2510_v4  ;;  %v2512_v45 = vld [vmem:[#allocation5 + $0x1a0] sm:$0xff]  ;;  %v2514_v21 = vld [vmem:[#allocation5 + $0x1b0] sm:$0xff] }
 0x8cd   :  { %v2801_v36 = vadd.f32 %v2584_v44, %v2509_v19  ;;  %v2803_v6 = vadd.f32 %v2655_v60, %v2511_v63  ;;  %v2513_v63 = vld [vmem:[#allocation5 + $0x1a8] sm:$0xff]  ;;  %v2515_v19 = vld [vmem:[#allocation5 + $0x1b8] sm:$0xff] }
 0x8ce   :  { %v3942_v43 = vmul.f32 -1.442695, %v2800_v50  ;;  %v3944_v54 = vmul.f32 -1.442695, %v2802_v12 }
 0x8cf   :  { %v3943_v1 = vmul.f32 -1.442695, %v2801_v36  ;;  %v3945_v42 = vmul.f32 -1.442695, %v2803_v6 }
 0x8d0   :  { %6433 = vpow2.f32 %v3942_v43 }
 0x8d1   :  { %6435 = vpow2.f32 %v3944_v54 }
 0x8d2   :  { %6437 = vpow2.f32 %v3943_v1 }
 0x8d3   :  { %6439 = vpow2.f32 %v3945_v42 }
 0x8da   :  { %v6434_v22 = vpop.eup %6433 }
 0x8db   :  { %v6436_v59 = vpop.eup %6435  ;;  %v2826_v58 = vadd.f32 1.0, %v6434_v22 }
 0x8dc   :  { %v6438_v29 = vpop.eup %6437  ;;  %v2828_v57 = vadd.f32 1.0, %v6436_v59 }
 0x8dd   :  { %v6440_v40 = vpop.eup %6439  ;;  %v2827_v10 = vadd.f32 1.0, %v6438_v29  ;;  %6441 = vrcp.f32 %v2826_v58 }
 0x8de   :  { %v2829_v16 = vadd.f32 1.0, %v6440_v40  ;;  %6443 = vrcp.f32 %v2828_v57 }
 0x8df   :  { %6445 = vrcp.f32 %v2827_v10 }
 0x8e0   :  { %6447 = vrcp.f32 %v2829_v16 }
 0x8e7   :  { %v6442_v58 = vpop.eup %6441 }
 0x8e8   :  { %v6444_v40 = vpop.eup %6443 }
 0x8e9   :  { %v6446_v54 = vpop.eup %6445  ;;  %v2846_v10 = vmul.f32 %v6444_v40, %v8054_v17 }
 0x8ea   :  { %v6448_v57 = vpop.eup %6447 }
 0x8eb   :  { %v2847_v16 = vmul.f32 %v6448_v57, %v8056_v8  ;;  %v3251_v57 = vld [vmem:[#allocation13 + $0x60] sm:$0xff] }
 0x90b   :  { %v2724_v36 = vpop.f32.mrb[26].mxu0  ;;  %v2795_v44 = vpop.f32.mrb[26].mxu1 }
 0x90c   :  { %v2804_v43 = vadd.f32 %v2724_v36, %v2512_v45  ;;  %v2806_v1 = vadd.f32 %v2795_v44, %v2514_v21  ;;  %v2726_v60 = vpop.f32.mrb[27].mxu0  ;;  %v2797_v4 = vpop.f32.mrb[27].mxu1 }
 0x90d   :  { %v2805_v50 = vadd.f32 %v2726_v60, %v2513_v63  ;;  %v2807_v12 = vadd.f32 %v2797_v4, %v2515_v19 }
 0x90e   :  { %v3946_v6 = vmul.f32 -1.442695, %v2804_v43  ;;  %6449 = vtanh.f32 %v2806_v1 }
 0x90f   :  { %v3947_v29 = vmul.f32 -1.442695, %v2805_v50  ;;  %6451 = vtanh.f32 %v2807_v12  ;;  %v3247_v12 = vld [vmem:[#allocation13 + $0x40] sm:$0xff] }
 0x910   :  { %6453 = vpow2.f32 %v3946_v6  ;;  %v3249_v6 = vld [vmem:[#allocation13 + $0x50] sm:$0xff] }
 0x911   :  { %6455 = vpow2.f32 %v3947_v29  ;;  %v3252_v29 = vld [vmem:[#allocation13 + $0x68] sm:$0xff]  ;;  %v6012_v40 = vpack.c.bf16 %v3249_v6, %v3247_v12  ;;  %v3287_v12 = vld [vmem:[#allocation13 + $0x180] sm:$0xff]  ;;  %v3289_v6 = vld [vmem:[#allocation13 + $0x190] sm:$0xff] }
 0x918   :  { %v6450_v42 = vpop.eup %6449 }
 0x919   :  { %v6452_v22 = vpop.eup %6451  ;;  %v2848_v59 = vmul.f32 %v6450_v42, %v6442_v58  ;;  %v3254_v58 = vld [vmem:[#allocation13 + $0x78] sm:$0xff]  ;;  %v3253_v42 = vld [vmem:[#allocation13 + $0x70] sm:$0xff] }
 0x91a   :  { %v6454_v45 = vpop.eup %6453  ;;  %v2849_v21 = vmul.f32 %v6452_v22, %v6446_v54  ;;  %v6014_v54 = vpack.c.bf16 %v3254_v58, %v3252_v29  ;;  %v3256_v22 = vld [vmem:[#allocation13 + $0x88] sm:$0xff]  ;;  %v3294_v58 = vld [vmem:[#allocation13 + $0x1b8] sm:$0xff] }
 0x91b   :  { %v6456_v63 = vpop.eup %6455  ;;  %v2830_v19 = vadd.f32 1.0, %v6454_v45  ;;  %v8202_v36 = vadd.f32 %v2848_v59, %v2846_v10  ;;  %v3258_v10 = vld [vmem:[#allocation13 + $0x98] sm:$0xff]  ;;  %v6016_v59 = vpack.c.bf16 %v3253_v42, %v3251_v57  ;;  %v3292_v29 = vld [vmem:[#allocation13 + $0x1a8] sm:$0xff]  ;;  %v3291_v57 = vld [vmem:[#allocation13 + $0x1a0] sm:$0xff] }
 0x91c   :  { %v2831_v44 = vadd.f32 1.0, %v6456_v63  ;;  %v8204_v43 = vadd.f32 %v2849_v21, %v2847_v16  ;;  %v6018_v45 = vpack.c.bf16 %v3258_v10, %v3256_v22  ;;  %v3255_v16 = vld [vmem:[#allocation13 + $0x80] sm:$0xff]  ;;  %v3257_v21 = vld [vmem:[#allocation13 + $0x90] sm:$0xff]  ;;  %v3260_v63 = vld [vmem:[#allocation13 + $0xa8] sm:$0xff] }
 0x91d   :  { %6457 = vrcp.f32 %v2830_v19  ;;  %v3262_v19 = vld [vmem:[#allocation13 + $0xb8] sm:$0xff]  ;;  %v3293_v42 = vld [vmem:[#allocation13 + $0x1b0] sm:$0xff]  ;;  %v3296_v22 = vld [vmem:[#allocation13 + $0x1c8] sm:$0xff] }
 0x91e   :  { %6459 = vtanh.f32 %v8202_v36  ;;  %v3298_v10 = vld [vmem:[#allocation13 + $0x1d8] sm:$0xff] }
 0x91f   :  { %6461 = vrcp.f32 %v2831_v44  ;;  %v6020_v44 = vpack.c.bf16 %v3257_v21, %v3255_v16  ;;  %v3295_v16 = vld [vmem:[#allocation13 + $0x1c0] sm:$0xff]  ;;  %v3297_v21 = vld [vmem:[#allocation13 + $0x1d0] sm:$0xff] }
 0x920   :  { %6463 = vtanh.f32 %v8204_v43 }
 0x927   :  { %v6458_v1 = vpop.eup %6457 }
 0x928   :  { %v6460_v17 = vpop.eup %6459 }
 0x929   :  { %v6462_v60 = vpop.eup %6461  ;;  %v8210_v8 = vmul.f32 %v6460_v17, %v6458_v1  ;;  %v6022_v1 = vpack.c.bf16 %v3262_v19, %v3260_v63  ;;  %v3259_v17 = vld [vmem:[#allocation13 + $0xa0] sm:$0xff]  ;;  %v3300_v63 = vld [vmem:[#allocation13 + $0x1e8] sm:$0xff]  ;;  %v3302_v19 = vld [vmem:[#allocation13 + $0x1f8] sm:$0xff] }
 0x92a   :  { %v6464_v4 = vpop.eup %6463 }
 0x92b   :  { %v8208_v50 = vmul.f32 %v6464_v4, %v6462_v60  ;;  %v3261_v60 = vld [vmem:[#allocation13 + $0xb0] sm:$0xff]  ;;  %v3264_v4 = vld [vmem:[#allocation13 + $0xc8] sm:$0xff] }
 0x92d   :  { %2934 = vmatprep.mubr.f32.mxu0 %v8208_v50  ;;  %3005 = vmatprep.mubr.f32.mxu1 %v8208_v50 }
 0x92e   :  { %2935 = vmatmul.mubr.f32.vlgmr.msra.gmra.mrb[28].mxu0 %v8210_v8  ;;  %3006 = vmatmul.mubr.f32.vlgmr.msra.gmra.mrb[28].mxu1 %v8210_v8 }
 0x92f   :  { %5877 = vmatpush1.bf16.msra.mxu0 %v8988_v49  ;;  %5941 = vmatpush1.bf16.msra.mxu1 %v7057_v37  ;;  %v9530_v37 = vld [vmem:[#allocation130_spill] sm:$0xff]  ;;  %v9531_v49 = vld [vmem:[#allocation131_spill] sm:$0xff] }
 0x930   :  { %3076 = vmatprep.mubr.f32.mxu0 %v8208_v50  ;;  %3147 = vmatprep.mubr.f32.mxu1 %v8208_v50 }
 0x931   :  { %5879 = vmatprep.subr.bf16.mxu0 %v8989_v20  ;;  %5943 = vmatprep.subr.bf16.mxu1 %v8990_v55  ;;  %v9532_v20 = vld [vmem:[#allocation132_spill] sm:$0xff]  ;;  %v9533_v55 = vld [vmem:[#allocation133_spill] sm:$0xff] }
 0x933   :  { %5881 = vmatpush1.bf16.msra.mxu0 %v8991_v48  ;;  %5945 = vmatpush1.bf16.msra.mxu1 %v8992_v47  ;;  %v9534_v48 = vld [vmem:[#allocation134_spill] sm:$0xff]  ;;  %v9535_v47 = vld [vmem:[#allocation135_spill] sm:$0xff] }
 0x934   :  { %5883 = vmatprep.subr.bf16.mxu0 %v8993_v11  ;;  %5947 = vmatprep.subr.bf16.mxu1 %v8994_v31  ;;  %v9536_v11 = vld [vmem:[#allocation136_spill] sm:$0xff]  ;;  %v9537_v31 = vld [vmem:[#allocation137_spill] sm:$0xff] }
 0x937   :  { %5885 = vmatpush1.bf16.msra.mxu0 %v8995_v41  ;;  %5949 = vmatpush1.bf16.msra.mxu1 %v8996_v28  ;;  %v9538_v41 = vld [vmem:[#allocation138_spill] sm:$0xff]  ;;  %v9539_v28 = vld [vmem:[#allocation139_spill] sm:$0xff] }
 0x938   :  { %5887 = vmatprep.subr.bf16.mxu0 %v9077_v32  ;;  %5951 = vmatprep.subr.bf16.mxu1 %v9078_v5  ;;  %v9541_v32 = vld [vmem:[#allocation141_spill] sm:$0xff]  ;;  %v9542_v5 = vld [vmem:[#allocation142_spill] sm:$0xff] }
 0x93b   :  { %5889 = vmatpush1.bf16.msra.mxu0 %v9079_v38  ;;  %5953 = vmatpush1.bf16.msra.mxu1 %v9080_v30  ;;  %v9543_v38 = vld [vmem:[#allocation143_spill] sm:$0xff]  ;;  %v9544_v30 = vld [vmem:[#allocation144_spill] sm:$0xff] }
 0x93c   :  { %5891 = vmatprep.subr.bf16.mxu0 %v9081_v34  ;;  %5955 = vmatprep.subr.bf16.mxu1 %v9082_v0  ;;  %v9545_v34 = vld [vmem:[#allocation145_spill] sm:$0xff]  ;;  %v9546_v0 = vld [vmem:[#allocation146_spill] sm:$0xff] }
 0x93f   :  { %5893 = vmatpush1.bf16.msra.mxu0 %v9083_v26  ;;  %5957 = vmatpush1.bf16.msra.mxu1 %v9084_v33  ;;  %v3240_v26 = vld [vmem:[#allocation13 + $0x8] sm:$0xff]  ;;  %v3242_v33 = vld [vmem:[#allocation13 + $0x18] sm:$0xff] }
 0x940   :  { %5895 = vmatprep.subr.bf16.mxu0 %v9085_v35  ;;  %5959 = vmatprep.subr.bf16.mxu1 %v9086_v25  ;;  %v9547_v35 = vld [vmem:[#allocation147_spill] sm:$0xff]  ;;  %v9548_v25 = vld [vmem:[#allocation148_spill] sm:$0xff] }
 0x943   :  { %5897 = vmatpush1.bf16.msra.mxu0 %v9087_v53  ;;  %5961 = vmatpush1.bf16.msra.mxu1 %v9168_v46  ;;  %v9549_v53 = vld [vmem:[#allocation149_spill] sm:$0xff] }
 0x944   :  { %5899 = vmatprep.subr.bf16.mxu0 %v9169_v7  ;;  %5963 = vmatprep.subr.bf16.mxu1 %v9170_v3  ;;  %v3243_v7 = vld [vmem:[#allocation13 + $0x20] sm:$0xff]  ;;  %v3245_v3 = vld [vmem:[#allocation13 + $0x30] sm:$0xff] }
 0x947   :  { %5901 = vmatpush1.bf16.msra.mxu0 %v9171_v2  ;;  %5965 = vmatpush1.bf16.msra.mxu1 %v9172_v13  ;;  %v3248_v2 = vld [vmem:[#allocation13 + $0x48] sm:$0xff]  ;;  %v3250_v13 = vld [vmem:[#allocation13 + $0x58] sm:$0xff] }
 0x948   :  { %5903 = vmatprep.subr.bf16.mxu0 %v9173_v27  ;;  %5967 = vmatprep.subr.bf16.mxu1 %v9174_v24  ;;  %v9553_v27 = vld [vmem:[#allocation153_spill] sm:$0xff]  ;;  %v6008_v24 = vpack.c.bf16 %v3245_v3, %v3243_v7  ;;  %v3283_v3 = vld [vmem:[#allocation13 + $0x160] sm:$0xff] }
 0x94b   :  { %5905 = vmatpush1.bf16.msra.mxu0 %v9095_v9  ;;  %5969 = vmatpush1.bf16.msra.mxu1 %v9175_v61  ;;  %v9552_v9 = vld [vmem:[#allocation152_spill] sm:$0xff]  ;;  %v6010_v61 = vpack.c.bf16 %v3250_v13, %v3248_v2  ;;  %v3288_v13 = vld [vmem:[#allocation13 + $0x188] sm:$0xff] }
 0x94c   :  { %5907 = vmatprep.subr.bf16.mxu0 %v9097_v18  ;;  %5971 = vmatprep.subr.bf16.mxu1 %v9098_v23  ;;  %v9540_v23 = vld [vmem:[#allocation140_spill] sm:$0xff] }
 0x94d   :  { %v3285_v2 = vld [vmem:[#allocation13 + $0x170] sm:$0xff] }
 0x94f   :  { %5909 = vmatpush1.bf16.msra.mxu0 %v9099_v14  ;;  %5973 = vmatpush1.bf16.msra.mxu1 %v9100_v56  ;;  %v9550_v14 = vld [vmem:[#allocation150_spill] sm:$0xff]  ;;  %v6002_v56 = vpack.c.bf16 %v3242_v33, %v3240_v26  ;;  %v3276_v26 = vld [vmem:[#allocation13 + $0x128] sm:$0xff]  ;;  %v3278_v33 = vld [vmem:[#allocation13 + $0x138] sm:$0xff] }
 0x950   :  { %5911 = vmatprep.subr.bf16.mxu0 %v9101_v15  ;;  %5975 = vmatprep.subr.bf16.mxu1 %v9102_v51  ;;  %v3239_v15 = vld [vmem:[#allocation13] sm:$0xff]  ;;  %v3241_v51 = vld [vmem:[#allocation13 + $0x10] sm:$0xff] }
 0x951   :  { %v6004_v18 = vpack.c.bf16 %v3241_v51, %v3239_v15  ;;  %v3282_v15 = vld [vmem:[#allocation13 + $0x158] sm:$0xff] }
 0x953   :  { %5913 = vmatpush1.bf16.msra.mxu0 %v9103_v52  ;;  %5977 = vmatpush1.bf16.msra.mxu1 %v9104_v62  ;;  %v3244_v52 = vld [vmem:[#allocation13 + $0x28] sm:$0xff]  ;;  %v3246_v62 = vld [vmem:[#allocation13 + $0x38] sm:$0xff] }
 0x954   :  { %5915 = vmatprep.subr.bf16.mxu0 %v9105_v39  ;;  %5979 = vmatprep.subr.bf16.mxu1 %v9530_v37  ;;  %v9551_v39 = vld [vmem:[#allocation151_spill] sm:$0xff]  ;;  %v6006_v46 = vpack.c.bf16 %v3246_v62, %v3244_v52  ;;  %v3266_v37 = vld [vmem:[#allocation13 + $0xd8] sm:$0xff]  ;;  %v3279_v62 = vld [vmem:[#allocation13 + $0x140] sm:$0xff] }
 0x957   :  { %5917 = vmatpush1.bf16.msra.mxu0 %v9531_v49  ;;  %5981 = vmatpush1.bf16.msra.mxu1 %v9532_v20  ;;  %v6024_v49 = vpack.c.bf16 %v3261_v60, %v3259_v17  ;;  %v6026_v20 = vpack.c.bf16 %v3266_v37, %v3264_v4  ;;  %v3299_v17 = vld [vmem:[#allocation13 + $0x1e0] sm:$0xff]  ;;  %v3301_v60 = vld [vmem:[#allocation13 + $0x1f0] sm:$0xff] }
 0x958   :  { %5919 = vmatprep.subr.bf16.mxu0 %v9533_v55  ;;  %5983 = vmatprep.subr.bf16.mxu1 %v9534_v48  ;;  %v3263_v55 = vld [vmem:[#allocation13 + $0xc0] sm:$0xff]  ;;  %v3265_v48 = vld [vmem:[#allocation13 + $0xd0] sm:$0xff]  ;;  %v6064_v4 = vpack.c.bf16 %v3301_v60, %v3299_v17  ;;  %v3481_v60 = vld [vmem:[#allocation14 + $0x128] sm:$0xff] }
 0x959   :  { %v9554_v37 = vld [vmem:[#allocation154_spill] sm:$0xff] }
 0x95b   :  { %5921 = vmatpush1.bf16.msra.mxu0 %v9535_v47  ;;  %5985 = vmatpush1.bf16.msra.mxu1 %v9536_v11  ;;  %v3268_v47 = vld [vmem:[#allocation13 + $0xe8] sm:$0xff]  ;;  %v3270_v11 = vld [vmem:[#allocation13 + $0xf8] sm:$0xff] }
 0x95c   :  { %5923 = vmatprep.subr.bf16.mxu0 %v9537_v31  ;;  %5987 = vmatprep.subr.bf16.mxu1 %v9538_v41  ;;  %v6028_v31 = vpack.c.bf16 %v3265_v48, %v3263_v55  ;;  %v6030_v41 = vpack.c.bf16 %v3270_v11, %v3268_v47  ;;  %v9557_v55 = vld [vmem:[#allocation94_spill] sm:$0xff]  ;;  %v9558_v48 = vld [vmem:[#allocation95_spill] sm:$0xff]  ;;  %v9559_v47 = vld [vmem:[#allocation96_spill] sm:$0xff] }
 0x95d   :  { %v9560_v11 = vld [vmem:[#allocation97_spill] sm:$0xff] }
 0x95f   :  { %5925 = vmatpush1.bf16.msra.mxu0 %v9539_v28  ;;  %5989 = vmatpush1.bf16.msra.mxu1 %v9540_v23  ;;  %v3267_v28 = vld [vmem:[#allocation13 + $0xe0] sm:$0xff]  ;;  %v3269_v23 = vld [vmem:[#allocation13 + $0xf0] sm:$0xff] }
 0x960   :  { %5927 = vmatprep.subr.bf16.mxu0 %v9541_v32  ;;  %5991 = vmatprep.subr.bf16.mxu1 %v9542_v5  ;;  %v3272_v32 = vld [vmem:[#allocation13 + $0x108] sm:$0xff]  ;;  %v3274_v5 = vld [vmem:[#allocation13 + $0x118] sm:$0xff] }
 0x963   :  { %5929 = vmatpush1.bf16.msra.mxu0 %v9543_v38  ;;  %5993 = vmatpush1.bf16.msra.mxu1 %v9544_v30  ;;  %v6032_v38 = vpack.c.bf16 %v3269_v23, %v3267_v28  ;;  %v6034_v30 = vpack.c.bf16 %v3274_v5, %v3272_v32  ;;  %v9563_v28 = vld [vmem:[#allocation100_spill] sm:$0xff]  ;;  %v9564_v23 = vld [vmem:[#allocation101_spill] sm:$0xff]  ;;  %v3445_v32 = vld [vmem:[#allocation14 + $0x8] sm:$0xff] }
 0x964   :  { %5931 = vmatprep.subr.bf16.mxu0 %v9545_v34  ;;  %5995 = vmatprep.subr.bf16.mxu1 %v9546_v0  ;;  %v3271_v34 = vld [vmem:[#allocation13 + $0x100] sm:$0xff]  ;;  %v3273_v0 = vld [vmem:[#allocation13 + $0x110] sm:$0xff]  ;;  %v3449_v5 = vld [vmem:[#allocation14 + $0x28] sm:$0xff] }
 0x967   :  { %5933 = vmatpush1.bf16.msra.mxu0 %v9547_v35  ;;  %5997 = vmatpush1.bf16.msra.mxu1 %v9548_v25  ;;  %v6036_v35 = vpack.c.bf16 %v3273_v0, %v3271_v34  ;;  %v6038_v25 = vpack.c.bf16 %v3278_v33, %v3276_v26  ;;  %v3451_v34 = vld [vmem:[#allocation14 + $0x38] sm:$0xff]  ;;  %v3444_v0 = vld [vmem:[#allocation14] sm:$0xff] }
 0x968   :  { %5935 = vmatprep.subr.bf16.mxu0 %v9549_v53  ;;  %5999 = vmatprep.subr.bf16.mxu1 %v9550_v14  ;;  %v3275_v53 = vld [vmem:[#allocation13 + $0x120] sm:$0xff]  ;;  %v3277_v14 = vld [vmem:[#allocation13 + $0x130] sm:$0xff] }
 0x969   :  { %v6040_v51 = vpack.c.bf16 %v3277_v14, %v3275_v53  ;;  %v3448_v26 = vld [vmem:[#allocation14 + $0x20] sm:$0xff]  ;;  %v3450_v53 = vld [vmem:[#allocation14 + $0x30] sm:$0xff] }
 0x96b   :  { %5937 = vmatpush1.bf16.msra.mxu0 %v9551_v39  ;;  %6001 = vmatpush1.bf16.msra.mxu1 %v9552_v9  ;;  %v3281_v39 = vld [vmem:[#allocation13 + $0x150] sm:$0xff]  ;;  %v3284_v9 = vld [vmem:[#allocation13 + $0x168] sm:$0xff] }
 0x96c   :  { %6003 = vmatprep.subr.bf16.mxu0 %v6002_v56  ;;  %v3280_v56 = vld [vmem:[#allocation13 + $0x148] sm:$0xff] }
 0x96d   :  { %v6042_v52 = vpack.c.bf16 %v3282_v15, %v3280_v56  ;;  %v3455_v56 = vld [vmem:[#allocation14 + $0x58] sm:$0xff] }
 0x96e   :  { %3077 = vmatmul.mubr.f32.vlgmr.msra.gmra.mrb[30].mxu0 %v8210_v8  ;;  %3148 = vmatmul.mubr.f32.vlgmr.msra.gmra.mrb[30].mxu1 %v8210_v8 }
 0x96f   :  { %6005 = vmatpush1.bf16.msra.mxu0 %v6004_v18  ;;  %3379 = vmatprep.mubr.f32.mxu0 %v9553_v27  ;;  %v3286_v18 = vld [vmem:[#allocation13 + $0x178] sm:$0xff] }
 0x970   :  { %6007 = vmatprep.subr.bf16.mxu0 %v6006_v46  ;;  %v6044_v46 = vpack.c.bf16 %v3281_v39, %v3279_v62  ;;  %v6046_v7 = vpack.c.bf16 %v3286_v18, %v3284_v9  ;;  %v3290_v27 = vld [vmem:[#allocation13 + $0x198] sm:$0xff]  ;;  %v3456_v62 = vld [vmem:[#allocation14 + $0x60] sm:$0xff]  ;;  %v3454_v18 = vld [vmem:[#allocation14 + $0x50] sm:$0xff] }
 0x973   :  { %6009 = vmatpush1.bf16.msra.mxu0 %v6008_v24  ;;  %v6048_v24 = vpack.c.bf16 %v3285_v2, %v3283_v3  ;;  %v3461_v3 = vld [vmem:[#allocation14 + $0x88] sm:$0xff] }
 0x974   :  { %6011 = vmatprep.subr.bf16.mxu0 %v6010_v61  ;;  %v6050_v61 = vpack.c.bf16 %v3290_v27, %v3288_v13  ;;  %v3465_v2 = vld [vmem:[#allocation14 + $0xa8] sm:$0xff]  ;;  %v3463_v13 = vld [vmem:[#allocation14 + $0x98] sm:$0xff] }
 0x975   :  { %v6074_v27 = vpack.c.bf16 %v3465_v2, %v3461_v3  ;;  %v3498_v3 = vld [vmem:[#allocation14 + $0x1b0] sm:$0xff] }
 0x977   :  { %6013 = vmatpush1.bf16.msra.mxu0 %v6012_v40  ;;  %v6052_v40 = vpack.c.bf16 %v3289_v6, %v3287_v12  ;;  %v3464_v12 = vld [vmem:[#allocation14 + $0xa0] sm:$0xff] }
 0x978   :  { %6015 = vmatprep.subr.bf16.mxu0 %v6014_v54  ;;  %v6054_v54 = vpack.c.bf16 %v3294_v58, %v3292_v29  ;;  %v3462_v58 = vld [vmem:[#allocation14 + $0x90] sm:$0xff] }
 0x97b   :  { %6017 = vmatpush1.bf16.msra.mxu0 %v6016_v59  ;;  %v6056_v59 = vpack.c.bf16 %v3293_v42, %v3291_v57  ;;  %v3469_v57 = vld [vmem:[#allocation14 + $0xc8] sm:$0xff] }
 0x97c   :  { %6019 = vmatprep.subr.bf16.mxu0 %v6018_v45  ;;  %v6058_v45 = vpack.c.bf16 %v3298_v10, %v3296_v22  ;;  %v3473_v42 = vld [vmem:[#allocation14 + $0xe8] sm:$0xff]  ;;  %v3471_v22 = vld [vmem:[#allocation14 + $0xd8] sm:$0xff] }
 0x97d   :  { %v6078_v10 = vpack.c.bf16 %v3473_v42, %v3469_v57  ;;  %v3502_v42 = vld [vmem:[#allocation14 + $0x1d0] sm:$0xff] }
 0x97f   :  { %6021 = vmatpush1.bf16.msra.mxu0 %v6020_v44  ;;  %v6060_v44 = vpack.c.bf16 %v3297_v21, %v3295_v16  ;;  %v3472_v16 = vld [vmem:[#allocation14 + $0xe0] sm:$0xff] }
 0x980   :  { %6023 = vmatprep.subr.bf16.mxu0 %v6022_v1  ;;  %v6062_v1 = vpack.c.bf16 %v3302_v19, %v3300_v63  ;;  %v3470_v19 = vld [vmem:[#allocation14 + $0xd0] sm:$0xff] }
 0x983   :  { %6025 = vmatpush1.bf16.msra.mxu0 %v6024_v49  ;;  %v9555_v49 = vld [vmem:[#allocation92_spill] sm:$0xff] }
 0x984   :  { %6027 = vmatprep.subr.bf16.mxu0 %v6026_v20  ;;  %v9556_v20 = vld [vmem:[#allocation93_spill] sm:$0xff] }
 0x987   :  { %6029 = vmatpush1.bf16.msra.mxu0 %v6028_v31  ;;  %v9561_v31 = vld [vmem:[#allocation98_spill] sm:$0xff] }
 0x988   :  { %6031 = vmatprep.subr.bf16.mxu0 %v6030_v41  ;;  %v9562_v41 = vld [vmem:[#allocation99_spill] sm:$0xff] }
 0x98b   :  { %6033 = vmatpush1.bf16.msra.mxu0 %v6032_v38  ;;  %v3447_v38 = vld [vmem:[#allocation14 + $0x18] sm:$0xff] }
 0x98c   :  { %6035 = vmatprep.subr.bf16.mxu0 %v6034_v30  ;;  %v6066_v30 = vpack.c.bf16 %v3449_v5, %v3445_v32  ;;  %v8296_v33 = vpack.c.bf16 %v3451_v34, %v3447_v38  ;;  %v3487_v5 = vld [vmem:[#allocation14 + $0x158] sm:$0xff] }
 0x98d   :  { %v3491_v38 = vld [vmem:[#allocation14 + $0x178] sm:$0xff] }
 0x98e   :  { %6067 = vmatprep.subr.bf16.mxu1 %v6066_v30  ;;  %v3484_v30 = vld [vmem:[#allocation14 + $0x140] sm:$0xff]  ;;  %v8325_v34 = vpack.c.bf16 %v3491_v38, %v3487_v5  ;;  %v3518_v38 = vld [vmem:[#allocation14 + $0x250] sm:$0xff] }
 0x98f   :  { %6037 = vmatpush1.bf16.msra.mxu0 %v6036_v35  ;;  %v6068_v35 = vpack.c.bf16 %v3448_v26, %v3444_v0  ;;  %v3488_v0 = vld [vmem:[#allocation14 + $0x160] sm:$0xff]  ;;  %v3486_v26 = vld [vmem:[#allocation14 + $0x150] sm:$0xff] }
 0x990   :  { %6039 = vmatprep.subr.bf16.mxu0 %v6038_v25  ;;  %v3446_v25 = vld [vmem:[#allocation14 + $0x10] sm:$0xff]  ;;  %v3520_v5 = vld [vmem:[#allocation14 + $0x260] sm:$0xff] }
 0x991   :  { %v8298_v14 = vpack.c.bf16 %v3450_v53, %v3446_v25  ;;  %6069 = vmatpush1.bf16.msra.mxu1 %v6068_v35  ;;  %v3490_v35 = vld [vmem:[#allocation14 + $0x170] sm:$0xff]  ;;  %v6088_v25 = vpack.c.bf16 %v3488_v0, %v3484_v30  ;;  %v3493_v53 = vld [vmem:[#allocation14 + $0x188] sm:$0xff] }
 0x992   :  { %v3522_v30 = vld [vmem:[#allocation14 + $0x270] sm:$0xff] }
 0x993   :  { %6041 = vmatpush1.bf16.msra.mxu0 %v6040_v51  ;;  %v3459_v51 = vld [vmem:[#allocation14 + $0x78] sm:$0xff] }
 0x994   :  { %6043 = vmatprep.subr.bf16.mxu0 %v6042_v52  ;;  %v3452_v52 = vld [vmem:[#allocation14 + $0x40] sm:$0xff]  ;;  %v8302_v39 = vpack.c.bf16 %v3459_v51, %v3455_v56  ;;  %v8328_v56 = vpack.c.bf16 %v3490_v35, %v3486_v26  ;;  %v3499_v51 = vld [vmem:[#allocation14 + $0x1b8] sm:$0xff]  ;;  %v3525_v26 = vld [vmem:[#allocation14 + $0x288] sm:$0xff] }
 0x995   :  { %v6072_v9 = vpack.c.bf16 %v3456_v62, %v3452_v52  ;;  %v3492_v62 = vld [vmem:[#allocation14 + $0x180] sm:$0xff]  ;;  %v3529_v35 = vld [vmem:[#allocation14 + $0x2a8] sm:$0xff] }
 0x997   :  { %6045 = vmatpush1.bf16.msra.mxu0 %v6044_v46  ;;  %v3458_v46 = vld [vmem:[#allocation14 + $0x70] sm:$0xff] }
 0x998   :  { %6047 = vmatprep.subr.bf16.mxu0 %v6046_v7  ;;  %v8304_v7 = vpack.c.bf16 %v3458_v46, %v3454_v18  ;;  %v3494_v18 = vld [vmem:[#allocation14 + $0x190] sm:$0xff] }
 0x999   :  { %v8335_v2 = vpack.c.bf16 %v3498_v3, %v3494_v18  ;;  %v3530_v18 = vld [vmem:[#allocation14 + $0x2b0] sm:$0xff]  ;;  %v3537_v3 = vld [vmem:[#allocation14 + $0x2e8] sm:$0xff] }
 0x99b   :  { %6049 = vmatpush1.bf16.msra.mxu0 %v6048_v24  ;;  %v3467_v24 = vld [vmem:[#allocation14 + $0xb8] sm:$0xff] }
 0x99c   :  { %6051 = vmatprep.subr.bf16.mxu0 %v6050_v61  ;;  %v3460_v61 = vld [vmem:[#allocation14 + $0x80] sm:$0xff]  ;;  %v8308_v6 = vpack.c.bf16 %v3467_v24, %v3463_v13  ;;  %v3501_v13 = vld [vmem:[#allocation14 + $0x1c8] sm:$0xff]  ;;  %v3503_v24 = vld [vmem:[#allocation14 + $0x1d8] sm:$0xff] }
 0x99d   :  { %v6076_v29 = vpack.c.bf16 %v3464_v12, %v3460_v61  ;;  %v3507_v12 = vld [vmem:[#allocation14 + $0x1f8] sm:$0xff] }
 0x99f   :  { %6053 = vmatpush1.bf16.msra.mxu0 %v6052_v40  ;;  %v3466_v40 = vld [vmem:[#allocation14 + $0xb0] sm:$0xff] }
 0x9a0   :  { %6055 = vmatprep.subr.bf16.mxu0 %v6054_v54  ;;  %v8310_v54 = vpack.c.bf16 %v3466_v40, %v3462_v58  ;;  %v3504_v58 = vld [vmem:[#allocation14 + $0x1e0] sm:$0xff]  ;;  %v8338_v40 = vpack.c.bf16 %v3507_v12, %v3503_v24 }
 0x9a3   :  { %6057 = vmatpush1.bf16.msra.mxu0 %v6056_v59  ;;  %v3475_v59 = vld [vmem:[#allocation14 + $0xf8] sm:$0xff] }
 0x9a4   :  { %6059 = vmatprep.subr.bf16.mxu0 %v6058_v45  ;;  %v3468_v45 = vld [vmem:[#allocation14 + $0xc0] sm:$0xff]  ;;  %v8314_v21 = vpack.c.bf16 %v3475_v59, %v3471_v22  ;;  %v3506_v22 = vld [vmem:[#allocation14 + $0x1f0] sm:$0xff] }
 0x9a5   :  { %v6080_v63 = vpack.c.bf16 %v3472_v16, %v3468_v45  ;;  %v8340_v59 = vpack.c.bf16 %v3506_v22, %v3502_v42  ;;  %v3513_v45 = vld [vmem:[#allocation14 + $0x228] sm:$0xff]  ;;  %v3511_v16 = vld [vmem:[#allocation14 + $0x218] sm:$0xff]  ;;  %v3538_v22 = vld [vmem:[#allocation14 + $0x2f0] sm:$0xff] }
 0x9a7   :  { %6061 = vmatpush1.bf16.msra.mxu0 %v6060_v44  ;;  %v3474_v44 = vld [vmem:[#allocation14 + $0xf0] sm:$0xff] }
 0x9a8   :  { %6063 = vmatprep.subr.bf16.mxu0 %v6062_v1  ;;  %v3477_v1 = vld [vmem:[#allocation14 + $0x108] sm:$0xff]  ;;  %v8316_v17 = vpack.c.bf16 %v3474_v44, %v3470_v19 }
 0x9ab   :  { %6065 = vmatpush1.bf16.msra.mxu0 %v6064_v4  ;;  %v3479_v4 = vld [vmem:[#allocation14 + $0x118] sm:$0xff] }
 0x9ac   :  { %6131 = vmatprep.subr.bf16.mxu0 %v8296_v33 }
 0x9ae   :  { %3380 = vmatmul.mubr.f32.vlgmr.msra.gmra.mrb[32].mxu0 %v9554_v37  ;;  %v3483_v37 = vld [vmem:[#allocation14 + $0x138] sm:$0xff] }
 0x9af   :  { %3385 = vmatprep.mubr.f32.mxu0 %v9555_v49  ;;  %6133 = vmatpush1.bf16.msra.mxu0 %v8298_v14  ;;  %v6082_v49 = vpack.c.bf16 %v3481_v60, %v3477_v1  ;;  %v3508_v1 = vld [vmem:[#allocation14 + $0x200] sm:$0xff] }
 0x9b0   :  { %6135 = vmatprep.subr.bf16.mxu0 %v8302_v39  ;;  %v3512_v60 = vld [vmem:[#allocation14 + $0x220] sm:$0xff] }
 0x9b2   :  { %3386 = vmatmul.mubr.f32.gmra.mrb[34].mxu0 %v9556_v20  ;;  %v8319_v20 = vpack.c.bf16 %v3483_v37, %v3479_v4  ;;  %v3510_v4 = vld [vmem:[#allocation14 + $0x210] sm:$0xff]  ;;  %v6100_v37 = vpack.c.bf16 %v3512_v60, %v3508_v1 }
 0x9b3   :  { %3391 = vmatprep.mubr.f32.mxu0 %v9557_v55  ;;  %6137 = vmatpush1.bf16.msra.mxu0 %v8304_v7  ;;  %v3476_v55 = vld [vmem:[#allocation14 + $0x100] sm:$0xff] }
 0x9b4   :  { %6139 = vmatprep.subr.bf16.mxu0 %v8308_v6 }
 0x9b6   :  { %3392 = vmatmul.mubr.f32.gmra.mrb[36].mxu0 %v9558_v48  ;;  %v3480_v48 = vld [vmem:[#allocation14 + $0x120] sm:$0xff] }
 0x9b7   :  { %3397 = vmatprep.mubr.f32.mxu0 %v9559_v47  ;;  %6141 = vmatpush1.bf16.msra.mxu0 %v8310_v54  ;;  %v3478_v47 = vld [vmem:[#allocation14 + $0x110] sm:$0xff] }
 0x9b8   :  { %6143 = vmatprep.subr.bf16.mxu0 %v8314_v21 }
 0x9ba   :  { %3398 = vmatmul.mubr.f32.gmra.mrb[38].mxu0 %v9560_v11  ;;  %v6084_v11 = vpack.c.bf16 %v3480_v48, %v3476_v55  ;;  %v3517_v55 = vld [vmem:[#allocation14 + $0x248] sm:$0xff] }
 0x9bb   :  { %3403 = vmatprep.mubr.f32.mxu0 %v9561_v31  ;;  %6145 = vmatpush1.bf16.msra.mxu0 %v8316_v17  ;;  %v3482_v31 = vld [vmem:[#allocation14 + $0x130] sm:$0xff]  ;;  %v3521_v48 = vld [vmem:[#allocation14 + $0x268] sm:$0xff] }
 0x9bc   :  { %6147 = vmatprep.subr.bf16.mxu0 %v8319_v20 }
 0x9be   :  { %3404 = vmatmul.mubr.f32.gmra.mrb[40].mxu0 %v9562_v41  ;;  %v3485_v41 = vld [vmem:[#allocation14 + $0x148] sm:$0xff] }
 0x9bf   :  { %3409 = vmatprep.mubr.f32.mxu0 %v9563_v28  ;;  %v3489_v28 = vld [vmem:[#allocation14 + $0x168] sm:$0xff] }
 0x9c0   :  { %v6086_v32 = vpack.c.bf16 %v3489_v28, %v3485_v41  ;;  %v3523_v41 = vld [vmem:[#allocation14 + $0x278] sm:$0xff]  ;;  %v3516_v28 = vld [vmem:[#allocation14 + $0x240] sm:$0xff] }
 0x9c1   :  { %v6104_v0 = vpack.c.bf16 %v3520_v5, %v3516_v28  ;;  %v3555_v28 = vld [vmem:[#allocation14 + $0x378] sm:$0xff] }
 0x9c2   :  { %3410 = vmatmul.mubr.f32.gmra.mrb[42].mxu0 %v9564_v23  ;;  %v8323_v23 = vpack.c.bf16 %v3482_v31, %v3478_v47  ;;  %v3519_v31 = vld [vmem:[#allocation14 + $0x258] sm:$0xff] }
 0x9c3   :  { %3415 = vmatprep.mubr.f32.mxu0 %v8208_v50  ;;  %v3453_v50 = vld [vmem:[#allocation14 + $0x48] sm:$0xff] }
 0x9c4   :  { %6149 = vmatpush1.bf16.msra.mxu0 %v8323_v23 }
 0x9c5   :  { %6151 = vmatprep.subr.bf16.mxu0 %v8325_v34 }
 0x9c6   :  { %3416 = vmatmul.mubr.f32.gmra.mrb[44].mxu0 %v8210_v8  ;;  %v3457_v8 = vld [vmem:[#allocation14 + $0x68] sm:$0xff] }
 0x9c7   :  { %v6070_v15 = vpack.c.bf16 %v3457_v8, %v3453_v50  ;;  %v3497_v50 = vld [vmem:[#allocation14 + $0x1a8] sm:$0xff]  ;;  %v3495_v8 = vld [vmem:[#allocation14 + $0x198] sm:$0xff] }
 0x9c8   :  { %v8331_v52 = vpack.c.bf16 %v3499_v51, %v3495_v8  ;;  %6153 = vmatpush1.bf16.msra.mxu0 %v8328_v56  ;;  %v3531_v8 = vld [vmem:[#allocation14 + $0x2b8] sm:$0xff]  ;;  %v3528_v51 = vld [vmem:[#allocation14 + $0x2a0] sm:$0xff] }
 0x9c9   :  { %6071 = vmatprep.subr.bf16.mxu1 %v6070_v15  ;;  %v6090_v15 = vpack.c.bf16 %v3497_v50, %v3493_v53  ;;  %v8352_v53 = vpack.c.bf16 %v3522_v30, %v3518_v38  ;;  %v6106_v50 = vpack.c.bf16 %v3529_v35, %v3525_v26  ;;  %v3552_v26 = vld [vmem:[#allocation14 + $0x360] sm:$0xff]  ;;  %v3550_v35 = vld [vmem:[#allocation14 + $0x350] sm:$0xff] }
 0x9ca   :  { %6073 = vmatpush1.bf16.msra.mxu1 %v6072_v9  ;;  %v3496_v9 = vld [vmem:[#allocation14 + $0x1a0] sm:$0xff]  ;;  %6155 = vmatprep.subr.bf16.mxu0 %v8331_v52 }
 0x9cb   :  { %6075 = vmatprep.subr.bf16.mxu1 %v6074_v27  ;;  %v6092_v46 = vpack.c.bf16 %v3496_v9, %v3492_v62  ;;  %v3505_v27 = vld [vmem:[#allocation14 + $0x1e8] sm:$0xff]  ;;  %v3526_v9 = vld [vmem:[#allocation14 + $0x290] sm:$0xff] }
 0x9cc   :  { %6157 = vmatpush1.bf16.msra.mxu0 %v8335_v2  ;;  %v6094_v61 = vpack.c.bf16 %v3505_v27, %v3501_v13  ;;  %v3535_v13 = vld [vmem:[#allocation14 + $0x2d8] sm:$0xff] }
 0x9cd   :  { %6159 = vmatprep.subr.bf16.mxu0 %v8338_v40  ;;  %v3539_v27 = vld [vmem:[#allocation14 + $0x2f8] sm:$0xff] }
 0x9ce   :  { %6077 = vmatpush1.bf16.msra.mxu1 %v6076_v29  ;;  %v3500_v29 = vld [vmem:[#allocation14 + $0x1c0] sm:$0xff]  ;;  %v8361_v42 = vpack.c.bf16 %v3539_v27, %v3535_v13 }
 0x9cf   :  { %6079 = vmatprep.subr.bf16.mxu1 %v6078_v10  ;;  %v6096_v57 = vpack.c.bf16 %v3504_v58, %v3500_v29  ;;  %v3509_v10 = vld [vmem:[#allocation14 + $0x208] sm:$0xff]  ;;  %v3532_v29 = vld [vmem:[#allocation14 + $0x2c0] sm:$0xff] }
 0x9d0   :  { %v6098_v19 = vpack.c.bf16 %v3513_v45, %v3509_v10  ;;  %6161 = vmatpush1.bf16.msra.mxu0 %v8340_v59  ;;  %v3536_v58 = vld [vmem:[#allocation14 + $0x2e0] sm:$0xff]  ;;  %v3541_v10 = vld [vmem:[#allocation14 + $0x308] sm:$0xff] }
 0x9d1   :  { %v3545_v45 = vld [vmem:[#allocation14 + $0x328] sm:$0xff] }
 0x9d2   :  { %6081 = vmatpush1.bf16.msra.mxu1 %v6080_v63  ;;  %v3515_v63 = vld [vmem:[#allocation14 + $0x238] sm:$0xff]  ;;  %v6114_v60 = vpack.c.bf16 %v3545_v45, %v3541_v10  ;;  %v3562_v45 = vld [vmem:[#allocation14 + $0x3b0] sm:$0xff] }
 0x9d3   :  { %6083 = vmatprep.subr.bf16.mxu1 %v6082_v49  ;;  %v8343_v44 = vpack.c.bf16 %v3515_v63, %v3511_v16  ;;  %v3514_v49 = vld [vmem:[#allocation14 + $0x230] sm:$0xff]  ;;  %v3543_v16 = vld [vmem:[#allocation14 + $0x318] sm:$0xff] }
 0x9d4   :  { %v8347_v47 = vpack.c.bf16 %v3514_v49, %v3510_v4  ;;  %v3547_v63 = vld [vmem:[#allocation14 + $0x338] sm:$0xff]  ;;  %v3540_v4 = vld [vmem:[#allocation14 + $0x300] sm:$0xff]  ;;  %v3542_v49 = vld [vmem:[#allocation14 + $0x310] sm:$0xff] }
 0x9d5   :  { %6163 = vmatprep.subr.bf16.mxu0 %v8343_v44 }
 0x9d6   :  { %6085 = vmatpush1.bf16.msra.mxu1 %v6084_v11  ;;  %v6102_v11 = vpack.c.bf16 %v3521_v48, %v3517_v55  ;;  %6165 = vmatpush1.bf16.msra.mxu0 %v8347_v47  ;;  %v8367_v55 = vpack.c.bf16 %v3547_v63, %v3543_v16  ;;  %v3546_v48 = vld [vmem:[#allocation14 + $0x330] sm:$0xff]  ;;  %v3565_v63 = vld [vmem:[#allocation14 + $0x3c8] sm:$0xff] }
 0x9d7   :  { %6087 = vmatprep.subr.bf16.mxu1 %v6086_v32  ;;  %v8349_v32 = vpack.c.bf16 %v3523_v41, %v3519_v31  ;;  %v3553_v31 = vld [vmem:[#allocation14 + $0x368] sm:$0xff]  ;;  %v3551_v41 = vld [vmem:[#allocation14 + $0x358] sm:$0xff]  ;;  %v8370_v38 = vpack.c.bf16 %v3546_v48, %v3542_v49  ;;  %v3564_v48 = vld [vmem:[#allocation14 + $0x3c0] sm:$0xff] }
 0x9d9   :  { %6167 = vmatprep.subr.bf16.mxu0 %v8349_v32 }
 0x9da   :  { %6089 = vmatpush1.bf16.msra.mxu1 %v6088_v25  ;;  %v3527_v25 = vld [vmem:[#allocation14 + $0x298] sm:$0xff]  ;;  %6169 = vmatpush1.bf16.msra.mxu0 %v8352_v53 }
 0x9db   :  { %6091 = vmatprep.subr.bf16.mxu1 %v6090_v15  ;;  %v3524_v15 = vld [vmem:[#allocation14 + $0x280] sm:$0xff]  ;;  %v8355_v62 = vpack.c.bf16 %v3531_v8, %v3527_v25  ;;  %v8373_v25 = vpack.c.bf16 %v3555_v28, %v3551_v41  ;;  %v3557_v8 = vld [vmem:[#allocation14 + $0x388] sm:$0xff]  ;;  %v3570_v28 = vld [vmem:[#allocation14 + $0x3f0] sm:$0xff] }
 0x9dc   :  { %v6108_v24 = vpack.c.bf16 %v3528_v51, %v3524_v15  ;;  %v3561_v15 = vld [vmem:[#allocation14 + $0x3a8] sm:$0xff]  ;;  %v3559_v51 = vld [vmem:[#allocation14 + $0x398] sm:$0xff] }
 0x9dd   :  { %6171 = vmatprep.subr.bf16.mxu0 %v8355_v62 }
 0x9de   :  { %6093 = vmatpush1.bf16.msra.mxu1 %v6092_v46  ;;  %v3533_v46 = vld [vmem:[#allocation14 + $0x2c8] sm:$0xff] }
 0x9df   :  { %6095 = vmatprep.subr.bf16.mxu1 %v6094_v61  ;;  %v8358_v61 = vpack.c.bf16 %v3530_v18, %v3526_v9  ;;  %v6110_v12 = vpack.c.bf16 %v3537_v3, %v3533_v46  ;;  %v3563_v9 = vld [vmem:[#allocation14 + $0x3b8] sm:$0xff]  ;;  %v6122_v3 = vpack.c.bf16 %v3561_v15, %v3557_v8 }
 0x9e0   :  { %v8379_v13 = vpack.c.bf16 %v3563_v9, %v3559_v51 }
 0x9e1   :  { %6173 = vmatpush1.bf16.msra.mxu0 %v8358_v61 }
 0x9e2   :  { %6097 = vmatpush1.bf16.msra.mxu1 %v6096_v57  ;;  %v3534_v57 = vld [vmem:[#allocation14 + $0x2d0] sm:$0xff]  ;;  %6175 = vmatprep.subr.bf16.mxu0 %v8361_v42 }
 0x9e3   :  { %6099 = vmatprep.subr.bf16.mxu1 %v6098_v19  ;;  %v6112_v19 = vpack.c.bf16 %v3536_v58, %v3532_v29  ;;  %v8364_v1 = vpack.c.bf16 %v3538_v22, %v3534_v57  ;;  %v3560_v29 = vld [vmem:[#allocation14 + $0x3a0] sm:$0xff]  ;;  %v3558_v58 = vld [vmem:[#allocation14 + $0x390] sm:$0xff] }
 0x9e4   :  { %v8383_v16 = vpack.c.bf16 %v3562_v45, %v3558_v58 }
 0x9e5   :  { %6177 = vmatpush1.bf16.msra.mxu0 %v8364_v1 }
 0x9e6   :  { %6101 = vmatpush1.bf16.msra.mxu1 %v6100_v37  ;;  %v3544_v37 = vld [vmem:[#allocation14 + $0x320] sm:$0xff]  ;;  %6179 = vmatprep.subr.bf16.mxu0 %v8367_v55 }
 0x9e7   :  { %6103 = vmatprep.subr.bf16.mxu1 %v6102_v11  ;;  %v3549_v11 = vld [vmem:[#allocation14 + $0x348] sm:$0xff]  ;;  %v6116_v5 = vpack.c.bf16 %v3544_v37, %v3540_v4  ;;  %v3567_v4 = vld [vmem:[#allocation14 + $0x3d8] sm:$0xff] }
 0x9e8   :  { %v6118_v30 = vpack.c.bf16 %v3553_v31, %v3549_v11  ;;  %v3571_v37 = vld [vmem:[#allocation14 + $0x3f8] sm:$0xff]  ;;  %v3568_v11 = vld [vmem:[#allocation14 + $0x3e0] sm:$0xff]  ;;  %v3566_v31 = vld [vmem:[#allocation14 + $0x3d0] sm:$0xff] }
 0x9e9   :  { %6181 = vmatpush1.bf16.msra.mxu0 %v8370_v38  ;;  %v8386_v49 = vpack.c.bf16 %v3571_v37, %v3567_v4  ;;  %v6128_v41 = vpack.c.bf16 %v3568_v11, %v3564_v48 }
 0x9ea   :  { %6105 = vmatpush1.bf16.msra.mxu1 %v6104_v0  ;;  %v3548_v0 = vld [vmem:[#allocation14 + $0x340] sm:$0xff]  ;;  %6183 = vmatprep.subr.bf16.mxu0 %v8373_v25 }
 0x9eb   :  { %6107 = vmatprep.subr.bf16.mxu1 %v6106_v50  ;;  %v3554_v50 = vld [vmem:[#allocation14 + $0x370] sm:$0xff]  ;;  %v6120_v18 = vpack.c.bf16 %v3552_v26, %v3548_v0  ;;  %v2863_v26 = vld [vmem:[#allocation5 + $0x1c8] sm:$0xff] }
 0x9ec   :  { %v8376_v46 = vpack.c.bf16 %v3554_v50, %v3550_v35  ;;  %v2864_v0 = vld [vmem:[#allocation5 + $0x1d0] sm:$0xff]  ;;  %v2865_v50 = vld [vmem:[#allocation5 + $0x1d8] sm:$0xff] }
 0x9ee   :  { %6109 = vmatpush1.bf16.msra.mxu1 %v6108_v24  ;;  %6185 = vmatpush1.bf16.msra.mxu0 %v8376_v46 }
 0x9ef   :  { %6111 = vmatprep.subr.bf16.mxu1 %v6110_v12  ;;  %6187 = vmatprep.subr.bf16.mxu0 %v8379_v13  ;;  %v3556_v12 = vld [vmem:[#allocation14 + $0x380] sm:$0xff] }
 0x9f0   :  { %v6124_v10 = vpack.c.bf16 %v3560_v29, %v3556_v12 }
 0x9f2   :  { %6113 = vmatpush1.bf16.msra.mxu1 %v6112_v19  ;;  %v3569_v19 = vld [vmem:[#allocation14 + $0x3e8] sm:$0xff]  ;;  %6189 = vmatpush1.bf16.msra.mxu0 %v8383_v16 }
 0x9f3   :  { %6115 = vmatprep.subr.bf16.mxu1 %v6114_v60  ;;  %v6126_v60 = vpack.c.bf16 %v3569_v19, %v3565_v63  ;;  %6191 = vmatprep.subr.bf16.mxu0 %v8386_v49 }
 0x9f6   :  { %6117 = vmatpush1.bf16.msra.mxu1 %v6116_v5  ;;  %v8389_v5 = vpack.c.bf16 %v3570_v28, %v3566_v31 }
 0x9f7   :  { %6119 = vmatprep.subr.bf16.mxu1 %v6118_v30  ;;  %v2862_v30 = vld [vmem:[#allocation5 + $0x1c0] sm:$0xff] }
 0x9f8   :  { %6193 = vmatpush1.bf16.msra.mxu0 %v8389_v5 }
 0x9fa   :  { %6121 = vmatpush1.bf16.msra.mxu1 %v6120_v18 }
 0x9fb   :  { %6123 = vmatprep.subr.bf16.mxu1 %v6122_v3 }
 0x9fe   :  { %6125 = vmatpush1.bf16.msra.mxu1 %v6124_v10 }
 0x9ff   :  { %6127 = vmatprep.subr.bf16.mxu1 %v6126_v60  ;;  %v2866_v60 = vld [vmem:[#allocation5 + $0x1e0] sm:$0xff] }
 0xa01   :  { %v2936_v27 = vpop.f32.mrb[28].mxu0  ;;  %v3007_v24 = vpop.f32.mrb[28].mxu1 }
 0xa02   :  { %v2938_v57 = vpop.f32.mrb[29].mxu0  ;;  %v3009_v22 = vpop.f32.mrb[29].mxu1  ;;  %6129 = vmatpush1.bf16.msra.mxu1 %v6128_v41  ;;  %v3154_v35 = vadd.f32 %v2936_v27, %v2862_v30  ;;  %v3156_v8 = vadd.f32 %v3007_v24, %v2864_v0  ;;  %v2868_v24 = vld [vmem:[#allocation5 + $0x1f0] sm:$0xff] }
 0xa03   :  { %6194 = vmatprep.subr.bf16.mxu1 %v8296_v33  ;;  %v3155_v15 = vadd.f32 %v2938_v57, %v2863_v26  ;;  %v3157_v51 = vadd.f32 %v3009_v22, %v2865_v50  ;;  %v2867_v57 = vld [vmem:[#allocation5 + $0x1e8] sm:$0xff]  ;;  %v2869_v22 = vld [vmem:[#allocation5 + $0x1f8] sm:$0xff] }
 0xa04   :  { %v3948_v9 = vmul.f32 -1.442695, %v3154_v35  ;;  %v3950_v18 = vmul.f32 -1.442695, %v3156_v8 }
 0xa05   :  { %v3949_v3 = vmul.f32 -1.442695, %v3155_v15  ;;  %v3951_v12 = vmul.f32 -1.442695, %v3157_v51 }
 0xa06   :  { %6465 = vpow2.f32 %v3948_v9 }
 0xa07   :  { %6467 = vpow2.f32 %v3950_v18 }
 0xa08   :  { %6469 = vpow2.f32 %v3949_v3 }
 0xa09   :  { %6471 = vpow2.f32 %v3951_v12 }
 0xa10   :  { %v6466_v29 = vpop.eup %6465 }
 0xa11   :  { %v6468_v58 = vpop.eup %6467  ;;  %v3180_v45 = vadd.f32 1.0, %v6466_v29 }
 0xa12   :  { %v6470_v10 = vpop.eup %6469  ;;  %v3182_v63 = vadd.f32 1.0, %v6468_v58 }
 0xa13   :  { %v6472_v33 = vpop.eup %6471  ;;  %v3181_v19 = vadd.f32 1.0, %v6470_v10  ;;  %6473 = vrcp.f32 %v3180_v45 }
 0xa14   :  { %v3183_v27 = vadd.f32 1.0, %v6472_v33  ;;  %6475 = vrcp.f32 %v3182_v63 }
 0xa15   :  { %6477 = vrcp.f32 %v3181_v19 }
 0xa16   :  { %6479 = vrcp.f32 %v3183_v27 }
 0xa1d   :  { %v6474_v35 = vpop.eup %6473 }
 0xa1e   :  { %v6476_v50 = vpop.eup %6475 }
 0xa1f   :  { %v6478_v8 = vpop.eup %6477  ;;  %v3200_v18 = vmul.f32 %v6476_v50, %v8202_v36 }
 0xa20   :  { %v6480_v15 = vpop.eup %6479 }
 0xa21   :  { %v3201_v29 = vmul.f32 %v6480_v15, %v8204_v43  ;;  %v3305_v43 = vlaneseq }
 0xa41   :  { %v3078_v4 = vpop.f32.mrb[30].mxu0  ;;  %v3149_v37 = vpop.f32.mrb[30].mxu1 }
 0xa42   :  { %v3158_v48 = vadd.f32 %v3078_v4, %v2866_v60  ;;  %v3160_v11 = vadd.f32 %v3149_v37, %v2868_v24  ;;  %v3080_v31 = vpop.f32.mrb[31].mxu0  ;;  %v3151_v41 = vpop.f32.mrb[31].mxu1  ;;  %v8395_v4 = vshrl.u32 %v3305_v43, 7 }
 0xa43   :  { %v3159_v28 = vadd.f32 %v3080_v31, %v2867_v57  ;;  %v3161_v30 = vadd.f32 %v3151_v41, %v2869_v22 }
 0xa44   :  { %v3952_v0 = vmul.f32 -1.442695, %v3158_v48  ;;  %6481 = vtanh.f32 %v3160_v11  ;;  %v3307_v37 = vsub.s32 0, %v8395_v4  ;;  %v3303_v48 = vld [vmem:[%s8550_s5] sm:$0x3]  ;;  %v3311_v11 = vsub.s32 1, %v8395_v4 }
 0xa45   :  { %v3953_v26 = vmul.f32 -1.442695, %v3159_v28  ;;  %6483 = vtanh.f32 %v3161_v30 }
 0xa46   :  { %6485 = vpow2.f32 %v3952_v0  ;;  %v8404_v31 = vrot.slane %v3303_v48, %v3307_v37  ;;  %v8408_v41 = vrot.slane %v3303_v48, %v3311_v11 }
 0xa47   :  { %6487 = vpow2.f32 %v3953_v26 }
 0xa4e   :  { %v6482_v51 = vpop.eup %6481 }
 0xa4f   :  { %v6484_v9 = vpop.eup %6483  ;;  %v3202_v3 = vmul.f32 %v6482_v51, %v6474_v35 }
 0xa50   :  { %v6486_v12 = vpop.eup %6485  ;;  %v3203_v58 = vmul.f32 %v6484_v9, %v6478_v8 }
 0xa51   :  { %v6488_v10 = vpop.eup %6487  ;;  %v3184_v33 = vadd.f32 1.0, %v6486_v12  ;;  %v3204_v45 = vadd.f32 %v3202_v3, %v3200_v18 }
 0xa52   :  { %v3185_v63 = vadd.f32 1.0, %v6488_v10  ;;  %v3205_v19 = vadd.f32 %v3203_v58, %v3201_v29 }
 0xa53   :  { %6489 = vrcp.f32 %v3184_v33  ;;  %3221 = vst [vmem:[#allocation19] sm:$0xff] %v3204_v45 }
 0xa54   :  { %6491 = vrcp.f32 %v3185_v63  ;;  %3222 = vst [vmem:[#allocation19 + $0x8] sm:$0xff] %v3205_v19 }
 0xa55   :  { %6493 = vtanh.f32 %v3205_v19 }
 0xa56   :  { %6495 = vtanh.f32 %v3204_v45 }
 0xa5d   :  { %v6490_v27 = vpop.eup %6489 }
 0xa5e   :  { %v6492_v60 = vpop.eup %6491 }
 0xa5f   :  { %v6494_v24 = vpop.eup %6493 }
 0xa60   :  { %v6496_v36 = vpop.eup %6495  ;;  %v3209_v57 = vmul.f32 %v6494_v24, %v6492_v60 }
 0xa61   :  { %v3208_v22 = vmul.f32 %v6496_v36, %v6490_v27 }
 0xa62   :  { %3421 = vmatprep.mubr.f32.mxu0 %v3209_v57  ;;  %3220 = vst [vmem:[#allocation17 + $0x8] sm:$0xff] %v3209_v57 }
 0xa63   :  { %3422 = vmatmul.mubr.f32.gmra.mrb[46].mxu0 %v3208_v22  ;;  %3219 = vst [vmem:[#allocation17] sm:$0xff] %v3208_v22 }
 0xa81   :  { %v3381_v28 = vpop.f32.mrb[32].mxu0 }
 0xa82   :  { %v3382_v30 = vadd.f32 %v3381_v28, %v8404_v31  ;;  %v3383_v0 = vpop.f32.mrb[33].mxu0 }
 0xa83   :  { %v3384_v26 = vadd.f32 %v3383_v0, %v8408_v41 }
 0xa84   :  { %v3428_v8 = vmax.f32 %v3382_v30, 0.0 }
 0xa85   :  { %v3429_v35 = vmax.f32 %v3384_v26, 0.0  ;;  %v3387_v50 = vpop.f32.mrb[34].mxu0 }
 0xa86   :  { %v3388_v15 = vadd.f32 %v3387_v50, %v8404_v31  ;;  %v3389_v51 = vpop.f32.mrb[35].mxu0 }
 0xa87   :  { %v3390_v9 = vadd.f32 %v3389_v51, %v8408_v41  ;;  %3658 = vmatprep.mubr.f32.mxu1 %v3429_v35  ;;  %3771 = vmatprep.mubr.f32.mxu0 %v3429_v35 }
 0xa88   :  { %3659 = vmatmul.mubr.f32.vlgmr.msra.gmra.mrb[32].mxu1 %v3428_v8  ;;  %3772 = vmatmul.mubr.f32.vlgmr.msra.gmra.mrb[48].mxu0 %v3428_v8  ;;  %v3430_v12 = vmax.f32 %v3388_v15, 0.0 }
 0xa89   :  { %v3431_v18 = vmax.f32 %v3390_v9, 0.0  ;;  %v3393_v3 = vpop.f32.mrb[36].mxu0  ;;  %6210 = vmatpush1.bf16.msra.mxu1 %v8298_v14 }
 0xa8a   :  { %v3394_v29 = vadd.f32 %v3393_v3, %v8404_v31  ;;  %v3395_v58 = vpop.f32.mrb[37].mxu0  ;;  %6195 = vmatprep.subr.bf16.mxu1 %v8302_v39 }
 0xa8b   :  { %v3396_v10 = vadd.f32 %v3395_v58, %v8408_v41  ;;  %3664 = vmatprep.mubr.f32.mxu1 %v3431_v18  ;;  %3777 = vmatprep.mubr.f32.mxu0 %v3431_v18 }
 0xa8c   :  { %3665 = vmatmul.mubr.f32.gmra.mrb[34].mxu1 %v3430_v12  ;;  %3778 = vmatmul.mubr.f32.gmra.mrb[50].mxu0 %v3430_v12  ;;  %v3432_v63 = vmax.f32 %v3394_v29, 0.0 }
 0xa8d   :  { %v3433_v33 = vmax.f32 %v3396_v10, 0.0  ;;  %v3399_v45 = vpop.f32.mrb[38].mxu0  ;;  %6211 = vmatpush1.bf16.msra.mxu1 %v8304_v7 }
 0xa8e   :  { %v3400_v19 = vadd.f32 %v3399_v45, %v8404_v31  ;;  %v3401_v14 = vpop.f32.mrb[39].mxu0  ;;  %6196 = vmatprep.subr.bf16.mxu1 %v8308_v6 }
 0xa8f   :  { %v3402_v27 = vadd.f32 %v3401_v14, %v8408_v41  ;;  %3670 = vmatprep.mubr.f32.mxu1 %v3433_v33  ;;  %3783 = vmatprep.mubr.f32.mxu0 %v3433_v33 }
 0xa90   :  { %3671 = vmatmul.mubr.f32.gmra.mrb[36].mxu1 %v3432_v63  ;;  %3784 = vmatmul.mubr.f32.gmra.mrb[52].mxu0 %v3432_v63  ;;  %v3434_v24 = vmax.f32 %v3400_v19, 0.0 }
 0xa91   :  { %v3435_v39 = vmax.f32 %v3402_v27, 0.0  ;;  %v3405_v60 = vpop.f32.mrb[40].mxu0  ;;  %6212 = vmatpush1.bf16.msra.mxu1 %v8310_v54 }
 0xa92   :  { %v3406_v36 = vadd.f32 %v3405_v60, %v8404_v31  ;;  %v3407_v7 = vpop.f32.mrb[41].mxu0  ;;  %6197 = vmatprep.subr.bf16.mxu1 %v8314_v21 }
 0xa93   :  { %v3408_v57 = vadd.f32 %v3407_v7, %v8408_v41  ;;  %3676 = vmatprep.mubr.f32.mxu1 %v3435_v39  ;;  %3789 = vmatprep.mubr.f32.mxu0 %v3435_v39 }
 0xa94   :  { %3677 = vmatmul.mubr.f32.gmra.mrb[38].mxu1 %v3434_v24  ;;  %3790 = vmatmul.mubr.f32.gmra.mrb[54].mxu0 %v3434_v24  ;;  %v3436_v43 = vmax.f32 %v3406_v36, 0.0 }
 0xa95   :  { %v3437_v6 = vmax.f32 %v3408_v57, 0.0  ;;  %v3411_v22 = vpop.f32.mrb[42].mxu0  ;;  %6213 = vmatpush1.bf16.msra.mxu1 %v8316_v17 }
 0xa96   :  { %v3412_v48 = vadd.f32 %v3411_v22, %v8404_v31  ;;  %v3413_v54 = vpop.f32.mrb[43].mxu0  ;;  %6198 = vmatprep.subr.bf16.mxu1 %v8319_v20 }
 0xa97   :  { %v3414_v28 = vadd.f32 %v3413_v54, %v8408_v41  ;;  %3682 = vmatprep.mubr.f32.mxu1 %v3437_v6 }
 0xa98   :  { %3683 = vmatmul.mubr.f32.gmra.mrb[40].mxu1 %v3436_v43  ;;  %v3438_v0 = vmax.f32 %v3412_v48, 0.0 }
 0xa99   :  { %v3439_v21 = vmax.f32 %v3414_v28, 0.0  ;;  %v3417_v30 = vpop.f32.mrb[44].mxu0  ;;  %6214 = vmatpush1.bf16.msra.mxu1 %v8323_v23 }
 0xa9a   :  { %v3418_v26 = vadd.f32 %v3417_v30, %v8404_v31  ;;  %v3419_v35 = vpop.f32.mrb[45].mxu0  ;;  %6199 = vmatprep.subr.bf16.mxu1 %v8325_v34 }
 0xa9b   :  { %v3420_v17 = vadd.f32 %v3419_v35, %v8408_v41  ;;  %3688 = vmatprep.mubr.f32.mxu1 %v3439_v21 }
 0xa9c   :  { %3689 = vmatmul.mubr.f32.gmra.mrb[42].mxu1 %v3438_v0  ;;  %v3440_v20 = vmax.f32 %v3418_v26, 0.0 }
 0xa9d   :  { %v3441_v50 = vmax.f32 %v3420_v17, 0.0  ;;  %6215 = vmatpush1.bf16.msra.mxu1 %v8328_v56 }
 0xa9e   :  { %6200 = vmatprep.subr.bf16.mxu1 %v8331_v52 }
 0xa9f   :  { %3694 = vmatprep.mubr.f32.mxu1 %v3441_v50 }
 0xaa0   :  { %3695 = vmatmul.mubr.f32.gmra.mrb[44].mxu1 %v3440_v20 }
 0xaa1   :  { %6216 = vmatpush1.bf16.msra.mxu1 %v8335_v2 }
 0xaa2   :  { %6201 = vmatprep.subr.bf16.mxu1 %v8338_v40 }
 0xaa5   :  { %6217 = vmatpush1.bf16.msra.mxu1 %v8340_v59  ;;  %v3584_v59 = vsub.s32 2, %v8395_v4 }
 0xaa6   :  { %6202 = vmatprep.subr.bf16.mxu1 %v8343_v44  ;;  %v3572_v44 = vld [vmem:[%s8552_s7] sm:$0xf]  ;;  %s6719_s7 = smov [#allocation17]  }
 0xaa7   :  { %s3870_s24 = sshll.u32 %s6719_s7, 4  ;;  %s3871_s24 = int_to_ptr.vmem [resolvable:$true] %s3870_s24 }
 0xaa8   :  { %s6629_s25 = scalar_lea.vmem %s3871_s24, 256  ;;  %p6634_p7 = scmp.lt.s32.totalorder %s3871_s24, %s3871_s24 }
 0xaa9   :  { %6218 = vmatpush1.bf16.msra.mxu1 %v8347_v47  ;;  %v3588_v47 = vsub.s32 3, %v8395_v4  ;;  %p6630_p6 = scmp.ne.s32.totalorder %s3871_s24, %s6629_s25  ;;  %p6635_p8 = scmp.lt.s32.totalorder %s6629_s25, %s6629_s25 }
 0xaaa   :  { %6203 = vmatprep.subr.bf16.mxu1 %v8349_v32  ;;  %v8464_v32 = vrot.slane %v3572_v44, %v3307_v37 }
 0xaab   :  { %p6636_p9 = por %p6635_p8, %p6634_p7 }
 0xaad   :  { %6219 = vmatpush1.bf16.msra.mxu1 %v8352_v53  ;;  %v8466_v53 = vrot.slane %v3572_v44, %v3584_v59  ;;  %p6637_p10 = pnand %p6636_p9, %p6630_p6 }
 0xaae   :  { %6204 = vmatprep.subr.bf16.mxu1 %v8355_v62  ;;  %v8470_v62 = vrot.slane %v3572_v44, %v3311_v11 }
 0xab1   :  { %6220 = vmatpush1.bf16.msra.mxu1 %v8358_v61  ;;  %v8472_v61 = vrot.slane %v3572_v44, %v3588_v47 }
 0xab2   :  { %6205 = vmatprep.subr.bf16.mxu1 %v8361_v42 }
 0xab5   :  { %6221 = vmatpush1.bf16.msra.mxu1 %v8364_v1 }
 0xab6   :  { %6206 = vmatprep.subr.bf16.mxu1 %v8367_v55 }
 0xab9   :  { %6222 = vmatpush1.bf16.msra.mxu1 %v8370_v38 }
 0xaba   :  { %6207 = vmatprep.subr.bf16.mxu1 %v8373_v25 }
 0xabd   :  { %6223 = vmatpush1.bf16.msra.mxu1 %v8376_v46 }
 0xabe   :  { %6208 = vmatprep.subr.bf16.mxu1 %v8379_v13 }
 0xac1   :  { %6224 = vmatpush1.bf16.msra.mxu1 %v8383_v16 }
 0xac2   :  { %6209 = vmatprep.subr.bf16.mxu1 %v8386_v49 }
 0xac5   :  { %6225 = vmatpush1.bf16.msra.mxu1 %v8389_v5 }
 0xb36   :  { %v3423_v23 = vpop.f32.mrb[46].mxu0 }
 0xb37   :  { %v3424_v34 = vadd.f32 %v3423_v23, %v8404_v31  ;;  %v3425_v56 = vpop.f32.mrb[47].mxu0 }
 0xb38   :  { %v3426_v52 = vadd.f32 %v3425_v56, %v8408_v41 }
 0xb39   :  { %v3442_v40 = vmax.f32 %v3424_v34, 0.0 }
 0xb3a   :  { %v3443_v2 = vmax.f32 %v3426_v52, 0.0 }
 0xb3c   :  { %3700 = vmatprep.mubr.f32.mxu1 %v3443_v2 }
 0xb3d   :  { %3701 = vmatmul.mubr.f32.gmra.mrb[46].mxu1 %v3442_v40 }
 0xb3e   :  { %3795 = vmatprep.mubr.f32.mxu1 %v3437_v6 }
 0xb41   :  { %3796 = vmatmul.mubr.f32.vlgmr.msra.gmra.mrb[48].mxu1 %v3436_v43 }
 0xb42   :  { %3801 = vmatprep.mubr.f32.mxu1 %v3439_v21 }
 0xb45   :  { %3802 = vmatmul.mubr.f32.gmra.mrb[50].mxu1 %v3438_v0 }
 0xb46   :  { %3807 = vmatprep.mubr.f32.mxu1 %v3441_v50 }
 0xb49   :  { %3808 = vmatmul.mubr.f32.gmra.mrb[52].mxu1 %v3440_v20 }
 0xb4a   :  { %3813 = vmatprep.mubr.f32.mxu1 %v3443_v2 }
 0xb4d   :  { %3814 = vmatmul.mubr.f32.gmra.mrb[54].mxu1 %v3442_v40 }
 0xb5b   :  { %v3660_v42 = vpop.f32.mrb[32].mxu1  ;;  %v3773_v1 = vpop.f32.mrb[48].mxu0 }
 0xb5c   :  { %v3661_v55 = vadd.f32 %v3660_v42, %v8464_v32  ;;  %v3774_v38 = vadd.f32 %v3773_v1, %v8466_v53  ;;  %v3662_v25 = vpop.f32.mrb[33].mxu1  ;;  %v3775_v46 = vpop.f32.mrb[49].mxu0 }
 0xb5d   :  { %v3663_v13 = vadd.f32 %v3662_v25, %v8470_v62  ;;  %v3776_v16 = vadd.f32 %v3775_v46, %v8472_v61 }
 0xb5e   :  { %3820 = vst [vmem:[#allocation16] sm:$0xff] %v3661_v55  ;;  %3822 = vst [vmem:[#allocation16 + $0x10] sm:$0xff] %v3774_v38 }
 0xb5f   :  { %3821 = vst [vmem:[#allocation16 + $0x8] sm:$0xff] %v3663_v13  ;;  %3823 = vst [vmem:[#allocation16 + $0x18] sm:$0xff] %v3776_v16  ;;  %v3666_v49 = vpop.f32.mrb[34].mxu1  ;;  %v3779_v5 = vpop.f32.mrb[50].mxu0 }
 0xb60   :  { %v3667_v4 = vadd.f32 %v3666_v49, %v8464_v32  ;;  %v3780_v37 = vadd.f32 %v3779_v5, %v8466_v53  ;;  %v3668_v11 = vpop.f32.mrb[35].mxu1  ;;  %v3781_v31 = vpop.f32.mrb[51].mxu0 }
 0xb61   :  { %v3669_v41 = vadd.f32 %v3668_v11, %v8470_v62  ;;  %v3782_v8 = vadd.f32 %v3781_v31, %v8472_v61 }
 0xb62   :  { %3824 = vst [vmem:[#allocation16 + $0x20] sm:$0xff] %v3667_v4  ;;  %3826 = vst [vmem:[#allocation16 + $0x30] sm:$0xff] %v3780_v37 }
 0xb63   :  { %3825 = vst [vmem:[#allocation16 + $0x28] sm:$0xff] %v3669_v41  ;;  %3827 = vst [vmem:[#allocation16 + $0x38] sm:$0xff] %v3782_v8  ;;  %v3672_v15 = vpop.f32.mrb[36].mxu1  ;;  %v3785_v51 = vpop.f32.mrb[52].mxu0 }
 0xb64   :  { %v3673_v9 = vadd.f32 %v3672_v15, %v8464_v32  ;;  %v3786_v18 = vadd.f32 %v3785_v51, %v8466_v53  ;;  %v3674_v3 = vpop.f32.mrb[37].mxu1  ;;  %v3787_v12 = vpop.f32.mrb[53].mxu0 }
 0xb65   :  { %v3675_v29 = vadd.f32 %v3674_v3, %v8470_v62  ;;  %v3788_v58 = vadd.f32 %v3787_v12, %v8472_v61 }
 0xb66   :  { %3828 = vst [vmem:[#allocation16 + $0x40] sm:$0xff] %v3673_v9  ;;  %3830 = vst [vmem:[#allocation16 + $0x50] sm:$0xff] %v3786_v18 }
 0xb67   :  { %3829 = vst [vmem:[#allocation16 + $0x48] sm:$0xff] %v3675_v29  ;;  %3831 = vst [vmem:[#allocation16 + $0x58] sm:$0xff] %v3788_v58  ;;  %v3678_v10 = vpop.f32.mrb[38].mxu1  ;;  %v3791_v33 = vpop.f32.mrb[54].mxu0 }
 0xb68   :  { %v3679_v45 = vadd.f32 %v3678_v10, %v8464_v32  ;;  %v3792_v63 = vadd.f32 %v3791_v33, %v8466_v53  ;;  %v3680_v19 = vpop.f32.mrb[39].mxu1  ;;  %v3793_v14 = vpop.f32.mrb[55].mxu0 }
 0xb69   :  { %v3681_v27 = vadd.f32 %v3680_v19, %v8470_v62  ;;  %v3794_v39 = vadd.f32 %v3793_v14, %v8472_v61 }
 0xb6a   :  { %3832 = vst [vmem:[#allocation16 + $0x60] sm:$0xff] %v3679_v45  ;;  %3834 = vst [vmem:[#allocation16 + $0x70] sm:$0xff] %v3792_v63 }
 0xb6b   :  { %3833 = vst [vmem:[#allocation16 + $0x68] sm:$0xff] %v3681_v27  ;;  %3835 = vst [vmem:[#allocation16 + $0x78] sm:$0xff] %v3794_v39  ;;  %v3684_v60 = vpop.f32.mrb[40].mxu1 }
 0xb6c   :  { %v3685_v24 = vadd.f32 %v3684_v60, %v8464_v32  ;;  %v3686_v36 = vpop.f32.mrb[41].mxu1 }
 0xb6d   :  { %v3687_v7 = vadd.f32 %v3686_v36, %v8470_v62 }
 0xb6e   :  { %3836 = vst [vmem:[#allocation16 + $0x80] sm:$0xff] %v3685_v24 }
 0xb6f   :  { %3837 = vst [vmem:[#allocation16 + $0x88] sm:$0xff] %v3687_v7  ;;  %v3690_v57 = vpop.f32.mrb[42].mxu1 }
 0xb70   :  { %v3691_v6 = vadd.f32 %v3690_v57, %v8464_v32  ;;  %v3692_v22 = vpop.f32.mrb[43].mxu1 }
 0xb71   :  { %v3693_v43 = vadd.f32 %v3692_v22, %v8470_v62 }
 0xb72   :  { %3840 = vst [vmem:[#allocation16 + $0xa0] sm:$0xff] %v3691_v6 }
 0xb73   :  { %3841 = vst [vmem:[#allocation16 + $0xa8] sm:$0xff] %v3693_v43  ;;  %v3696_v48 = vpop.f32.mrb[44].mxu1 }
 0xb74   :  { %v3697_v54 = vadd.f32 %v3696_v48, %v8464_v32  ;;  %v3698_v28 = vpop.f32.mrb[45].mxu1 }
 0xb75   :  { %v3699_v21 = vadd.f32 %v3698_v28, %v8470_v62 }
 0xb76   :  { %3844 = vst [vmem:[#allocation16 + $0xc0] sm:$0xff] %v3697_v54 }
 0xb77   :  { %3845 = vst [vmem:[#allocation16 + $0xc8] sm:$0xff] %v3699_v21 }
 0xb78   :  { %6640 = shalt.err (!%p6637_p10)
}
 0xb79   :  { %s6641_s3 = scalar_lea.hbm %s8554_s9, 256 }
 0xb7a   :  { %p6642_p11 = scmp.ne.s32.totalorder %s8554_s9, %s6641_s3  ;;  %p6645_p12 = scmp.lt.u32.totalorder %s6641_s3, %s8554_s9 }
 0xb7c   :  { %p6647_p13 = pnand %p6645_p12, %p6642_p11 }
 0xb7e   :  { %6650 = shalt.err (!%p6647_p13)
}
 0xb7f   :  { %3873 = dma.vmem_to_hbm [thread:$0]  %s3871_s24, 256, %s8554_s9, [#allocation18]  }
 0xb80   :  { %s6720_s16 = smov [#allocation19]  }
 0xb81   :  { %s3880_s1 = sshll.u32 %s6720_s16, 4  ;;  %s3881_s1 = int_to_ptr.vmem [resolvable:$true] %s3880_s1 }
 0xb82   :  { %s6651_s18 = scalar_lea.vmem %s3881_s1, 256  ;;  %p6656_p1 = scmp.lt.s32.totalorder %s3881_s1, %s3881_s1 }
 0xb83   :  { %p6652_p0 = scmp.ne.s32.totalorder %s3881_s1, %s6651_s18  ;;  %p6657_p2 = scmp.lt.s32.totalorder %s6651_s18, %s6651_s18 }
 0xb85   :  { %p6658_p3 = por %p6657_p2, %p6656_p1 }
 0xb87   :  { %p6659_p4 = pnand %p6658_p3, %p6652_p0 }
 0xb89   :  { %6662 = shalt.err (!%p6659_p4)
}
 0xb8a   :  { %s6663_s21 = scalar_lea.hbm %s8555_s10, 256 }
 0xb8b   :  { %p6664_p5 = scmp.ne.s32.totalorder %s8555_s10, %s6663_s21  ;;  %p6667_p6 = scmp.lt.u32.totalorder %s6663_s21, %s8555_s10 }
 0xb8d   :  { %p6669_p7 = pnand %p6667_p6, %p6664_p5 }
 0xb8f   :  { %6672 = shalt.err (!%p6669_p7)
}
 0xb90   :  { %3883 = dma.vmem_to_hbm [thread:$0]  %s3881_s1, 256, %s8555_s10, [#allocation18]  }
 0xb91   :  { %s6721_s10 = smov [#allocation16]  }
 0xb92   :  { %s3857_s22 = sshll.u32 %s6721_s10, 4  ;;  %s3858_s22 = int_to_ptr.vmem [resolvable:$true] %s3857_s22 }
 0xb93   :  { %s6673_s5 = scalar_lea.vmem %s3858_s22, 4096  ;;  %p6678_p9 = scmp.lt.s32.totalorder %s3858_s22, %s3858_s22 }
 0xb94   :  { %p6674_p8 = scmp.ne.s32.totalorder %s3858_s22, %s6673_s5  ;;  %p6679_p10 = scmp.lt.s32.totalorder %s6673_s5, %s6673_s5 }
 0xb96   :  { %p6680_p11 = por %p6679_p10, %p6678_p9 }
 0xb98   :  { %p6681_p12 = pnand %p6680_p11, %p6674_p8 }
 0xc10   :  { %v3702_v30 = vpop.f32.mrb[46].mxu1 }
 0xc11   :  { %v3703_v0 = vadd.f32 %v3702_v30, %v8464_v32  ;;  %v3704_v26 = vpop.f32.mrb[47].mxu1 }
 0xc12   :  { %v3705_v35 = vadd.f32 %v3704_v26, %v8470_v62 }
 0xc13   :  { %3848 = vst [vmem:[#allocation16 + $0xe0] sm:$0xff] %v3703_v0 }
 0xc14   :  { %3849 = vst [vmem:[#allocation16 + $0xe8] sm:$0xff] %v3705_v35  ;;  %v3797_v17 = vpop.f32.mrb[48].mxu1 }
 0xc15   :  { %v3798_v50 = vadd.f32 %v3797_v17, %v8466_v53  ;;  %v3799_v20 = vpop.f32.mrb[49].mxu1 }
 0xc16   :  { %v3800_v23 = vadd.f32 %v3799_v20, %v8472_v61 }
 0xc17   :  { %3838 = vst [vmem:[#allocation16 + $0x90] sm:$0xff] %v3798_v50 }
 0xc18   :  { %3839 = vst [vmem:[#allocation16 + $0x98] sm:$0xff] %v3800_v23  ;;  %v3803_v34 = vpop.f32.mrb[50].mxu1 }
 0xc19   :  { %v3804_v56 = vadd.f32 %v3803_v34, %v8466_v53  ;;  %v3805_v52 = vpop.f32.mrb[51].mxu1 }
 0xc1a   :  { %v3806_v2 = vadd.f32 %v3805_v52, %v8472_v61 }
 0xc1b   :  { %3842 = vst [vmem:[#allocation16 + $0xb0] sm:$0xff] %v3804_v56 }
 0xc1c   :  { %3843 = vst [vmem:[#allocation16 + $0xb8] sm:$0xff] %v3806_v2  ;;  %v3809_v40 = vpop.f32.mrb[52].mxu1 }
 0xc1d   :  { %v3810_v59 = vadd.f32 %v3809_v40, %v8466_v53  ;;  %v3811_v44 = vpop.f32.mrb[53].mxu1 }
 0xc1e   :  { %v3812_v47 = vadd.f32 %v3811_v44, %v8472_v61 }
 0xc1f   :  { %3846 = vst [vmem:[#allocation16 + $0xd0] sm:$0xff] %v3810_v59 }
 0xc20   :  { %3847 = vst [vmem:[#allocation16 + $0xd8] sm:$0xff] %v3812_v47  ;;  %v3815_v32 = vpop.f32.mrb[54].mxu1 }
 0xc21   :  { %v3816_v62 = vadd.f32 %v3815_v32, %v8466_v53  ;;  %v3817_v42 = vpop.f32.mrb[55].mxu1 }
 0xc22   :  { %v3818_v1 = vadd.f32 %v3817_v42, %v8472_v61 }
 0xc23   :  { %3850 = vst [vmem:[#allocation16 + $0xf0] sm:$0xff] %v3816_v62 }
 0xc24   :  { %3851 = vst [vmem:[#allocation16 + $0xf8] sm:$0xff] %v3818_v1 }
 0xc25   :  { %6684 = shalt.err (!%p6681_p12)
}
 0xc26   :  { %s6685_s24 = scalar_lea.hbm %s8553_s8, 4096 }
 0xc27   :  { %p6686_p13 = scmp.ne.s32.totalorder %s8553_s8, %s6685_s24  ;;  %p6689_p0 = scmp.lt.u32.totalorder %s6685_s24, %s8553_s8 }
 0xc29   :  { %p6691_p1 = pnand %p6689_p0, %p6686_p13 }
 0xc2b   :  { %6694 = shalt.err (!%p6691_p1)
}
 0xc2c   :  { %3863 = dma.vmem_to_hbm [thread:$0]  %s3858_s22, 4096, %s8553_s8, [#allocation7], %s6717_s4, %s6717_s4, %s6718_s13  }
 0xc2d   :  { %6703 = dma.done.wait [#allocation7], 4096  }
 0xc2e   :  { %6704 = vsyncadd [#allocation7], 4294963200 }
 0xc2f   :  { %6705 = dma.done.wait [#allocation18], 512  }
 0xc30   :  { %6706 = vsyncadd [#allocation18], 4294966784 }
 0xc31   :  { %3893 = vsyncpa [#allocation6], 1 }
 0xc32   :  { %3894 = vsyncpa [#allocation9], 1 }
 0xc33   :  { %3895 = vsyncpa [#allocation12], 1 }
 0xc34   :  { %3896 = vsyncpa [#allocation15], 1 }
 0xc35   :  { %3897 = vsyncpa [#allocation7], 1 }
 0xc36   :  { %3898 = vsyncpa [#allocation18], 1 }

</bundles_post_ra>
